<compile_context>
chip_gen: v6e
topology: v6e:2x2x1
jax: 0.10.0
libtpu: 0.0.40
codegen_flags: <defaults>
</compile_context>

<pallas_src>
import functools
import math

import jax
import jax.numpy as jnp
from jax.experimental import pallas as pl
from jax.experimental.pallas import tpu as pltpu

# ---------------------------------------------------------------------------
# Small synthetic shapes consistent with the module.  H = 768 is hard-coded by
# ExtraVocab; the two vocab sizes stand in for the backbone vocab (30522) and
# extra_vocab (10000), padded to multiples of 256.
# ---------------------------------------------------------------------------
B = 2          # batch
S = 16         # sequence length
H = 768        # hidden dim (hard-coded in ExtraVocab)
V_MLM = 512    # backbone MLM vocab (stand-in for 30522 padded to x256)
V_EXTRA = 256  # extra vocab       (stand-in for 10000 padded to x256)

LN_EPS = 1e-13

ROW_TILE_TARGET = 256     # kernel-1 token-row tile (MXU M fill, step amortization)
SEQ_TILE_TARGET = 128     # kernel-2 sequence-row tile at production B*S
VOCAB_TILE_TARGET = 1024  # kernel-2 vocab tile target (512-1024 on v7x, 1024-2048 on v5e/v6e)


def _bytes(shape, dtype):
    return int(math.prod(shape)) * jnp.dtype(dtype).itemsize


def _vmem_limit(block_bytes, floor=16 << 20, cap=48 << 20):
    # Double-buffered blocks + compiler scratch headroom; cap leaves headroom under
    # v7x's 64 MiB physical VMEM (v5e/v6e have 128 MiB, so the cap is safe everywhere).
    need = 2 * sum(block_bytes) + (4 << 20)
    return int(min(max(need, floor), cap))


def _pick_vocab_tile(v_mlm, v_extra, target):
    # Prefer multiples of 256 (fills the 256-wide MXU N dim on v6e/v7x); fall back to
    # 128 (v5e MXU width).  The tile must divide both vocab regions.
    for step in (256, 128):
        tv = (min(target, v_mlm, v_extra) // step) * step
        while tv >= step:
            if v_mlm % tv == 0 and v_extra % tv == 0:
                return tv
            tv -= step
    raise ValueError("vocab sizes must be padded to a multiple of 128 (ideally 256)")


# ---------------------------------------------------------------------------
# Kernel 1: ExtraVocab.vocab_transform + vocab_layer_norm  ->  bf16 features
# ---------------------------------------------------------------------------
def _transform_ln_kernel(x_ref, wt_ref, bt_ref, gamma_ref, beta_ref, feat_ref):
    # bf16 x / bf16 W feed the MXU natively (f32 matmul is emulated ~3x slower);
    # accumulation stays f32.
    x = x_ref[...].astype(jnp.bfloat16)                       # (TR, H)
    h = jnp.dot(x, wt_ref[...],
                preferred_element_type=jnp.float32) + bt_ref[...]
    mu = jnp.mean(h, axis=-1, keepdims=True)
    xc = h - mu
    var = jnp.mean(xc * xc, axis=-1, keepdims=True)
    y = xc * jax.lax.rsqrt(var + LN_EPS) * gamma_ref[...] + beta_ref[...]
    # bf16 output halves the feature stream into kernel 2 and feeds its bf16 MXU matmul.
    feat_ref[...] = y.astype(jnp.bfloat16)


def extra_vocab_features(last_hidden, params, *, single_buffer_resident=True):
    b, s, h = last_hidden.shape
    n_rows = b * s
    row_tile = min(ROW_TILE_TARGET, n_rows)
    assert n_rows % row_tile == 0 and row_tile % 8 == 0
    x2d = last_hidden.reshape(n_rows, h)

    # Constant-index (resident) blocks never re-fetch: single-buffer them to halve
    # their VMEM footprint (the 768x768 bf16 weight is the big one).
    resident_kw = (dict(pipeline_mode=pl.Buffered(1))
                   if single_buffer_resident else {})

    blocks = [((row_tile, h), jnp.float32), ((h, h), jnp.bfloat16),
              ((1, h), jnp.float32), ((1, h), jnp.float32), ((1, h), jnp.float32),
              ((row_tile, h), jnp.bfloat16)]
    vmem = _vmem_limit([_bytes(shp, dt) for shp, dt in blocks])

    feat2d = pl.pallas_call(
        _transform_ln_kernel,
        out_shape=jax.ShapeDtypeStruct((n_rows, h), jnp.bfloat16),
        grid=(n_rows // row_tile,),
        in_specs=[
            pl.BlockSpec((row_tile, h), lambda i: (i, 0)),            # token rows
            pl.BlockSpec((h, h), lambda i: (0, 0), **resident_kw),    # W_transform (bf16)
            pl.BlockSpec((1, h), lambda i: (0, 0), **resident_kw),    # b_transform
            pl.BlockSpec((1, h), lambda i: (0, 0), **resident_kw),    # LN gamma
            pl.BlockSpec((1, h), lambda i: (0, 0), **resident_kw),    # LN beta
        ],
        out_specs=pl.BlockSpec((row_tile, h), lambda i: (i, 0)),
        compiler_params=pltpu.CompilerParams(
            dimension_semantics=("parallel",),
            vmem_limit_bytes=vmem),
    )(x2d, params["wt"], params["bt"], params["gamma"], params["beta"])
    return feat2d.reshape(b, s, h)


# ---------------------------------------------------------------------------
# Kernel 2: fused vocab_projector + concat + Splade max pooling.
# Grid = (concatenated-vocab tiles [parallel], sequence-row tiles [arbitrary]).
#   j <  n_mlm : pass-through of the backbone MLM logits tile + splade pool
#   j >= n_mlm : projector matmul (bf16 weights, f32 accum) + bias + splade pool
# The sentence embedding is max-accumulated in its resident output block across
# the innermost row axis, so VMEM stays bounded independently of B*S.
# ---------------------------------------------------------------------------
def _fused_project_splade_kernel(mask_ref, mlm_ref, feat_ref, wp_ref, bp_ref,
                                 tok_ref, sent_ref, *, n_mlm):
    j = pl.program_id(0)          # concatenated-vocab tile (parallel)
    r = pl.program_id(1)          # sequence-row tile (arbitrary, innermost)
    mask3 = mask_ref[...]         # (B, TS, 1), hoisted once per grid step

    def _splade_and_store(logits):                                 # (B, TS, TV) f32
        tok_ref[...] = logits
        pooled = jnp.max(jnp.log1p(jnp.maximum(logits, 0.0)) * mask3, axis=1)

        @pl.when(r == 0)
        def _():
            sent_ref[...] = pooled

        @pl.when(r > 0)
        def _():
            sent_ref[...] = jnp.maximum(sent_ref[...], pooled)

    @pl.when(j < n_mlm)
    def _mlm_region():
        # Pure pass-through of the backbone logits tile (+ splade pool).  If the
        # consumer can take (mlm_logits, extra_logits) separately, drop the tok write
        # here to halve kernel-2 HBM traffic at the real 30522 vocab.
        _splade_and_store(mlm_ref[...])

    @pl.when(j >= n_mlm)
    def _extra_region():
        # Weight-streaming-bound matmul (M = B*TS rows); roofline is the (H, TV)
        # bf16 weight tile, so MXU M under-utilization is acceptable.
        f = feat_ref[...]                                          # (B, TS, H) bf16
        bsz, ts, hh = f.shape
        logits = jnp.dot(f.reshape(bsz * ts, hh), wp_ref[...],
                         preferred_element_type=jnp.float32)
        logits = logits.reshape(bsz, ts, -1) + bp_ref[...]
        _splade_and_store(logits)


def fused_project_splade(attention_mask, mlm_logits, feat, wp, bp, *,
                         seq_tile=None, vocab_tile_target=VOCAB_TILE_TARGET):
    b, s, v_mlm = mlm_logits.shape
    h, v_extra = wp.shape
    tv = _pick_vocab_tile(v_mlm, v_extra, vocab_tile_target)
    ts = min(SEQ_TILE_TARGET, s) if seq_tile is None else seq_tile
    assert s % ts == 0 and (ts % 8 == 0 or ts == s)

    n_mlm, n_extra = v_mlm // tv, v_extra // tv
    n_total = n_mlm + n_extra
    n_row = s // ts
    v_total = v_mlm + v_extra

    # (B, S, 1) so the row-tiled mask block keeps a lane dim of 1 (layout-legal).
    mask3 = attention_mask.astype(jnp.float32).reshape(b, s, 1)

    # Clamped index maps: inside each region the unused operand's block index stays
    # constant so Pallas skips its redundant DMA where possible.
    mask_map = lambda j, r: (0, r, 0)
    mlm_map = lambda j, r: (0, r, jnp.minimum(j, n_mlm - 1))
    feat_map = lambda j, r: (0, r, 0)
    wp_map = lambda j, r: (0, jnp.maximum(j - n_mlm, 0))
    bp_map = lambda j, r: (0, jnp.maximum(j - n_mlm, 0))
    tok_map = lambda j, r: (0, r, j)
    sent_map = lambda j, r: (0, j)        # constant across r -> resident max accumulator

    blocks = [((b, ts, 1), jnp.float32), ((b, ts, tv), jnp.float32),
              ((b, ts, h), jnp.bfloat16), ((h, tv), jnp.bfloat16),
              ((1, tv), jnp.float32), ((b, ts, tv), jnp.float32),
              ((b, tv), jnp.float32)]
    vmem = _vmem_limit([_bytes(shp, dt) for shp, dt in blocks])

    kernel = functools.partial(_fused_project_splade_kernel, n_mlm=n_mlm)

    return pl.pallas_call(
        kernel,
        out_shape=(
            jax.ShapeDtypeStruct((b, s, v_total), jnp.float32),   # token_embeddings
            jax.ShapeDtypeStruct((b, v_total), jnp.float32),      # sentence_embedding
        ),
        grid=(n_total, n_row),
        in_specs=[
            pl.BlockSpec((b, ts, 1), mask_map),    # attention mask rows
            pl.BlockSpec((b, ts, tv), mlm_map),    # MLM logits tile
            pl.BlockSpec((b, ts, h), feat_map),    # bf16 features rows
            pl.BlockSpec((h, tv), wp_map),         # bf16 projector weight tile
            pl.BlockSpec((1, tv), bp_map),         # projector bias tile
        ],
        out_specs=(
            pl.BlockSpec((b, ts, tv), tok_map),    # lane-dense output tiles
            pl.BlockSpec((b, tv), sent_map),
        ),
        compiler_params=pltpu.CompilerParams(
            # Vocab axis is independent (v7x megacore shards it); the row axis carries
            # the sentence-max accumulation so it must stay "arbitrary".
            dimension_semantics=("parallel", "arbitrary"),
            vmem_limit_bytes=vmem),
    )(mask3, mlm_logits, feat, wp, bp)


# ---------------------------------------------------------------------------
# TransformerExtraVocab.forward (kernel-backed), sans the HF transformer call.
# ---------------------------------------------------------------------------
def transformer_extra_vocab_forward(features, params, *,
                                    single_buffer_resident=True, seq_tile=None):
    # TODO(synk): self.auto_model (HF AutoModelForMaskedLM) forward + tokenizer are
    # not implemented; backbone MLM logits / last hidden state arrive as inputs.
    mlm_logits = features["mlm_logits"]                 # (B, S, V_MLM)
    last_hidden = features["last_hidden_states"]        # (B, S, H)
    attention_mask = features["attention_mask"]         # (B, S) float

    feat = extra_vocab_features(last_hidden, params,
                                single_buffer_resident=single_buffer_resident)
    token_embeddings, sentence_embedding = fused_project_splade(
        attention_mask, mlm_logits, feat, params["wp"], params["bp"],
        seq_tile=seq_tile)

    out = dict(features)
    out["token_embeddings"] = token_embeddings          # cat([mlm, extra], -1)
    out["sentence_embedding"] = sentence_embedding      # Splade pooled
    return out


if __name__ == "__main__":
    key = jax.random.PRNGKey(0)
    k0, k1, k2, k3, k4, k5, k6, k7 = jax.random.split(key, 8)

    # Synthetic backbone outputs (stand-ins for the frozen HF model).
    last_hidden = jax.random.normal(k0, (B, S, H), dtype=jnp.float32)
    mlm_logits = jax.random.normal(k1, (B, S, V_MLM), dtype=jnp.float32)
    lengths = jnp.array([11, 5], dtype=jnp.int32)
    attention_mask = (jnp.arange(S)[None, :] < lengths[:, None]).astype(jnp.float32)

    params = {
        # ExtraVocab.vocab_transform (Linear 768->768): stored [H, H] so the kernel
        # computes x @ W + b (== torch x @ weight.T + bias); bf16 weight stream.
        "wt": (jax.random.normal(k2, (H, H), dtype=jnp.float32) * 0.02
               ).astype(jnp.bfloat16),
        "bt": jax.random.normal(k3, (1, H), dtype=jnp.float32) * 0.02,
        # ExtraVocab.vocab_layer_norm affine params (f32).
        "gamma": 1.0 + 0.1 * jax.random.normal(k4, (1, H), dtype=jnp.float32),
        "beta": 0.02 * jax.random.normal(k5, (1, H), dtype=jnp.float32),
        # ExtraVocab.vocab_projector (Linear 768->V_EXTRA): bf16 weights halve the
        # dominant HBM stream; bias stays f32.
        "wp": (jax.random.normal(k6, (H, V_EXTRA), dtype=jnp.float32) * 0.02
               ).astype(jnp.bfloat16),
        "bp": jax.random.normal(k7, (1, V_EXTRA), dtype=jnp.float32) * 0.02,
    }

    features = {
        "last_hidden_states": last_hidden,
        "mlm_logits": mlm_logits,
        "attention_mask": attention_mask,
    }

    # seq_tile=8 gives two row steps at the demo S=16 so the cross-row-tile sentence
    # max accumulation path is actually exercised; production default is 128.
    run = functools.partial(transformer_extra_vocab_forward, features, params,
                            seq_tile=8)
    try:
        out = run(single_buffer_resident=True)
    except Exception:
        # pl.Buffered(1) (single-buffered resident blocks) not supported on this
        # jax build -> fall back to default double-buffering.
        out = run(single_buffer_resident=False)

    jax.block_until_ready(out["token_embeddings"])
    jax.block_until_ready(out["sentence_embedding"])

    # -------- pure-JAX reference (same bf16-weight / f32-accumulation policy) -------
    x2d = last_hidden.reshape(B * S, H).astype(jnp.bfloat16)
    h_ref = jnp.dot(x2d, params["wt"],
                    preferred_element_type=jnp.float32) + params["bt"]
    mu = jnp.mean(h_ref, axis=-1, keepdims=True)
    var = jnp.mean((h_ref - mu) ** 2, axis=-1, keepdims=True)
    feat_f32 = (h_ref - mu) * jax.lax.rsqrt(var + LN_EPS) * params["gamma"] + params["beta"]
    feat_bf16 = feat_f32.astype(jnp.bfloat16)
    extra_ref = (jnp.dot(feat_bf16, params["wp"],
                         preferred_element_type=jnp.float32)
                 + params["bp"]).reshape(B, S, V_EXTRA)
    tok_ref = jnp.concatenate([mlm_logits, extra_ref], axis=-1)
    sent_ref = jnp.max(jnp.log1p(jnp.maximum(tok_ref, 0.0))
                       * attention_mask[:, :, None], axis=1)

    # MLM region is a pure pass-through -> (near) exact.
    assert jnp.allclose(out["token_embeddings"][:, :, :V_MLM], mlm_logits, atol=1e-6)
    # Extra-vocab region / pooled output go through the bf16 MXU path; tolerance
    # covers accumulation-order differences only (reference uses the same bf16 policy).
    assert jnp.allclose(out["token_embeddings"][:, :, V_MLM:], extra_ref,
                        atol=2e-2, rtol=2e-2)
    assert jnp.allclose(out["sentence_embedding"], sent_ref, atol=2e-2, rtol=2e-2)

    print("KERNEL_OK")
</pallas_src>

<mosaic_0001>
module attributes {stable_mosaic.version = 11 : i64} {
  func.func @_transform_ln_kernel(%arg0: i32, %arg1: memref<32x768xf32, #tpu.memory_space<vmem>>, %arg2: memref<768x768xbf16, #tpu.memory_space<vmem>>, %arg3: memref<1x768xf32, #tpu.memory_space<vmem>>, %arg4: memref<1x768xf32, #tpu.memory_space<vmem>>, %arg5: memref<1x768xf32, #tpu.memory_space<vmem>>, %arg6: memref<32x768xbf16, #tpu.memory_space<vmem>>) attributes {dimension_semantics = [#tpu.dimension_semantics<parallel>], iteration_bounds = array<i64: 1>, scalar_prefetch = 0 : i64, scratch_operands = 0 : i64, tpu.core_type = #tpu.core_type<tc>, window_params = [{transform_indices = @transform_0, window_bounds = array<i64: 32, 768>}, {pipeline_mode = #tpu.pipeline_mode<synchronous>, transform_indices = @transform_1, window_bounds = array<i64: 768, 768>}, {pipeline_mode = #tpu.pipeline_mode<synchronous>, transform_indices = @transform_2, window_bounds = array<i64: 1, 768>}, {pipeline_mode = #tpu.pipeline_mode<synchronous>, transform_indices = @transform_3, window_bounds = array<i64: 1, 768>}, {pipeline_mode = #tpu.pipeline_mode<synchronous>, transform_indices = @transform_4, window_bounds = array<i64: 1, 768>}, {transform_indices = @transform_5, window_bounds = array<i64: 32, 768>}]} {
    %c0 = arith.constant 0 : index
    %c0_0 = arith.constant 0 : index
    %0 = vector.load %arg1[%c0, %c0_0] : memref<32x768xf32, #tpu.memory_space<vmem>>, vector<32x768xf32>
    %1 = arith.truncf %0 : vector<32x768xf32> to vector<32x768xbf16>
    %c0_1 = arith.constant 0 : index
    %c0_2 = arith.constant 0 : index
    %2 = vector.load %arg2[%c0_1, %c0_2] : memref<768x768xbf16, #tpu.memory_space<vmem>>, vector<768x768xbf16>
    %cst = arith.constant dense<0.000000e+00> : vector<32x768xf32>
    %3 = tpu.matmul %1, %2, %cst {dimension_numbers = #tpu.dot_dimension_numbers<[1], [0], [0], [1], [0, 0, 1, 1], [], []>} : vector<32x768xbf16>, vector<768x768xbf16>, vector<32x768xf32> -> vector<32x768xf32>
    %c0_3 = arith.constant 0 : index
    %c0_4 = arith.constant 0 : index
    %4 = vector.load %arg3[%c0_3, %c0_4] : memref<1x768xf32, #tpu.memory_space<vmem>>, vector<1x768xf32>
    %5 = vector.broadcast %4 : vector<1x768xf32> to vector<32x768xf32>
    %6 = arith.addf %3, %5 : vector<32x768xf32>
    %cst_5 = arith.constant dense<0.000000e+00> : vector<32xf32>
    %7 = vector.multi_reduction <add>, %6, %cst_5 [1] : vector<32x768xf32> to vector<32xf32>
    %8 = vector.shape_cast %7 : vector<32xf32> to vector<32x1xf32>
    %cst_6 = arith.constant 7.680000e+02 : f32
    %9 = vector.broadcast %cst_6 : f32 to vector<32x1xf32>
    %10 = arith.divf %8, %9 : vector<32x1xf32>
    %11 = vector.broadcast %10 : vector<32x1xf32> to vector<32x768xf32>
    %12 = arith.subf %6, %11 : vector<32x768xf32>
    %13 = arith.mulf %12, %12 : vector<32x768xf32>
    %cst_7 = arith.constant dense<0.000000e+00> : vector<32xf32>
    %14 = vector.multi_reduction <add>, %13, %cst_7 [1] : vector<32x768xf32> to vector<32xf32>
    %15 = vector.shape_cast %14 : vector<32xf32> to vector<32x1xf32>
    %cst_8 = arith.constant 7.680000e+02 : f32
    %16 = vector.broadcast %cst_8 : f32 to vector<32x1xf32>
    %17 = arith.divf %15, %16 : vector<32x1xf32>
    %cst_9 = arith.constant 9.99999982E-14 : f32
    %18 = vector.broadcast %cst_9 : f32 to vector<32x1xf32>
    %19 = arith.addf %17, %18 : vector<32x1xf32>
    %20 = math.rsqrt %19 : vector<32x1xf32>
    %21 = vector.broadcast %20 : vector<32x1xf32> to vector<32x768xf32>
    %22 = arith.mulf %12, %21 : vector<32x768xf32>
    %c0_10 = arith.constant 0 : index
    %c0_11 = arith.constant 0 : index
    %23 = vector.load %arg4[%c0_10, %c0_11] : memref<1x768xf32, #tpu.memory_space<vmem>>, vector<1x768xf32>
    %24 = vector.broadcast %23 : vector<1x768xf32> to vector<32x768xf32>
    %25 = arith.mulf %22, %24 : vector<32x768xf32>
    %c0_12 = arith.constant 0 : index
    %c0_13 = arith.constant 0 : index
    %26 = vector.load %arg5[%c0_12, %c0_13] : memref<1x768xf32, #tpu.memory_space<vmem>>, vector<1x768xf32>
    %27 = vector.broadcast %26 : vector<1x768xf32> to vector<32x768xf32>
    %28 = arith.addf %25, %27 : vector<32x768xf32>
    %29 = arith.truncf %28 : vector<32x768xf32> to vector<32x768xbf16>
    %c0_14 = arith.constant 0 : index
    %c0_15 = arith.constant 0 : index
    %30 = vector.load %arg6[%c0_14, %c0_15] : memref<32x768xbf16, #tpu.memory_space<vmem>>, vector<32x768xbf16>
    tpu.vector_store %arg6[%c0_14, %c0_15], %29 {strides = array<i32>} : memref<32x768xbf16, #tpu.memory_space<vmem>>, vector<32x768xbf16>,
    return
  }
  func.func @transform_0(%arg0: i32) -> (i32, i32) {
    %c0_i32 = arith.constant 0 : i32
    %c0_i32_0 = arith.constant 0 : i32
    return %arg0, %c0_i32 : i32, i32
  }
  func.func @transform_1(%arg0: i32) -> (i32, i32) {
    %c0_i32 = arith.constant 0 : i32
    %c0_i32_0 = arith.constant 0 : i32
    %c0_i32_1 = arith.constant 0 : i32
    return %c0_i32, %c0_i32_0 : i32, i32
  }
  func.func @transform_2(%arg0: i32) -> (i32, i32) {
    %c0_i32 = arith.constant 0 : i32
    %c0_i32_0 = arith.constant 0 : i32
    %c0_i32_1 = arith.constant 0 : i32
    return %c0_i32, %c0_i32_0 : i32, i32
  }
  func.func @transform_3(%arg0: i32) -> (i32, i32) {
    %c0_i32 = arith.constant 0 : i32
    %c0_i32_0 = arith.constant 0 : i32
    %c0_i32_1 = arith.constant 0 : i32
    return %c0_i32, %c0_i32_0 : i32, i32
  }
  func.func @transform_4(%arg0: i32) -> (i32, i32) {
    %c0_i32 = arith.constant 0 : i32
    %c0_i32_0 = arith.constant 0 : i32
    %c0_i32_1 = arith.constant 0 : i32
    return %c0_i32, %c0_i32_0 : i32, i32
  }
  func.func @transform_5(%arg0: i32) -> (i32, i32) {
    %c0_i32 = arith.constant 0 : i32
    %c0_i32_0 = arith.constant 0 : i32
    return %arg0, %c0_i32 : i32, i32
  }
}

module attributes {stable_mosaic.version = 11 : i64} {
  func.func @_transform_ln_kernel(%arg0: i32, %arg1: memref<32x768xf32, #tpu.memory_space<vmem>>, %arg2: memref<768x768xbf16, #tpu.memory_space<vmem>>, %arg3: memref<1x768xf32, #tpu.memory_space<vmem>>, %arg4: memref<1x768xf32, #tpu.memory_space<vmem>>, %arg5: memref<1x768xf32, #tpu.memory_space<vmem>>, %arg6: memref<32x768xbf16, #tpu.memory_space<vmem>>) attributes {dimension_semantics = [#tpu.dimension_semantics<parallel>], iteration_bounds = array<i64: 1>, scalar_prefetch = 0 : i64, scratch_operands = 0 : i64, tpu.core_type = #tpu.core_type<tc>, window_params = [{transform_indices = @transform_0, window_bounds = array<i64: 32, 768>}, {pipeline_mode = #tpu.pipeline_mode<synchronous>, transform_indices = @transform_1, window_bounds = array<i64: 768, 768>}, {pipeline_mode = #tpu.pipeline_mode<synchronous>, transform_indices = @transform_2, window_bounds = array<i64: 1, 768>}, {pipeline_mode = #tpu.pipeline_mode<synchronous>, transform_indices = @transform_3, window_bounds = array<i64: 1, 768>}, {pipeline_mode = #tpu.pipeline_mode<synchronous>, transform_indices = @transform_4, window_bounds = array<i64: 1, 768>}, {transform_indices = @transform_5, window_bounds = array<i64: 32, 768>}]} {
    %c0 = arith.constant 0 : index
    %c0_0 = arith.constant 0 : index
    %0 = vector.load %arg1[%c0, %c0_0] : memref<32x768xf32, #tpu.memory_space<vmem>>, vector<32x768xf32>
    %1 = arith.truncf %0 : vector<32x768xf32> to vector<32x768xbf16>
    %c0_1 = arith.constant 0 : index
    %c0_2 = arith.constant 0 : index
    %2 = vector.load %arg2[%c0_1, %c0_2] : memref<768x768xbf16, #tpu.memory_space<vmem>>, vector<768x768xbf16>
    %cst = arith.constant dense<0.000000e+00> : vector<32x768xf32>
    %3 = tpu.matmul %1, %2, %cst {dimension_numbers = #tpu.dot_dimension_numbers<[1], [0], [0], [1], [0, 0, 1, 1], [], []>} : vector<32x768xbf16>, vector<768x768xbf16>, vector<32x768xf32> -> vector<32x768xf32>
    %c0_3 = arith.constant 0 : index
    %c0_4 = arith.constant 0 : index
    %4 = vector.load %arg3[%c0_3, %c0_4] : memref<1x768xf32, #tpu.memory_space<vmem>>, vector<1x768xf32>
    %5 = vector.broadcast %4 : vector<1x768xf32> to vector<32x768xf32>
    %6 = arith.addf %3, %5 : vector<32x768xf32>
    %cst_5 = arith.constant dense<0.000000e+00> : vector<32xf32>
    %7 = vector.multi_reduction <add>, %6, %cst_5 [1] : vector<32x768xf32> to vector<32xf32>
    %8 = vector.shape_cast %7 : vector<32xf32> to vector<32x1xf32>
    %cst_6 = arith.constant 7.680000e+02 : f32
    %9 = vector.broadcast %cst_6 : f32 to vector<32x1xf32>
    %10 = arith.divf %8, %9 : vector<32x1xf32>
    %11 = vector.broadcast %10 : vector<32x1xf32> to vector<32x768xf32>
    %12 = arith.subf %6, %11 : vector<32x768xf32>
    %13 = arith.mulf %12, %12 : vector<32x768xf32>
    %cst_7 = arith.constant dense<0.000000e+00> : vector<32xf32>
    %14 = vector.multi_reduction <add>, %13, %cst_7 [1] : vector<32x768xf32> to vector<32xf32>
    %15 = vector.shape_cast %14 : vector<32xf32> to vector<32x1xf32>
    %cst_8 = arith.constant 7.680000e+02 : f32
    %16 = vector.broadcast %cst_8 : f32 to vector<32x1xf32>
    %17 = arith.divf %15, %16 : vector<32x1xf32>
    %cst_9 = arith.constant 9.99999982E-14 : f32
    %18 = vector.broadcast %cst_9 : f32 to vector<32x1xf32>
    %19 = arith.addf %17, %18 : vector<32x1xf32>
    %20 = math.rsqrt %19 : vector<32x1xf32>
    %21 = vector.broadcast %20 : vector<32x1xf32> to vector<32x768xf32>
    %22 = arith.mulf %12, %21 : vector<32x768xf32>
    %c0_10 = arith.constant 0 : index
    %c0_11 = arith.constant 0 : index
    %23 = vector.load %arg4[%c0_10, %c0_11] : memref<1x768xf32, #tpu.memory_space<vmem>>, vector<1x768xf32>
    %24 = vector.broadcast %23 : vector<1x768xf32> to vector<32x768xf32>
    %25 = arith.mulf %22, %24 : vector<32x768xf32>
    %c0_12 = arith.constant 0 : index
    %c0_13 = arith.constant 0 : index
    %26 = vector.load %arg5[%c0_12, %c0_13] : memref<1x768xf32, #tpu.memory_space<vmem>>, vector<1x768xf32>
    %27 = vector.broadcast %26 : vector<1x768xf32> to vector<32x768xf32>
    %28 = arith.addf %25, %27 : vector<32x768xf32>
    %29 = arith.truncf %28 : vector<32x768xf32> to vector<32x768xbf16>
    %c0_14 = arith.constant 0 : index
    %c0_15 = arith.constant 0 : index
    %30 = vector.load %arg6[%c0_14, %c0_15] : memref<32x768xbf16, #tpu.memory_space<vmem>>, vector<32x768xbf16>
    tpu.vector_store %arg6[%c0_14, %c0_15], %29 {strides = array<i32>} : memref<32x768xbf16, #tpu.memory_space<vmem>>, vector<32x768xbf16>,
    return
  }
  func.func @transform_0(%arg0: i32) -> (i32, i32) {
    %c0_i32 = arith.constant 0 : i32
    %c0_i32_0 = arith.constant 0 : i32
    return %arg0, %c0_i32 : i32, i32
  }
  func.func @transform_1(%arg0: i32) -> (i32, i32) {
    %c0_i32 = arith.constant 0 : i32
    %c0_i32_0 = arith.constant 0 : i32
    %c0_i32_1 = arith.constant 0 : i32
    return %c0_i32, %c0_i32_0 : i32, i32
  }
  func.func @transform_2(%arg0: i32) -> (i32, i32) {
    %c0_i32 = arith.constant 0 : i32
    %c0_i32_0 = arith.constant 0 : i32
    %c0_i32_1 = arith.constant 0 : i32
    return %c0_i32, %c0_i32_0 : i32, i32
  }
  func.func @transform_3(%arg0: i32) -> (i32, i32) {
    %c0_i32 = arith.constant 0 : i32
    %c0_i32_0 = arith.constant 0 : i32
    %c0_i32_1 = arith.constant 0 : i32
    return %c0_i32, %c0_i32_0 : i32, i32
  }
  func.func @transform_4(%arg0: i32) -> (i32, i32) {
    %c0_i32 = arith.constant 0 : i32
    %c0_i32_0 = arith.constant 0 : i32
    %c0_i32_1 = arith.constant 0 : i32
    return %c0_i32, %c0_i32_0 : i32, i32
  }
  func.func @transform_5(%arg0: i32) -> (i32, i32) {
    %c0_i32 = arith.constant 0 : i32
    %c0_i32_0 = arith.constant 0 : i32
    return %arg0, %c0_i32 : i32, i32
  }
}

</mosaic_0001>

<bundles_post_ra>
// kernel: tpu_custom_call.1
= control target key start
LH: loop header
LB: loop body
LE: loop exit
PB: predicated region body
PF: predicated region fallthrough
CT: control target
= control target key end

     0   :  { %10 = vsyncpa [#allocation3], 0  ;;  %s4176_s0 = inlined_call_operand.hbm [shape: f32[32,768], index: 0, kind: input, shape index: {}]   ;;  %s4177_s1 = inlined_call_operand.hbm [shape: bf16[768,768], index: 1, kind: input, shape index: {}]   ;;  %s4178_s2 = inlined_call_operand.hbm [shape: f32[1,768], index: 2, kind: input, shape index: {}]   ;;  %s4179_s3 = inlined_call_operand.hbm [shape: f32[1,768], index: 3, kind: input, shape index: {}]   ;;  %s4180_s4 = inlined_call_operand.hbm [shape: f32[1,768], index: 4, kind: input, shape index: {}]   ;;  %s4181_s5 = inlined_call_operand.hbm [shape: bf16[32,768], index: 5, kind: output, shape index: {}]  }
   0x1   :  { %11 = vsyncpa [#allocation6], 0 }
   0x2   :  { %12 = vsyncpa [#allocation9], 0 }
   0x3   :  { %13 = vsyncpa [#allocation4], 0  ;;  %s3638_s18 = smov [#allocation5]  }
   0x4   :  { %s31_s19 = sshll.u32 %s3638_s18, 4  ;;  %s32_s19 = int_to_ptr.vmem [resolvable:$true] %s31_s19 }
   0x5   :  { %s3518_s20 = scalar_lea.vmem %s32_s19, 36864  ;;  %p3523_p1 = scmp.lt.s32.totalorder %s32_s19, %s32_s19 }
   0x6   :  { %p3519_p0 = scmp.ne.s32.totalorder %s32_s19, %s3518_s20  ;;  %p3524_p2 = scmp.lt.s32.totalorder %s3518_s20, %s3518_s20 }
   0x8   :  { %p3525_p3 = por %p3524_p2, %p3523_p1 }
   0xa   :  { %p3526_p4 = pnand %p3525_p3, %p3519_p0 }
   0xc   :  { %3529 = shalt.err (!%p3526_p4)
}
   0xd   :  { %s3639_s21 = smov 384   ;;  %s3640_s22 = smov 24  }
   0xe   :  { %37 = dma.hbm_to_vmem [thread:$0]  %s4177_s1, 36864, %s32_s19, [#allocation6], %s3639_s21, %s3639_s21, %s3640_s22  }
   0xf   :  { %s3641_s25 = smov [#allocation8]   ;;  %s3642_s27 = smov [#allocation2]  }
  0x10   :  { %s54_s26 = sshll.u32 %s3641_s25, 4  ;;  %s19_s28 = sshll.u32 %s3642_s27, 4  ;;  %s55_s26 = int_to_ptr.vmem [resolvable:$true] %s54_s26  ;;  %s20_s28 = int_to_ptr.vmem [resolvable:$true] %s19_s28 }
  0x11   :  { %s3538_s29 = scalar_lea.vmem %s55_s26, 96  ;;  %p3543_p6 = scmp.lt.s32.totalorder %s55_s26, %s55_s26 }
  0x12   :  { %p3539_p5 = scmp.ne.s32.totalorder %s55_s26, %s3538_s29  ;;  %p3544_p7 = scmp.lt.s32.totalorder %s3538_s29, %s3538_s29 }
  0x14   :  { %p3545_p8 = por %p3544_p7, %p3543_p6 }
  0x16   :  { %p3546_p9 = pnand %p3545_p8, %p3539_p5 }
  0x18   :  { %3549 = shalt.err (!%p3546_p9)
}
  0x19   :  { %57 = dma.hbm_to_vmem [thread:$0]  %s4179_s3, 96, %s55_s26, [#allocation9]  }
  0x1a   :  { %s3558_s7 = scalar_lea.vmem %s20_s28, 3072  ;;  %p3563_p11 = scmp.lt.s32.totalorder %s20_s28, %s20_s28 }
  0x1b   :  { %p3559_p10 = scmp.ne.s32.totalorder %s20_s28, %s3558_s7  ;;  %p3564_p12 = scmp.lt.s32.totalorder %s3558_s7, %s3558_s7 }
  0x1d   :  { %p3565_p13 = por %p3564_p12, %p3563_p11 }
  0x1f   :  { %p3566_p0 = pnand %p3565_p13, %p3559_p10 }
  0x21   :  { %3569 = shalt.err (!%p3566_p0)
}
  0x22   :  { %s3643_s1 = smov 768   ;;  %s3644_s8 = smov 48  }
  0x23   :  { %25 = dma.hbm_to_vmem [thread:$0]  %s4176_s0, 3072, %s20_s28, [#allocation3], %s3643_s1, %s3643_s1, %s3644_s8  }
  0x24   :  { %s3645_s11 = smov [#allocation7]   ;;  %s3646_s13 = smov [#allocation10]  }
  0x25   :  { %s44_s12 = sshll.u32 %s3645_s11, 4  ;;  %s64_s14 = sshll.u32 %s3646_s13, 4  ;;  %s45_s12 = int_to_ptr.vmem [resolvable:$true] %s44_s12  ;;  %s65_s14 = int_to_ptr.vmem [resolvable:$true] %s64_s14 }
  0x26   :  { %s3578_s3 = scalar_lea.vmem %s45_s12, 96  ;;  %p3583_p2 = scmp.lt.s32.totalorder %s45_s12, %s45_s12 }
  0x27   :  { %p3579_p1 = scmp.ne.s32.totalorder %s45_s12, %s3578_s3  ;;  %p3584_p3 = scmp.lt.s32.totalorder %s3578_s3, %s3578_s3 }
  0x29   :  { %p3585_p4 = por %p3584_p3, %p3583_p2 }
  0x2b   :  { %p3586_p5 = pnand %p3585_p4, %p3579_p1 }
  0x2d   :  { %3589 = shalt.err (!%p3586_p5)
}
  0x2e   :  { %47 = dma.hbm_to_vmem [thread:$0]  %s4178_s2, 96, %s45_s12, [#allocation6]  }
  0x2f   :  { %s3598_s17 = scalar_lea.vmem %s65_s14, 96  ;;  %p3603_p7 = scmp.lt.s32.totalorder %s65_s14, %s65_s14 }
  0x30   :  { %p3599_p6 = scmp.ne.s32.totalorder %s65_s14, %s3598_s17  ;;  %p3604_p8 = scmp.lt.s32.totalorder %s3598_s17, %s3598_s17 }
  0x32   :  { %p3605_p9 = por %p3604_p8, %p3603_p7 }
  0x34   :  { %p3606_p10 = pnand %p3605_p9, %p3599_p6 }
  0x36   :  { %3609 = shalt.err (!%p3606_p10)
}
  0x37   :  { %67 = dma.hbm_to_vmem [thread:$0]  %s4180_s4, 96, %s65_s14, [#allocation9]  }
  0x38   :  { %3630 = dma.done.wait [#allocation3], 3072  }
  0x39   :  { %3631 = vsyncadd [#allocation3], 4294964224 }
  0x3a   :  { %3632 = dma.done.wait [#allocation6], 36960  }
  0x3b   :  { %3633 = vsyncadd [#allocation6], 4294930336 }
  0x3c   :  { %3634 = dma.done.wait [#allocation9], 192  }
  0x3d   :  { %3635 = vsyncadd [#allocation9], 4294967104  ;;  %v3070_v0 = vld [vmem:[#allocation5 + $0x154] ss:$24 sps:$4 sm:$0xff]   ;;  %v3074_v2 = vld [vmem:[#allocation5 + $0x150] ss:$24 sps:$4 sm:$0xff]  }
  0x3e   :  { %v3072_v1 = vld [vmem:[#allocation5 + $0x454] ss:$24 sps:$4 sm:$0xff]   ;;  %1879 = vmatprep.subr.bf16.mxu0 %v3070_v0  ;;  %v3075_v3 = vld [vmem:[#allocation5 + $0x450] ss:$24 sps:$4 sm:$0xff]   ;;  %v3076_v4 = vld [vmem:[#allocation5 + $0x124] ss:$24 sps:$4 sm:$0xff]  }
  0x3f   :  { %1932 = vmatprep.subr.bf16.mxu1 %v3072_v1  ;;  %1880 = vmatpush1.bf16.msra.mxu0 %v3074_v2  ;;  %v3078_v5 = vld [vmem:[#allocation5 + $0x424] ss:$24 sps:$4 sm:$0xff]   ;;  %v3080_v6 = vld [vmem:[#allocation5 + $0x120] ss:$24 sps:$4 sm:$0xff]   ;;  %v3082_v8 = vld [vmem:[#allocation5 + $0xf4] ss:$24 sps:$4 sm:$0xff]  }
  0x40   :  { %1933 = vmatpush1.bf16.msra.mxu1 %v3075_v3  ;;  %1881 = vmatprep.subr.bf16.mxu0 %v3076_v4  ;;  %v3081_v7 = vld [vmem:[#allocation5 + $0x420] ss:$24 sps:$4 sm:$0xff]   ;;  %v3084_v9 = vld [vmem:[#allocation5 + $0x3f4] ss:$24 sps:$4 sm:$0xff]   ;;  %v3086_v10 = vld [vmem:[#allocation5 + $0xf0] ss:$24 sps:$4 sm:$0xff]  }
  0x41   :  { %1934 = vmatprep.subr.bf16.mxu1 %v3078_v5  ;;  %v3087_v11 = vld [vmem:[#allocation5 + $0x3f0] ss:$24 sps:$4 sm:$0xff]   ;;  %v3088_v12 = vld [vmem:[#allocation5 + $0xc4] ss:$24 sps:$4 sm:$0xff]   ;;  %v3092_v14 = vld [vmem:[#allocation5 + $0xc0] ss:$24 sps:$4 sm:$0xff]  }
  0x42   :  { %v3090_v13 = vld [vmem:[#allocation5 + $0x3c4] ss:$24 sps:$4 sm:$0xff]   ;;  %v3093_v15 = vld [vmem:[#allocation5 + $0x3c0] ss:$24 sps:$4 sm:$0xff]   ;;  %v3094_v16 = vld [vmem:[#allocation5 + $0x94] ss:$24 sps:$4 sm:$0xff]  }
  0x43   :  { %1882 = vmatpush1.bf16.msra.mxu0 %v3080_v6  ;;  %v3096_v17 = vld [vmem:[#allocation5 + $0x394] ss:$24 sps:$4 sm:$0xff]   ;;  %v3098_v18 = vld [vmem:[#allocation5 + $0x90] ss:$24 sps:$4 sm:$0xff]   ;;  %v3100_v20 = vld [vmem:[#allocation5 + $0x64] ss:$24 sps:$4 sm:$0xff]  }
  0x44   :  { %1935 = vmatpush1.bf16.msra.mxu1 %v3081_v7  ;;  %1883 = vmatprep.subr.bf16.mxu0 %v3082_v8  ;;  %v3099_v19 = vld [vmem:[#allocation5 + $0x390] ss:$24 sps:$4 sm:$0xff]   ;;  %v3102_v21 = vld [vmem:[#allocation5 + $0x364] ss:$24 sps:$4 sm:$0xff]   ;;  %v3104_v22 = vld [vmem:[#allocation5 + $0x60] ss:$24 sps:$4 sm:$0xff]  }
  0x45   :  { %1936 = vmatprep.subr.bf16.mxu1 %v3084_v9  ;;  %v3105_v23 = vld [vmem:[#allocation5 + $0x360] ss:$24 sps:$4 sm:$0xff]   ;;  %v3106_v24 = vld [vmem:[#allocation5 + $0x34] ss:$24 sps:$4 sm:$0xff]   ;;  %v3110_v26 = vld [vmem:[#allocation5 + $0x30] ss:$24 sps:$4 sm:$0xff]  }
  0x46   :  { %v3108_v25 = vld [vmem:[#allocation5 + $0x334] ss:$24 sps:$4 sm:$0xff]   ;;  %v3111_v27 = vld [vmem:[#allocation5 + $0x330] ss:$24 sps:$4 sm:$0xff]   ;;  %v3112_v28 = vld [vmem:[#allocation5 + $0x4] ss:$24 sps:$4 sm:$0xff]  }
  0x47   :  { %1884 = vmatpush1.bf16.msra.mxu0 %v3086_v10  ;;  %v3114_v29 = vld [vmem:[#allocation5 + $0x304] ss:$24 sps:$4 sm:$0xff]   ;;  %v3116_v30 = vld [vmem:[#allocation5] ss:$24 sps:$4 sm:$0xff]   ;;  %v3118_v32 = vld [vmem:[#allocation5 + $0x2d4] ss:$24 sps:$4 sm:$0xff]  }
  0x48   :  { %1937 = vmatpush1.bf16.msra.mxu1 %v3087_v11  ;;  %1885 = vmatprep.subr.bf16.mxu0 %v3088_v12  ;;  %v3117_v31 = vld [vmem:[#allocation5 + $0x300] ss:$24 sps:$4 sm:$0xff]   ;;  %v3120_v33 = vld [vmem:[#allocation5 + $0x5d4] ss:$24 sps:$4 sm:$0xff]   ;;  %v3122_v34 = vld [vmem:[#allocation5 + $0x2d0] ss:$24 sps:$4 sm:$0xff]  }
  0x49   :  { %1938 = vmatprep.subr.bf16.mxu1 %v3090_v13  ;;  %v3123_v35 = vld [vmem:[#allocation5 + $0x5d0] ss:$24 sps:$4 sm:$0xff]   ;;  %v3124_v36 = vld [vmem:[#allocation5 + $0x2a4] ss:$24 sps:$4 sm:$0xff]   ;;  %v3128_v38 = vld [vmem:[#allocation5 + $0x2a0] ss:$24 sps:$4 sm:$0xff]  }
  0x4a   :  { %v3126_v37 = vld [vmem:[#allocation5 + $0x5a4] ss:$24 sps:$4 sm:$0xff]   ;;  %v3129_v39 = vld [vmem:[#allocation5 + $0x5a0] ss:$24 sps:$4 sm:$0xff]   ;;  %v3130_v40 = vld [vmem:[#allocation5 + $0x274] ss:$24 sps:$4 sm:$0xff]  }
  0x4b   :  { %1886 = vmatpush1.bf16.msra.mxu0 %v3092_v14  ;;  %v3132_v41 = vld [vmem:[#allocation5 + $0x574] ss:$24 sps:$4 sm:$0xff]   ;;  %v3134_v42 = vld [vmem:[#allocation5 + $0x270] ss:$24 sps:$4 sm:$0xff]   ;;  %v3136_v44 = vld [vmem:[#allocation5 + $0x244] ss:$24 sps:$4 sm:$0xff]  }
  0x4c   :  { %1939 = vmatpush1.bf16.msra.mxu1 %v3093_v15  ;;  %1887 = vmatprep.subr.bf16.mxu0 %v3094_v16  ;;  %v3135_v43 = vld [vmem:[#allocation5 + $0x570] ss:$24 sps:$4 sm:$0xff]   ;;  %v3138_v45 = vld [vmem:[#allocation5 + $0x544] ss:$24 sps:$4 sm:$0xff]   ;;  %v3140_v50 = vld [vmem:[#allocation5 + $0x240] ss:$24 sps:$4 sm:$0xff]  }
  0x4d   :  { %1940 = vmatprep.subr.bf16.mxu1 %v3096_v17  ;;  %v84_v46 = vld [vmem:[#allocation2 + $0x8] sm:$0xff]  ;;  %v90_v47 = vld [vmem:[#allocation2 + $0x38] sm:$0xff]  ;;  %v83_v6 = vld [vmem:[#allocation2] sm:$0xff]  ;;  %s3647_s2 = smov [#allocation11]  }
  0x4e   :  { %v86_v48 = vld [vmem:[#allocation2 + $0x18] sm:$0xff]  ;;  %v92_v49 = vld [vmem:[#allocation2 + $0x48] sm:$0xff]  ;;  %v3696_v53 = vpack.c.bf16 %v90_v47, %v84_v46  ;;  %v89_v7 = vld [vmem:[#allocation2 + $0x30] sm:$0xff]  ;;  %s2702_s4 = sshll.u32 %s3647_s2, 4  ;;  %s2703_s4 = int_to_ptr.vmem [resolvable:$true] %s2702_s4 }
  0x4f   :  { %1888 = vmatpush1.bf16.msra.mxu0 %v3098_v18  ;;  %v3141_v51 = vld [vmem:[#allocation5 + $0x540] ss:$24 sps:$4 sm:$0xff]   ;;  %v3142_v52 = vld [vmem:[#allocation5 + $0x214] ss:$24 sps:$4 sm:$0xff]   ;;  %v3698_v54 = vpack.c.bf16 %v92_v49, %v86_v48  ;;  %v3146_v56 = vld [vmem:[#allocation5 + $0x210] ss:$24 sps:$4 sm:$0xff]   ;;  %v3702_v12 = vpack.c.bf16 %v89_v7, %v83_v6  ;;  %p3615_p12 = scmp.lt.s32.totalorder %s2703_s4, %s2703_s4 }
  0x50   :  { %1941 = vmatpush1.bf16.msra.mxu1 %v3099_v19  ;;  %1889 = vmatprep.subr.bf16.mxu0 %v3100_v20  ;;  %v3144_v55 = vld [vmem:[#allocation5 + $0x514] ss:$24 sps:$4 sm:$0xff]   ;;  %v3147_v57 = vld [vmem:[#allocation5 + $0x510] ss:$24 sps:$4 sm:$0xff]   ;;  %v3148_v58 = vld [vmem:[#allocation5 + $0x1e4] ss:$24 sps:$4 sm:$0xff]  }
  0x51   :  { %1942 = vmatprep.subr.bf16.mxu1 %v3102_v21  ;;  %1911 = vmatprep.mubr.bf16.mxu0 %v3696_v53  ;;  %v3150_v59 = vld [vmem:[#allocation5 + $0x4e4] ss:$24 sps:$4 sm:$0xff]   ;;  %v3152_v60 = vld [vmem:[#allocation5 + $0x1e0] ss:$24 sps:$4 sm:$0xff]   ;;  %v3154_v62 = vld [vmem:[#allocation5 + $0x1b4] ss:$24 sps:$4 sm:$0xff]  }
  0x52   :  { %1964 = vmatprep.mubr.bf16.mxu1 %v3698_v54  ;;  %v3153_v61 = vld [vmem:[#allocation5 + $0x4e0] ss:$24 sps:$4 sm:$0xff]   ;;  %v3156_v63 = vld [vmem:[#allocation5 + $0x4b4] ss:$24 sps:$4 sm:$0xff]   ;;  %v3158_v0 = vld [vmem:[#allocation5 + $0x1b0] ss:$24 sps:$4 sm:$0xff]  }
  0x53   :  { %1890 = vmatpush1.bf16.msra.mxu0 %v3104_v22  ;;  %v3159_v1 = vld [vmem:[#allocation5 + $0x4b0] ss:$24 sps:$4 sm:$0xff]   ;;  %v3160_v2 = vld [vmem:[#allocation5 + $0x184] ss:$24 sps:$4 sm:$0xff]   ;;  %v3164_v4 = vld [vmem:[#allocation5 + $0x180] ss:$24 sps:$4 sm:$0xff]  }
  0x54   :  { %1943 = vmatpush1.bf16.msra.mxu1 %v3105_v23  ;;  %1891 = vmatprep.subr.bf16.mxu0 %v3106_v24  ;;  %v3162_v3 = vld [vmem:[#allocation5 + $0x484] ss:$24 sps:$4 sm:$0xff]   ;;  %v3165_v5 = vld [vmem:[#allocation5 + $0x480] ss:$24 sps:$4 sm:$0xff]   ;;  %v85_v8 = vld [vmem:[#allocation2 + $0x10] sm:$0xff]  ;;  %s3610_s19 = scalar_lea.vmem %s2703_s4, 1536 }
  0x55   :  { %1944 = vmatprep.subr.bf16.mxu1 %v3108_v25  ;;  %v91_v9 = vld [vmem:[#allocation2 + $0x40] sm:$0xff]  ;;  %v3168_v10 = vld [vmem:[#allocation5 + $0x754] ss:$24 sps:$4 sm:$0xff]   ;;  %v3166_v14 = vld [vmem:[#allocation5 + $0x750] ss:$24 sps:$4 sm:$0xff]   ;;  %p3611_p11 = scmp.ne.s32.totalorder %s2703_s4, %s3610_s19  ;;  %p3616_p13 = scmp.lt.s32.totalorder %s3610_s19, %s3610_s19 }
  0x56   :  { %v3171_v11 = vld [vmem:[#allocation5 + $0x15c] ss:$24 sps:$4 sm:$0xff]   ;;  %v3704_v13 = vpack.c.bf16 %v91_v9, %v85_v8  ;;  %v3169_v15 = vld [vmem:[#allocation5 + $0x158] ss:$24 sps:$4 sm:$0xff]   ;;  %v3177_v17 = vld [vmem:[#allocation5 + $0x12c] ss:$24 sps:$4 sm:$0xff]  }
  0x57   :  { %1892 = vmatpush1.bf16.msra.mxu0 %v3110_v26  ;;  %v3174_v16 = vld [vmem:[#allocation5 + $0x724] ss:$24 sps:$4 sm:$0xff]   ;;  %v3172_v18 = vld [vmem:[#allocation5 + $0x720] ss:$24 sps:$4 sm:$0xff]   ;;  %v3180_v20 = vld [vmem:[#allocation5 + $0x6f4] ss:$24 sps:$4 sm:$0xff]   ;;  %p3617_p0 = por %p3616_p13, %p3615_p12 }
  0x58   :  { %1945 = vmatpush1.bf16.msra.mxu1 %v3111_v27  ;;  %1893 = vmatprep.subr.bf16.mxu0 %v3112_v28  ;;  %v3175_v19 = vld [vmem:[#allocation5 + $0x128] ss:$24 sps:$4 sm:$0xff]   ;;  %v3183_v21 = vld [vmem:[#allocation5 + $0xfc] ss:$24 sps:$4 sm:$0xff]   ;;  %v3181_v23 = vld [vmem:[#allocation5 + $0xf8] ss:$24 sps:$4 sm:$0xff]  }
  0x59   :  { %1946 = vmatprep.subr.bf16.mxu1 %v3114_v29  ;;  %v3178_v22 = vld [vmem:[#allocation5 + $0x6f0] ss:$24 sps:$4 sm:$0xff]   ;;  %v3186_v24 = vld [vmem:[#allocation5 + $0x6c4] ss:$24 sps:$4 sm:$0xff]   ;;  %v3184_v26 = vld [vmem:[#allocation5 + $0x6c0] ss:$24 sps:$4 sm:$0xff]   ;;  %p3618_p1 = pnand %p3617_p0, %p3611_p11 }
  0x5a   :  { %v3189_v25 = vld [vmem:[#allocation5 + $0xcc] ss:$24 sps:$4 sm:$0xff]   ;;  %v3187_v27 = vld [vmem:[#allocation5 + $0xc8] ss:$24 sps:$4 sm:$0xff]   ;;  %v3195_v29 = vld [vmem:[#allocation5 + $0x9c] ss:$24 sps:$4 sm:$0xff]  }
  0x5b   :  { %1894 = vmatpush1.bf16.msra.mxu0 %v3116_v30  ;;  %v3192_v28 = vld [vmem:[#allocation5 + $0x694] ss:$24 sps:$4 sm:$0xff]   ;;  %v3190_v30 = vld [vmem:[#allocation5 + $0x690] ss:$24 sps:$4 sm:$0xff]   ;;  %v103_v48 = vld [vmem:[#allocation2 + $0xa0] sm:$0xff] }
  0x5c   :  { %1947 = vmatpush1.bf16.msra.mxu1 %v3117_v31  ;;  %1895 = vmatprep.subr.bf16.mxu0 %v3118_v32  ;;  %v3193_v31 = vld [vmem:[#allocation5 + $0x98] ss:$24 sps:$4 sm:$0xff]   ;;  %v3198_v32 = vld [vmem:[#allocation5 + $0x664] ss:$24 sps:$4 sm:$0xff]  }
  0x5d   :  { %1948 = vmatprep.subr.bf16.mxu1 %v3120_v33  ;;  %v3201_v33 = vld [vmem:[#allocation5 + $0x6c] ss:$24 sps:$4 sm:$0xff]   ;;  %v3207_v46 = vld [vmem:[#allocation5 + $0x3c] ss:$24 sps:$4 sm:$0xff]   ;;  %v3226_v7 = vld [vmem:[#allocation5 + $0x870] ss:$24 sps:$4 sm:$0xff]  }
  0x5e   :  { %v97_v47 = vld [vmem:[#allocation2 + $0x70] sm:$0xff]  ;;  %v3234_v9 = vld [vmem:[#allocation5 + $0x844] ss:$24 sps:$4 sm:$0xff]  }
  0x5f   :  { %1896 = vmatpush2.bf16.msra.mxu0 %v3122_v34  ;;  %v96_v34 = vld [vmem:[#allocation2 + $0x68] sm:$0xff]  ;;  %v3717_v49 = vpack.c.bf16 %v103_v48, %v97_v47  ;;  %v3231_v6 = vld [vmem:[#allocation5 + $0x27c] ss:$24 sps:$4 sm:$0xff]   ;;  %v3229_v8 = vld [vmem:[#allocation5 + $0x278] ss:$24 sps:$4 sm:$0xff]  }
  0x60   :  { %1949 = vmatpush2.bf16.msra.mxu1 %v3123_v35  ;;  %1897 = vmatprep.subr.bf16.mxu0 %v3124_v36  ;;  %v102_v35 = vld [vmem:[#allocation2 + $0x98] sm:$0xff]  ;;  %v95_v36 = vld [vmem:[#allocation2 + $0x60] sm:$0xff] }
  0x61   :  { %1950 = vmatprep.subr.bf16.mxu1 %v3126_v37  ;;  %v3708_v37 = vpack.c.bf16 %v102_v35, %v96_v34  ;;  %v3267_v34 = vld [vmem:[#allocation5 + $0x75c] ss:$24 sps:$4 sm:$0xff]   ;;  %v3262_v35 = vld [vmem:[#allocation5 + $0x458] ss:$24 sps:$4 sm:$0xff]   ;;  %v99_v48 = vld [vmem:[#allocation2 + $0x80] sm:$0xff] }
  0x63   :  { %1898 = vmatpush2.bf16.msra.mxu0 %v3128_v38  ;;  %v101_v38 = vld [vmem:[#allocation2 + $0x90] sm:$0xff] }
  0x64   :  { %1951 = vmatpush2.bf16.msra.mxu1 %v3129_v39  ;;  %1899 = vmatprep.subr.bf16.mxu0 %v3130_v40  ;;  %v98_v39 = vld [vmem:[#allocation2 + $0x78] sm:$0xff]  ;;  %v104_v40 = vld [vmem:[#allocation2 + $0xa8] sm:$0xff] }
  0x65   :  { %1952 = vmatprep.subr.bf16.mxu1 %v3132_v41  ;;  %v3196_v41 = vld [vmem:[#allocation5 + $0x660] ss:$24 sps:$4 sm:$0xff]  }
  0x67   :  { %1900 = vmatpush2.bf16.msra.mxu0 %v3134_v42  ;;  %v3710_v42 = vpack.c.bf16 %v101_v38, %v95_v36  ;;  %v3265_v36 = vld [vmem:[#allocation5 + $0x758] ss:$24 sps:$4 sm:$0xff]  }
  0x68   :  { %1953 = vmatpush2.bf16.msra.mxu1 %v3135_v43  ;;  %1901 = vmatprep.subr.bf16.mxu0 %v3136_v44  ;;  %v3712_v43 = vpack.c.bf16 %v104_v40, %v98_v39  ;;  %v3199_v44 = vld [vmem:[#allocation5 + $0x68] ss:$24 sps:$4 sm:$0xff]   ;;  %v106_v40 = vld [vmem:[#allocation2 + $0xb8] sm:$0xff] }
  0x69   :  { %1954 = vmatprep.subr.bf16.mxu1 %v3138_v45  ;;  %v3204_v45 = vld [vmem:[#allocation5 + $0x634] ss:$24 sps:$4 sm:$0xff]  }
  0x6a   :  { %v100_v39 = vld [vmem:[#allocation2 + $0x88] sm:$0xff] }
  0x6b   :  { %1902 = vmatpush2.bf16.msra.mxu0 %v3140_v50  ;;  %v3202_v50 = vld [vmem:[#allocation5 + $0x630] ss:$24 sps:$4 sm:$0xff]   ;;  %v3726_v47 = vpack.c.bf16 %v106_v40, %v100_v39  ;;  %v3342_v39 = vld [vmem:[#allocation5 + $0x4ec] ss:$24 sps:$4 sm:$0xff]  }
  0x6c   :  { %1955 = vmatpush2.bf16.msra.mxu1 %v3141_v51  ;;  %1903 = vmatprep.subr.bf16.mxu0 %v3142_v52  ;;  %v3205_v51 = vld [vmem:[#allocation5 + $0x38] ss:$24 sps:$4 sm:$0xff]   ;;  %v3210_v52 = vld [vmem:[#allocation5 + $0x604] ss:$24 sps:$4 sm:$0xff]  }
  0x6d   :  { %1956 = vmatprep.subr.bf16.mxu1 %v3144_v55  ;;  %v3213_v55 = vld [vmem:[#allocation5 + $0xc] ss:$24 sps:$4 sm:$0xff]  }
  0x6e   :  { %v3345_v40 = vld [vmem:[#allocation5 + $0x7ec] ss:$24 sps:$4 sm:$0xff]  }
  0x6f   :  { %1904 = vmatpush2.bf16.msra.mxu0 %v3146_v56  ;;  %v88_v56 = vld [vmem:[#allocation2 + $0x28] sm:$0xff] }
  0x70   :  { %1957 = vmatpush2.bf16.msra.mxu1 %v3147_v57  ;;  %1905 = vmatprep.subr.bf16.mxu0 %v3148_v58  ;;  %v3208_v57 = vld [vmem:[#allocation5 + $0x600] ss:$24 sps:$4 sm:$0xff]  }
  0x71   :  { %1958 = vmatprep.subr.bf16.mxu1 %v3150_v59  ;;  %v3211_v58 = vld [vmem:[#allocation5 + $0x8] ss:$24 sps:$4 sm:$0xff]   ;;  %v94_v59 = vld [vmem:[#allocation2 + $0x58] sm:$0xff] }
  0x73   :  { %1906 = vmatpush2.bf16.msra.mxu0 %v3152_v60  ;;  %v3216_v60 = vld [vmem:[#allocation5 + $0x8d4] ss:$24 sps:$4 sm:$0xff]  }
  0x74   :  { %1959 = vmatpush2.bf16.msra.mxu1 %v3153_v61  ;;  %1907 = vmatprep.subr.bf16.mxu0 %v3154_v62  ;;  %v3721_v61 = vpack.c.bf16 %v94_v59, %v88_v56  ;;  %v3219_v62 = vld [vmem:[#allocation5 + $0x2dc] ss:$24 sps:$4 sm:$0xff]   ;;  %v3274_v56 = vld [vmem:[#allocation5 + $0x3f8] ss:$24 sps:$4 sm:$0xff]   ;;  %v3285_v59 = vld [vmem:[#allocation5 + $0x6cc] ss:$24 sps:$4 sm:$0xff]  }
  0x75   :  { %1960 = vmatprep.subr.bf16.mxu1 %v3156_v63  ;;  %v3214_v63 = vld [vmem:[#allocation5 + $0x8d0] ss:$24 sps:$4 sm:$0xff]  }
  0x77   :  { %1908 = vmatpush2.bf16.msra.mxu0 %v3158_v0  ;;  %v3217_v0 = vld [vmem:[#allocation5 + $0x2d8] ss:$24 sps:$4 sm:$0xff]  }
  0x78   :  { %1961 = vmatpush2.bf16.msra.mxu1 %v3159_v1  ;;  %1909 = vmatprep.subr.bf16.mxu0 %v3160_v2  ;;  %v3222_v1 = vld [vmem:[#allocation5 + $0x8a4] ss:$24 sps:$4 sm:$0xff]  }
  0x79   :  { %1962 = vmatprep.subr.bf16.mxu1 %v3162_v3  ;;  %v3225_v2 = vld [vmem:[#allocation5 + $0x2ac] ss:$24 sps:$4 sm:$0xff]   ;;  %v3220_v3 = vld [vmem:[#allocation5 + $0x8a0] ss:$24 sps:$4 sm:$0xff]  }
  0x7b   :  { %1910 = vmatpush2.bf16.msra.mxu0 %v3164_v4  ;;  %v3223_v4 = vld [vmem:[#allocation5 + $0x2a8] ss:$24 sps:$4 sm:$0xff]  }
  0x7c   :  { %1963 = vmatpush2.bf16.msra.mxu1 %v3165_v5  ;;  %1985 = vmatprep.subr.bf16.mxu0 %v3168_v10  ;;  %v3228_v5 = vld [vmem:[#allocation5 + $0x874] ss:$24 sps:$4 sm:$0xff]  }
  0x7d   :  { %2038 = vmatprep.subr.bf16.mxu1 %v3171_v11  ;;  %v3237_v10 = vld [vmem:[#allocation5 + $0x24c] ss:$24 sps:$4 sm:$0xff]   ;;  %v3232_v11 = vld [vmem:[#allocation5 + $0x840] ss:$24 sps:$4 sm:$0xff]  }
  0x7e   :  { %1912 = vmatmul.mubr.bf16.vlgmr.msra.gmra.mxu0 %v3702_v12 }
  0x7f   :  { %1965 = vmatmul.mubr.bf16.vlgmr.msra.gmra.mxu1 %v3704_v13  ;;  %1986 = vmatpush1.bf16.msra.mxu0 %v3166_v14  ;;  %v3235_v14 = vld [vmem:[#allocation5 + $0x248] ss:$24 sps:$4 sm:$0xff]  }
  0x80   :  { %2039 = vmatpush1.bf16.msra.mxu1 %v3169_v15  ;;  %1987 = vmatprep.subr.bf16.mxu0 %v3174_v16  ;;  %v3240_v15 = vld [vmem:[#allocation5 + $0x814] ss:$24 sps:$4 sm:$0xff]  }
  0x81   :  { %2040 = vmatprep.subr.bf16.mxu1 %v3177_v17  ;;  %1921 = vmatprep.mubr.bf16.mxu0 %v3708_v37  ;;  %v3243_v16 = vld [vmem:[#allocation5 + $0x21c] ss:$24 sps:$4 sm:$0xff]   ;;  %v3238_v17 = vld [vmem:[#allocation5 + $0x810] ss:$24 sps:$4 sm:$0xff]  }
  0x82   :  { %1974 = vmatprep.mubr.bf16.mxu1 %v3712_v43 }
  0x83   :  { %1988 = vmatpush1.bf16.msra.mxu0 %v3172_v18  ;;  %v3241_v18 = vld [vmem:[#allocation5 + $0x218] ss:$24 sps:$4 sm:$0xff]  }
  0x84   :  { %2041 = vmatpush1.bf16.msra.mxu1 %v3175_v19  ;;  %1989 = vmatprep.subr.bf16.mxu0 %v3180_v20  ;;  %v3246_v19 = vld [vmem:[#allocation5 + $0x7e4] ss:$24 sps:$4 sm:$0xff]  }
  0x85   :  { %2042 = vmatprep.subr.bf16.mxu1 %v3183_v21  ;;  %v3249_v20 = vld [vmem:[#allocation5 + $0x1ec] ss:$24 sps:$4 sm:$0xff]   ;;  %v3244_v21 = vld [vmem:[#allocation5 + $0x7e0] ss:$24 sps:$4 sm:$0xff]  }
  0x86   :  { %1922 = vmatmul.mubr.bf16.gmra.mxu0 %v3710_v42 }
  0x87   :  { %1990 = vmatpush1.bf16.msra.mxu0 %v3178_v22  ;;  %1975 = vmatmul.mubr.bf16.gmra.mxu1 %v3717_v49  ;;  %v3247_v22 = vld [vmem:[#allocation5 + $0x1e8] ss:$24 sps:$4 sm:$0xff]  }
  0x88   :  { %2043 = vmatpush1.bf16.msra.mxu1 %v3181_v23  ;;  %1991 = vmatprep.subr.bf16.mxu0 %v3186_v24  ;;  %v3252_v23 = vld [vmem:[#allocation5 + $0x7b4] ss:$24 sps:$4 sm:$0xff]  }
  0x89   :  { %2044 = vmatprep.subr.bf16.mxu1 %v3189_v25  ;;  %2070 = vmatprep.mubr.bf16.mxu1 %v3696_v53  ;;  %v3255_v24 = vld [vmem:[#allocation5 + $0x1bc] ss:$24 sps:$4 sm:$0xff]   ;;  %v3250_v25 = vld [vmem:[#allocation5 + $0x7b0] ss:$24 sps:$4 sm:$0xff]  }
  0x8a   :  { %2017 = vmatprep.mubr.bf16.mxu0 %v3721_v61 }
  0x8b   :  { %1992 = vmatpush1.bf16.msra.mxu0 %v3184_v26  ;;  %v3253_v26 = vld [vmem:[#allocation5 + $0x1b8] ss:$24 sps:$4 sm:$0xff]  }
  0x8c   :  { %2045 = vmatpush1.bf16.msra.mxu1 %v3187_v27  ;;  %1993 = vmatprep.subr.bf16.mxu0 %v3192_v28  ;;  %v3258_v27 = vld [vmem:[#allocation5 + $0x784] ss:$24 sps:$4 sm:$0xff]  }
  0x8d   :  { %2046 = vmatprep.subr.bf16.mxu1 %v3195_v29  ;;  %v3261_v28 = vld [vmem:[#allocation5 + $0x18c] ss:$24 sps:$4 sm:$0xff]   ;;  %v3256_v29 = vld [vmem:[#allocation5 + $0x780] ss:$24 sps:$4 sm:$0xff]  }
  0x8f   :  { %1994 = vmatpush1.bf16.msra.mxu0 %v3190_v30  ;;  %v3259_v30 = vld [vmem:[#allocation5 + $0x188] ss:$24 sps:$4 sm:$0xff]  }
  0x90   :  { %2047 = vmatpush1.bf16.msra.mxu1 %v3193_v31  ;;  %1995 = vmatprep.subr.bf16.mxu0 %v3198_v32  ;;  %v87_v31 = vld [vmem:[#allocation2 + $0x20] sm:$0xff]  ;;  %v93_v32 = vld [vmem:[#allocation2 + $0x50] sm:$0xff] }
  0x91   :  { %2048 = vmatprep.subr.bf16.mxu1 %v3201_v33  ;;  %v3264_v33 = vld [vmem:[#allocation5 + $0x45c] ss:$24 sps:$4 sm:$0xff]   ;;  %v3724_v38 = vpack.c.bf16 %v93_v32, %v87_v31  ;;  %v3328_v31 = vld [vmem:[#allocation5 + $0x548] ss:$24 sps:$4 sm:$0xff]  }
  0x92   :  { %v3331_v32 = vld [vmem:[#allocation5 + $0x848] ss:$24 sps:$4 sm:$0xff]  }
  0x93   :  { %1996 = vmatpush1.bf16.msra.mxu0 %v3196_v41  ;;  %v3270_v41 = vld [vmem:[#allocation5 + $0x42c] ss:$24 sps:$4 sm:$0xff]  }
  0x94   :  { %2049 = vmatpush1.bf16.msra.mxu1 %v3199_v44  ;;  %1997 = vmatprep.subr.bf16.mxu0 %v3204_v45  ;;  %v3273_v44 = vld [vmem:[#allocation5 + $0x72c] ss:$24 sps:$4 sm:$0xff]   ;;  %v3268_v45 = vld [vmem:[#allocation5 + $0x428] ss:$24 sps:$4 sm:$0xff]  }
  0x95   :  { %2050 = vmatprep.subr.bf16.mxu1 %v3207_v46  ;;  %v3271_v46 = vld [vmem:[#allocation5 + $0x728] ss:$24 sps:$4 sm:$0xff]  }
  0x97   :  { %1998 = vmatpush1.bf16.msra.mxu0 %v3202_v50  ;;  %v105_v50 = vld [vmem:[#allocation2 + $0xb0] sm:$0xff] }
  0x98   :  { %2051 = vmatpush1.bf16.msra.mxu1 %v3205_v51  ;;  %1999 = vmatprep.subr.bf16.mxu0 %v3210_v52  ;;  %v3276_v51 = vld [vmem:[#allocation5 + $0x3fc] ss:$24 sps:$4 sm:$0xff]  }
  0x99   :  { %2052 = vmatprep.subr.bf16.mxu1 %v3213_v55  ;;  %v3279_v52 = vld [vmem:[#allocation5 + $0x6fc] ss:$24 sps:$4 sm:$0xff]   ;;  %v3732_v55 = vpack.c.bf16 %v105_v50, %v99_v48  ;;  %v3346_v48 = vld [vmem:[#allocation5 + $0x4b8] ss:$24 sps:$4 sm:$0xff]  }
  0x9a   :  { %v3349_v50 = vld [vmem:[#allocation5 + $0x7b8] ss:$24 sps:$4 sm:$0xff]  }
  0x9b   :  { %2000 = vmatpush1.bf16.msra.mxu0 %v3208_v57  ;;  %v3277_v57 = vld [vmem:[#allocation5 + $0x6f8] ss:$24 sps:$4 sm:$0xff]  }
  0x9c   :  { %2053 = vmatpush1.bf16.msra.mxu1 %v3211_v58  ;;  %2001 = vmatprep.subr.bf16.mxu0 %v3216_v60  ;;  %v3282_v58 = vld [vmem:[#allocation5 + $0x3cc] ss:$24 sps:$4 sm:$0xff]   ;;  %v3280_v60 = vld [vmem:[#allocation5 + $0x3c8] ss:$24 sps:$4 sm:$0xff]  }
  0x9d   :  { %2054 = vmatprep.subr.bf16.mxu1 %v3219_v62  ;;  %v3283_v62 = vld [vmem:[#allocation5 + $0x6c8] ss:$24 sps:$4 sm:$0xff]  }
  0x9f   :  { %2002 = vmatpush2.bf16.msra.mxu0 %v3214_v63  ;;  %v3288_v63 = vld [vmem:[#allocation5 + $0x39c] ss:$24 sps:$4 sm:$0xff]  }
  0xa0   :  { %2055 = vmatpush2.bf16.msra.mxu1 %v3217_v0  ;;  %2003 = vmatprep.subr.bf16.mxu0 %v3222_v1  ;;  %v3291_v0 = vld [vmem:[#allocation5 + $0x69c] ss:$24 sps:$4 sm:$0xff]   ;;  %v3286_v1 = vld [vmem:[#allocation5 + $0x398] ss:$24 sps:$4 sm:$0xff]  }
  0xa1   :  { %2056 = vmatprep.subr.bf16.mxu1 %v3225_v2  ;;  %v3289_v2 = vld [vmem:[#allocation5 + $0x698] ss:$24 sps:$4 sm:$0xff]  }
  0xa3   :  { %2004 = vmatpush2.bf16.msra.mxu0 %v3220_v3  ;;  %v3294_v3 = vld [vmem:[#allocation5 + $0x36c] ss:$24 sps:$4 sm:$0xff]  }
  0xa4   :  { %2057 = vmatpush2.bf16.msra.mxu1 %v3223_v4  ;;  %2005 = vmatprep.subr.bf16.mxu0 %v3228_v5  ;;  %v3297_v4 = vld [vmem:[#allocation5 + $0x66c] ss:$24 sps:$4 sm:$0xff]   ;;  %v3292_v5 = vld [vmem:[#allocation5 + $0x368] ss:$24 sps:$4 sm:$0xff]  }
  0xa5   :  { %2058 = vmatprep.subr.bf16.mxu1 %v3231_v6  ;;  %v3295_v6 = vld [vmem:[#allocation5 + $0x668] ss:$24 sps:$4 sm:$0xff]  }
  0xa7   :  { %2006 = vmatpush2.bf16.msra.mxu0 %v3226_v7  ;;  %v3300_v7 = vld [vmem:[#allocation5 + $0x33c] ss:$24 sps:$4 sm:$0xff]  }
  0xa8   :  { %2059 = vmatpush2.bf16.msra.mxu1 %v3229_v8  ;;  %2007 = vmatprep.subr.bf16.mxu0 %v3234_v9  ;;  %v3303_v8 = vld [vmem:[#allocation5 + $0x63c] ss:$24 sps:$4 sm:$0xff]   ;;  %v3298_v9 = vld [vmem:[#allocation5 + $0x338] ss:$24 sps:$4 sm:$0xff]  }
  0xa9   :  { %2060 = vmatprep.subr.bf16.mxu1 %v3237_v10  ;;  %v3301_v10 = vld [vmem:[#allocation5 + $0x638] ss:$24 sps:$4 sm:$0xff]  }
  0xab   :  { %2008 = vmatpush2.bf16.msra.mxu0 %v3232_v11  ;;  %v3306_v11 = vld [vmem:[#allocation5 + $0x30c] ss:$24 sps:$4 sm:$0xff]  }
  0xac   :  { %2061 = vmatpush2.bf16.msra.mxu1 %v3235_v14  ;;  %2009 = vmatprep.subr.bf16.mxu0 %v3240_v15  ;;  %v3309_v14 = vld [vmem:[#allocation5 + $0x60c] ss:$24 sps:$4 sm:$0xff]   ;;  %v3304_v15 = vld [vmem:[#allocation5 + $0x308] ss:$24 sps:$4 sm:$0xff]  }
  0xad   :  { %2062 = vmatprep.subr.bf16.mxu1 %v3243_v16  ;;  %v3307_v16 = vld [vmem:[#allocation5 + $0x608] ss:$24 sps:$4 sm:$0xff]  }
  0xaf   :  { %2010 = vmatpush2.bf16.msra.mxu0 %v3238_v17  ;;  %v3312_v17 = vld [vmem:[#allocation5 + $0x5dc] ss:$24 sps:$4 sm:$0xff]  }
  0xb0   :  { %2063 = vmatpush2.bf16.msra.mxu1 %v3241_v18  ;;  %2011 = vmatprep.subr.bf16.mxu0 %v3246_v19  ;;  %v3315_v18 = vld [vmem:[#allocation5 + $0x8dc] ss:$24 sps:$4 sm:$0xff]   ;;  %v3310_v19 = vld [vmem:[#allocation5 + $0x5d8] ss:$24 sps:$4 sm:$0xff]  }
  0xb1   :  { %2064 = vmatprep.subr.bf16.mxu1 %v3249_v20  ;;  %v3313_v20 = vld [vmem:[#allocation5 + $0x8d8] ss:$24 sps:$4 sm:$0xff]  }
  0xb3   :  { %2012 = vmatpush2.bf16.msra.mxu0 %v3244_v21  ;;  %v3318_v21 = vld [vmem:[#allocation5 + $0x5ac] ss:$24 sps:$4 sm:$0xff]  }
  0xb4   :  { %2065 = vmatpush2.bf16.msra.mxu1 %v3247_v22  ;;  %2013 = vmatprep.subr.bf16.mxu0 %v3252_v23  ;;  %v3321_v22 = vld [vmem:[#allocation5 + $0x8ac] ss:$24 sps:$4 sm:$0xff]   ;;  %v3316_v23 = vld [vmem:[#allocation5 + $0x5a8] ss:$24 sps:$4 sm:$0xff]  }
  0xb5   :  { %2066 = vmatprep.subr.bf16.mxu1 %v3255_v24  ;;  %v3319_v24 = vld [vmem:[#allocation5 + $0x8a8] ss:$24 sps:$4 sm:$0xff]  }
  0xb7   :  { %2014 = vmatpush2.bf16.msra.mxu0 %v3250_v25  ;;  %v3324_v25 = vld [vmem:[#allocation5 + $0x57c] ss:$24 sps:$4 sm:$0xff]  }
  0xb8   :  { %2067 = vmatpush2.bf16.msra.mxu1 %v3253_v26  ;;  %2015 = vmatprep.subr.bf16.mxu0 %v3258_v27  ;;  %v3327_v26 = vld [vmem:[#allocation5 + $0x87c] ss:$24 sps:$4 sm:$0xff]   ;;  %v3322_v27 = vld [vmem:[#allocation5 + $0x578] ss:$24 sps:$4 sm:$0xff]  }
  0xb9   :  { %2068 = vmatprep.subr.bf16.mxu1 %v3261_v28  ;;  %v3325_v28 = vld [vmem:[#allocation5 + $0x878] ss:$24 sps:$4 sm:$0xff]  }
  0xbb   :  { %2016 = vmatpush2.bf16.msra.mxu0 %v3256_v29  ;;  %v3330_v29 = vld [vmem:[#allocation5 + $0x54c] ss:$24 sps:$4 sm:$0xff]  }
  0xbc   :  { %2069 = vmatpush2.bf16.msra.mxu1 %v3259_v30  ;;  %2091 = vmatprep.subr.bf16.mxu0 %v3264_v33  ;;  %v3333_v30 = vld [vmem:[#allocation5 + $0x84c] ss:$24 sps:$4 sm:$0xff]   ;;  %v3336_v33 = vld [vmem:[#allocation5 + $0x51c] ss:$24 sps:$4 sm:$0xff]  }
  0xbd   :  { %2144 = vmatprep.subr.bf16.mxu1 %v3267_v34  ;;  %v3339_v34 = vld [vmem:[#allocation5 + $0x81c] ss:$24 sps:$4 sm:$0xff]  }
  0xbe   :  { %2018 = vmatmul.mubr.bf16.vlgmr.msra.gmra.mxu0 %v3724_v38 }
  0xbf   :  { %2071 = vmatmul.mubr.bf16.vlgmr.msra.gmra.mxu1 %v3702_v12  ;;  %2092 = vmatpush1.bf16.msra.mxu0 %v3262_v35  ;;  %v3334_v35 = vld [vmem:[#allocation5 + $0x518] ss:$24 sps:$4 sm:$0xff]  }
  0xc0   :  { %2145 = vmatpush1.bf16.msra.mxu1 %v3265_v36  ;;  %2093 = vmatprep.subr.bf16.mxu0 %v3270_v41  ;;  %v3337_v36 = vld [vmem:[#allocation5 + $0x818] ss:$24 sps:$4 sm:$0xff]   ;;  %v3340_v41 = vld [vmem:[#allocation5 + $0x4e8] ss:$24 sps:$4 sm:$0xff]  }
  0xc1   :  { %2146 = vmatprep.subr.bf16.mxu1 %v3273_v44  ;;  %2027 = vmatprep.mubr.bf16.mxu0 %v3726_v47  ;;  %v3343_v44 = vld [vmem:[#allocation5 + $0x7e8] ss:$24 sps:$4 sm:$0xff]  }
  0xc2   :  { %2080 = vmatprep.mubr.bf16.mxu1 %v3708_v37 }
  0xc3   :  { %2094 = vmatpush1.bf16.msra.mxu0 %v3268_v45  ;;  %v3348_v45 = vld [vmem:[#allocation5 + $0x4bc] ss:$24 sps:$4 sm:$0xff]  }
  0xc4   :  { %2147 = vmatpush1.bf16.msra.mxu1 %v3271_v46  ;;  %2095 = vmatprep.subr.bf16.mxu0 %v3276_v51  ;;  %v3351_v46 = vld [vmem:[#allocation5 + $0x7bc] ss:$24 sps:$4 sm:$0xff]   ;;  %v3354_v51 = vld [vmem:[#allocation5 + $0x48c] ss:$24 sps:$4 sm:$0xff]  }
  0xc5   :  { %2148 = vmatprep.subr.bf16.mxu1 %v3279_v52  ;;  %v3357_v52 = vld [vmem:[#allocation5 + $0x78c] ss:$24 sps:$4 sm:$0xff]  }
  0xc6   :  { %2028 = vmatmul.mubr.bf16.gmra.mxu0 %v3732_v55 }
  0xc7   :  { %2081 = vmatmul.mubr.bf16.gmra.mxu1 %v3710_v42  ;;  %2096 = vmatpush1.bf16.msra.mxu0 %v3274_v56  ;;  %v3352_v56 = vld [vmem:[#allocation5 + $0x488] ss:$24 sps:$4 sm:$0xff]  }
  0xc8   :  { %2149 = vmatpush1.bf16.msra.mxu1 %v3277_v57  ;;  %2097 = vmatprep.subr.bf16.mxu0 %v3282_v58  ;;  %v3355_v57 = vld [vmem:[#allocation5 + $0x788] ss:$24 sps:$4 sm:$0xff]   ;;  %v3360_v58 = vld [vmem:[#allocation5 + $0x164] ss:$24 sps:$4 sm:$0xff]  }
  0xc9   :  { %2150 = vmatprep.subr.bf16.mxu1 %v3285_v59  ;;  %2123 = vmatprep.mubr.bf16.mxu0 %v3698_v54  ;;  %v3363_v59 = vld [vmem:[#allocation5 + $0x464] ss:$24 sps:$4 sm:$0xff]  }
  0xca   :  { %2176 = vmatprep.mubr.bf16.mxu1 %v3721_v61 }
  0xcb   :  { %2098 = vmatpush1.bf16.msra.mxu0 %v3280_v60  ;;  %v3358_v60 = vld [vmem:[#allocation5 + $0x160] ss:$24 sps:$4 sm:$0xff]  }
  0xcc   :  { %2151 = vmatpush1.bf16.msra.mxu1 %v3283_v62  ;;  %2099 = vmatprep.subr.bf16.mxu0 %v3288_v63  ;;  %v3361_v62 = vld [vmem:[#allocation5 + $0x460] ss:$24 sps:$4 sm:$0xff]   ;;  %v3366_v63 = vld [vmem:[#allocation5 + $0x134] ss:$24 sps:$4 sm:$0xff]  }
  0xcd   :  { %2152 = vmatprep.subr.bf16.mxu1 %v3291_v0  ;;  %v3369_v0 = vld [vmem:[#allocation5 + $0x434] ss:$24 sps:$4 sm:$0xff]  }
  0xcf   :  { %2100 = vmatpush1.bf16.msra.mxu0 %v3286_v1  ;;  %v3364_v1 = vld [vmem:[#allocation5 + $0x130] ss:$24 sps:$4 sm:$0xff]  }
  0xd0   :  { %2153 = vmatpush1.bf16.msra.mxu1 %v3289_v2  ;;  %2101 = vmatprep.subr.bf16.mxu0 %v3294_v3  ;;  %v3367_v2 = vld [vmem:[#allocation5 + $0x430] ss:$24 sps:$4 sm:$0xff]   ;;  %v3372_v3 = vld [vmem:[#allocation5 + $0x104] ss:$24 sps:$4 sm:$0xff]  }
  0xd1   :  { %2154 = vmatprep.subr.bf16.mxu1 %v3297_v4  ;;  %v3375_v4 = vld [vmem:[#allocation5 + $0x404] ss:$24 sps:$4 sm:$0xff]  }
  0xd3   :  { %2102 = vmatpush1.bf16.msra.mxu0 %v3292_v5  ;;  %v3370_v5 = vld [vmem:[#allocation5 + $0x100] ss:$24 sps:$4 sm:$0xff]  }
  0xd4   :  { %2155 = vmatpush1.bf16.msra.mxu1 %v3295_v6  ;;  %2103 = vmatprep.subr.bf16.mxu0 %v3300_v7  ;;  %v3373_v6 = vld [vmem:[#allocation5 + $0x400] ss:$24 sps:$4 sm:$0xff]   ;;  %v3378_v7 = vld [vmem:[#allocation5 + $0xd4] ss:$24 sps:$4 sm:$0xff]  }
  0xd5   :  { %2156 = vmatprep.subr.bf16.mxu1 %v3303_v8  ;;  %v3381_v8 = vld [vmem:[#allocation5 + $0x3d4] ss:$24 sps:$4 sm:$0xff]  }
  0xd7   :  { %2104 = vmatpush1.bf16.msra.mxu0 %v3298_v9  ;;  %v3376_v9 = vld [vmem:[#allocation5 + $0xd0] ss:$24 sps:$4 sm:$0xff]  }
  0xd8   :  { %2157 = vmatpush1.bf16.msra.mxu1 %v3301_v10  ;;  %2105 = vmatprep.subr.bf16.mxu0 %v3306_v11  ;;  %v3379_v10 = vld [vmem:[#allocation5 + $0x3d0] ss:$24 sps:$4 sm:$0xff]   ;;  %v3384_v11 = vld [vmem:[#allocation5 + $0xa4] ss:$24 sps:$4 sm:$0xff]  }
  0xd9   :  { %2158 = vmatprep.subr.bf16.mxu1 %v3309_v14  ;;  %v3387_v14 = vld [vmem:[#allocation5 + $0x3a4] ss:$24 sps:$4 sm:$0xff]  }
  0xdb   :  { %2106 = vmatpush1.bf16.msra.mxu0 %v3304_v15  ;;  %v3382_v15 = vld [vmem:[#allocation5 + $0xa0] ss:$24 sps:$4 sm:$0xff]  }
  0xdc   :  { %2159 = vmatpush1.bf16.msra.mxu1 %v3307_v16  ;;  %2107 = vmatprep.subr.bf16.mxu0 %v3312_v17  ;;  %v3385_v16 = vld [vmem:[#allocation5 + $0x3a0] ss:$24 sps:$4 sm:$0xff]   ;;  %v3390_v17 = vld [vmem:[#allocation5 + $0x74] ss:$24 sps:$4 sm:$0xff]  }
  0xdd   :  { %2160 = vmatprep.subr.bf16.mxu1 %v3315_v18  ;;  %v3393_v18 = vld [vmem:[#allocation5 + $0x374] ss:$24 sps:$4 sm:$0xff]  }
  0xdf   :  { %2108 = vmatpush2.bf16.msra.mxu0 %v3310_v19  ;;  %v3388_v19 = vld [vmem:[#allocation5 + $0x70] ss:$24 sps:$4 sm:$0xff]  }
  0xe0   :  { %2161 = vmatpush2.bf16.msra.mxu1 %v3313_v20  ;;  %2109 = vmatprep.subr.bf16.mxu0 %v3318_v21  ;;  %v3391_v20 = vld [vmem:[#allocation5 + $0x370] ss:$24 sps:$4 sm:$0xff]   ;;  %v3396_v21 = vld [vmem:[#allocation5 + $0x44] ss:$24 sps:$4 sm:$0xff]  }
  0xe1   :  { %2162 = vmatprep.subr.bf16.mxu1 %v3321_v22  ;;  %v3399_v22 = vld [vmem:[#allocation5 + $0x344] ss:$24 sps:$4 sm:$0xff]  }
  0xe3   :  { %2110 = vmatpush2.bf16.msra.mxu0 %v3316_v23  ;;  %v3402_v23 = vld [vmem:[#allocation5 + $0x14] ss:$24 sps:$4 sm:$0xff]  }
  0xe4   :  { %2163 = vmatpush2.bf16.msra.mxu1 %v3319_v24  ;;  %2111 = vmatprep.subr.bf16.mxu0 %v3324_v25  ;;  %v3405_v24 = vld [vmem:[#allocation5 + $0x314] ss:$24 sps:$4 sm:$0xff]   ;;  %v3400_v25 = vld [vmem:[#allocation5 + $0x10] ss:$24 sps:$4 sm:$0xff]  }
  0xe5   :  { %2164 = vmatprep.subr.bf16.mxu1 %v3327_v26  ;;  %v3403_v26 = vld [vmem:[#allocation5 + $0x310] ss:$24 sps:$4 sm:$0xff]  }
  0xe7   :  { %2112 = vmatpush2.bf16.msra.mxu0 %v3322_v27  ;;  %v3408_v27 = vld [vmem:[#allocation5 + $0x2e4] ss:$24 sps:$4 sm:$0xff]  }
  0xe8   :  { %2165 = vmatpush2.bf16.msra.mxu1 %v3325_v28  ;;  %2113 = vmatprep.subr.bf16.mxu0 %v3330_v29  ;;  %v3411_v28 = vld [vmem:[#allocation5 + $0x5e4] ss:$24 sps:$4 sm:$0xff]   ;;  %v3406_v29 = vld [vmem:[#allocation5 + $0x2e0] ss:$24 sps:$4 sm:$0xff]  }
  0xe9   :  { %2166 = vmatprep.subr.bf16.mxu1 %v3333_v30  ;;  %v3409_v30 = vld [vmem:[#allocation5 + $0x5e0] ss:$24 sps:$4 sm:$0xff]  }
  0xeb   :  { %2114 = vmatpush2.bf16.msra.mxu0 %v3328_v31  ;;  %v3414_v31 = vld [vmem:[#allocation5 + $0x2b4] ss:$24 sps:$4 sm:$0xff]  }
  0xec   :  { %2167 = vmatpush2.bf16.msra.mxu1 %v3331_v32  ;;  %2115 = vmatprep.subr.bf16.mxu0 %v3336_v33  ;;  %v3417_v32 = vld [vmem:[#allocation5 + $0x5b4] ss:$24 sps:$4 sm:$0xff]   ;;  %v3412_v33 = vld [vmem:[#allocation5 + $0x2b0] ss:$24 sps:$4 sm:$0xff]  }
  0xed   :  { %2168 = vmatprep.subr.bf16.mxu1 %v3339_v34  ;;  %v3415_v34 = vld [vmem:[#allocation5 + $0x5b0] ss:$24 sps:$4 sm:$0xff]  }
  0xef   :  { %2116 = vmatpush2.bf16.msra.mxu0 %v3334_v35  ;;  %v3420_v35 = vld [vmem:[#allocation5 + $0x284] ss:$24 sps:$4 sm:$0xff]  }
  0xf0   :  { %2169 = vmatpush2.bf16.msra.mxu1 %v3337_v36  ;;  %2117 = vmatprep.subr.bf16.mxu0 %v3342_v39  ;;  %v3423_v36 = vld [vmem:[#allocation5 + $0x584] ss:$24 sps:$4 sm:$0xff]   ;;  %v3418_v39 = vld [vmem:[#allocation5 + $0x280] ss:$24 sps:$4 sm:$0xff]  }
  0xf1   :  { %2170 = vmatprep.subr.bf16.mxu1 %v3345_v40  ;;  %v3421_v40 = vld [vmem:[#allocation5 + $0x580] ss:$24 sps:$4 sm:$0xff]  }
  0xf3   :  { %2118 = vmatpush2.bf16.msra.mxu0 %v3340_v41  ;;  %v3426_v41 = vld [vmem:[#allocation5 + $0x254] ss:$24 sps:$4 sm:$0xff]  }
  0xf4   :  { %2171 = vmatpush2.bf16.msra.mxu1 %v3343_v44  ;;  %2119 = vmatprep.subr.bf16.mxu0 %v3348_v45  ;;  %v3429_v44 = vld [vmem:[#allocation5 + $0x554] ss:$24 sps:$4 sm:$0xff]   ;;  %v3424_v45 = vld [vmem:[#allocation5 + $0x250] ss:$24 sps:$4 sm:$0xff]  }
  0xf5   :  { %2172 = vmatprep.subr.bf16.mxu1 %v3351_v46  ;;  %v3427_v46 = vld [vmem:[#allocation5 + $0x550] ss:$24 sps:$4 sm:$0xff]  }
  0xf7   :  { %2120 = vmatpush2.bf16.msra.mxu0 %v3346_v48  ;;  %v3432_v48 = vld [vmem:[#allocation5 + $0x224] ss:$24 sps:$4 sm:$0xff]  }
  0xf8   :  { %2173 = vmatpush2.bf16.msra.mxu1 %v3349_v50  ;;  %2121 = vmatprep.subr.bf16.mxu0 %v3354_v51  ;;  %v3435_v50 = vld [vmem:[#allocation5 + $0x524] ss:$24 sps:$4 sm:$0xff]   ;;  %v3430_v51 = vld [vmem:[#allocation5 + $0x220] ss:$24 sps:$4 sm:$0xff]  }
  0xf9   :  { %2174 = vmatprep.subr.bf16.mxu1 %v3357_v52  ;;  %v3433_v52 = vld [vmem:[#allocation5 + $0x520] ss:$24 sps:$4 sm:$0xff]  }
  0xfb   :  { %2122 = vmatpush2.bf16.msra.mxu0 %v3352_v56  ;;  %v3438_v56 = vld [vmem:[#allocation5 + $0x1f4] ss:$24 sps:$4 sm:$0xff]  }
  0xfc   :  { %2175 = vmatpush2.bf16.msra.mxu1 %v3355_v57  ;;  %2197 = vmatprep.subr.bf16.mxu0 %v3360_v58  ;;  %v3441_v57 = vld [vmem:[#allocation5 + $0x4f4] ss:$24 sps:$4 sm:$0xff]   ;;  %v3436_v58 = vld [vmem:[#allocation5 + $0x1f0] ss:$24 sps:$4 sm:$0xff]  }
  0xfd   :  { %2250 = vmatprep.subr.bf16.mxu1 %v3363_v59  ;;  %v3439_v59 = vld [vmem:[#allocation5 + $0x4f0] ss:$24 sps:$4 sm:$0xff]  }
  0xfe   :  { %2124 = vmatmul.mubr.bf16.vlgmr.msra.gmra.mxu0 %v3704_v13 }
  0xff   :  { %2177 = vmatmul.mubr.bf16.vlgmr.msra.gmra.mxu1 %v3724_v38  ;;  %2198 = vmatpush1.bf16.msra.mxu0 %v3358_v60  ;;  %v3444_v60 = vld [vmem:[#allocation5 + $0x1c4] ss:$24 sps:$4 sm:$0xff]  }
 0x100   :  { %2251 = vmatpush1.bf16.msra.mxu1 %v3361_v62  ;;  %2199 = vmatprep.subr.bf16.mxu0 %v3366_v63  ;;  %v3447_v62 = vld [vmem:[#allocation5 + $0x4c4] ss:$24 sps:$4 sm:$0xff]   ;;  %v3442_v63 = vld [vmem:[#allocation5 + $0x1c0] ss:$24 sps:$4 sm:$0xff]  }
 0x101   :  { %2252 = vmatprep.subr.bf16.mxu1 %v3369_v0  ;;  %2133 = vmatprep.mubr.bf16.mxu0 %v3712_v43  ;;  %v3445_v0 = vld [vmem:[#allocation5 + $0x4c0] ss:$24 sps:$4 sm:$0xff]  }
 0x102   :  { %2186 = vmatprep.mubr.bf16.mxu1 %v3726_v47 }
 0x103   :  { %2200 = vmatpush1.bf16.msra.mxu0 %v3364_v1  ;;  %v3450_v1 = vld [vmem:[#allocation5 + $0x194] ss:$24 sps:$4 sm:$0xff]  }
 0x104   :  { %2253 = vmatpush1.bf16.msra.mxu1 %v3367_v2  ;;  %2201 = vmatprep.subr.bf16.mxu0 %v3372_v3  ;;  %v3453_v2 = vld [vmem:[#allocation5 + $0x494] ss:$24 sps:$4 sm:$0xff]   ;;  %v3448_v3 = vld [vmem:[#allocation5 + $0x190] ss:$24 sps:$4 sm:$0xff]  }
 0x105   :  { %2254 = vmatprep.subr.bf16.mxu1 %v3375_v4  ;;  %v3451_v4 = vld [vmem:[#allocation5 + $0x490] ss:$24 sps:$4 sm:$0xff]  }
 0x106   :  { %2134 = vmatmul.mubr.bf16.gmra.mxu0 %v3717_v49 }
 0x107   :  { %2187 = vmatmul.mubr.bf16.gmra.mxu1 %v3732_v55  ;;  %2202 = vmatpush1.bf16.msra.mxu0 %v3370_v5  ;;  %v3456_v5 = vld [vmem:[#allocation5 + $0x764] ss:$24 sps:$4 sm:$0xff]  }
 0x108   :  { %2255 = vmatpush1.bf16.msra.mxu1 %v3373_v6  ;;  %2203 = vmatprep.subr.bf16.mxu0 %v3378_v7  ;;  %v3454_v6 = vld [vmem:[#allocation5 + $0x760] ss:$24 sps:$4 sm:$0xff]   ;;  %v3459_v7 = vld [vmem:[#allocation5 + $0x734] ss:$24 sps:$4 sm:$0xff]  }
 0x109   :  { %2256 = vmatprep.subr.bf16.mxu1 %v3381_v8  ;;  %2229 = vmatprep.mubr.bf16.mxu0 %v3696_v53  ;;  %v3394_v53 = vld [vmem:[#allocation5 + $0x40] ss:$24 sps:$4 sm:$0xff]   ;;  %v3457_v8 = vld [vmem:[#allocation5 + $0x730] ss:$24 sps:$4 sm:$0xff]  }
 0x10a   :  { %2282 = vmatprep.mubr.bf16.mxu1 %v3698_v54  ;;  %v3397_v54 = vld [vmem:[#allocation5 + $0x340] ss:$24 sps:$4 sm:$0xff]  }
 0x10b   :  { %2204 = vmatpush1.bf16.msra.mxu0 %v3376_v9  ;;  %v3462_v9 = vld [vmem:[#allocation5 + $0x704] ss:$24 sps:$4 sm:$0xff]  }
 0x10c   :  { %2257 = vmatpush1.bf16.msra.mxu1 %v3379_v10  ;;  %2205 = vmatprep.subr.bf16.mxu0 %v3384_v11  ;;  %v3460_v10 = vld [vmem:[#allocation5 + $0x700] ss:$24 sps:$4 sm:$0xff]   ;;  %v3465_v11 = vld [vmem:[#allocation5 + $0x6d4] ss:$24 sps:$4 sm:$0xff]  }
 0x10d   :  { %2258 = vmatprep.subr.bf16.mxu1 %v3387_v14  ;;  %v3472_v14 = vld [vmem:[#allocation5 + $0x640] ss:$24 sps:$4 sm:$0xff]  }
 0x10f   :  { %2206 = vmatpush1.bf16.msra.mxu0 %v3382_v15  ;;  %v3480_v15 = vld [vmem:[#allocation5 + $0x8e4] ss:$24 sps:$4 sm:$0xff]  }
 0x110   :  { %2259 = vmatpush1.bf16.msra.mxu1 %v3385_v16  ;;  %2207 = vmatprep.subr.bf16.mxu0 %v3390_v17  ;;  %v3478_v16 = vld [vmem:[#allocation5 + $0x8e0] ss:$24 sps:$4 sm:$0xff]   ;;  %v3483_v17 = vld [vmem:[#allocation5 + $0x8b4] ss:$24 sps:$4 sm:$0xff]  }
 0x111   :  { %2260 = vmatprep.subr.bf16.mxu1 %v3393_v18  ;;  %v3481_v18 = vld [vmem:[#allocation5 + $0x8b0] ss:$24 sps:$4 sm:$0xff]  }
 0x113   :  { %2208 = vmatpush1.bf16.msra.mxu0 %v3388_v19  ;;  %v3486_v19 = vld [vmem:[#allocation5 + $0x884] ss:$24 sps:$4 sm:$0xff]  }
 0x114   :  { %2261 = vmatpush1.bf16.msra.mxu1 %v3391_v20  ;;  %2209 = vmatprep.subr.bf16.mxu0 %v3396_v21  ;;  %v3484_v20 = vld [vmem:[#allocation5 + $0x880] ss:$24 sps:$4 sm:$0xff]   ;;  %v3489_v21 = vld [vmem:[#allocation5 + $0x854] ss:$24 sps:$4 sm:$0xff]  }
 0x115   :  { %2262 = vmatprep.subr.bf16.mxu1 %v3399_v22  ;;  %v3487_v22 = vld [vmem:[#allocation5 + $0x850] ss:$24 sps:$4 sm:$0xff]  }
 0x117   :  { %2210 = vmatpush1.bf16.msra.mxu0 %v3394_v53  ;;  %v3492_v53 = vld [vmem:[#allocation5 + $0x824] ss:$24 sps:$4 sm:$0xff]  }
 0x118   :  { %2263 = vmatpush1.bf16.msra.mxu1 %v3397_v54  ;;  %2211 = vmatprep.subr.bf16.mxu0 %v3402_v23  ;;  %v3490_v54 = vld [vmem:[#allocation5 + $0x820] ss:$24 sps:$4 sm:$0xff]   ;;  %v3495_v23 = vld [vmem:[#allocation5 + $0x7f4] ss:$24 sps:$4 sm:$0xff]  }
 0x119   :  { %2264 = vmatprep.subr.bf16.mxu1 %v3405_v24  ;;  %v3493_v24 = vld [vmem:[#allocation5 + $0x7f0] ss:$24 sps:$4 sm:$0xff]  }
 0x11b   :  { %2212 = vmatpush1.bf16.msra.mxu0 %v3400_v25  ;;  %v3498_v25 = vld [vmem:[#allocation5 + $0x7c4] ss:$24 sps:$4 sm:$0xff]  }
 0x11c   :  { %2265 = vmatpush1.bf16.msra.mxu1 %v3403_v26  ;;  %2213 = vmatprep.subr.bf16.mxu0 %v3408_v27  ;;  %v3496_v26 = vld [vmem:[#allocation5 + $0x7c0] ss:$24 sps:$4 sm:$0xff]   ;;  %v3501_v27 = vld [vmem:[#allocation5 + $0x794] ss:$24 sps:$4 sm:$0xff]  }
 0x11d   :  { %2266 = vmatprep.subr.bf16.mxu1 %v3411_v28  ;;  %v3499_v28 = vld [vmem:[#allocation5 + $0x790] ss:$24 sps:$4 sm:$0xff]  }
 0x11f   :  { %2214 = vmatpush2.bf16.msra.mxu0 %v3406_v29 }
 0x120   :  { %2267 = vmatpush2.bf16.msra.mxu1 %v3409_v30  ;;  %2215 = vmatprep.subr.bf16.mxu0 %v3414_v31 }
 0x121   :  { %2268 = vmatprep.subr.bf16.mxu1 %v3417_v32 }
 0x123   :  { %2216 = vmatpush2.bf16.msra.mxu0 %v3412_v33 }
 0x124   :  { %2269 = vmatpush2.bf16.msra.mxu1 %v3415_v34  ;;  %2217 = vmatprep.subr.bf16.mxu0 %v3420_v35 }
 0x125   :  { %2270 = vmatprep.subr.bf16.mxu1 %v3423_v36 }
 0x127   :  { %2218 = vmatpush2.bf16.msra.mxu0 %v3418_v39 }
 0x128   :  { %2271 = vmatpush2.bf16.msra.mxu1 %v3421_v40  ;;  %2219 = vmatprep.subr.bf16.mxu0 %v3426_v41 }
 0x129   :  { %2272 = vmatprep.subr.bf16.mxu1 %v3429_v44 }
 0x12b   :  { %2220 = vmatpush2.bf16.msra.mxu0 %v3424_v45 }
 0x12c   :  { %2273 = vmatpush2.bf16.msra.mxu1 %v3427_v46  ;;  %2221 = vmatprep.subr.bf16.mxu0 %v3432_v48 }
 0x12d   :  { %2274 = vmatprep.subr.bf16.mxu1 %v3435_v50 }
 0x12f   :  { %2222 = vmatpush2.bf16.msra.mxu0 %v3430_v51 }
 0x130   :  { %2275 = vmatpush2.bf16.msra.mxu1 %v3433_v52  ;;  %2223 = vmatprep.subr.bf16.mxu0 %v3438_v56 }
 0x131   :  { %2276 = vmatprep.subr.bf16.mxu1 %v3441_v57 }
 0x133   :  { %2224 = vmatpush2.bf16.msra.mxu0 %v3436_v58 }
 0x134   :  { %2277 = vmatpush2.bf16.msra.mxu1 %v3439_v59  ;;  %2225 = vmatprep.subr.bf16.mxu0 %v3444_v60 }
 0x135   :  { %2278 = vmatprep.subr.bf16.mxu1 %v3447_v62 }
 0x137   :  { %2226 = vmatpush2.bf16.msra.mxu0 %v3442_v63 }
 0x138   :  { %2279 = vmatpush2.bf16.msra.mxu1 %v3445_v0  ;;  %2227 = vmatprep.subr.bf16.mxu0 %v3450_v1 }
 0x139   :  { %2280 = vmatprep.subr.bf16.mxu1 %v3453_v2 }
 0x13b   :  { %2228 = vmatpush2.bf16.msra.mxu0 %v3448_v3 }
 0x13c   :  { %2281 = vmatpush2.bf16.msra.mxu1 %v3451_v4  ;;  %2303 = vmatprep.subr.bf16.mxu0 %v3456_v5 }
 0x13d   :  { %3028 = vmatprep.subr.bf16.mxu1 %v3456_v5 }
 0x13e   :  { %2230 = vmatmul.mubr.bf16.vlgmr.msra.gmra.mxu0 %v3702_v12  ;;  %v3463_v12 = vld [vmem:[#allocation5 + $0x6d0] ss:$24 sps:$4 sm:$0xff]   ;;  %v3756_v29 = vpop.f32.mrf.mxu0 }
 0x13f   :  { %2283 = vmatmul.mubr.bf16.vlgmr.msra.gmra.mxu1 %v3704_v13  ;;  %2304 = vmatpush1.bf16.msra.mxu0 %v3454_v6  ;;  %v3468_v13 = vld [vmem:[#allocation5 + $0x6a4] ss:$24 sps:$4 sm:$0xff]   ;;  %v3758_v30 = vpop.f32.mrf.mxu1 }
 0x140   :  { %3044 = vmatpush1.bf16.msra.mxu1 %v3454_v6  ;;  %2305 = vmatprep.subr.bf16.mxu0 %v3459_v7  ;;  %v3760_v31 = vpop.f32.mrf.mxu0 }
 0x141   :  { %3029 = vmatprep.subr.bf16.mxu1 %v3459_v7  ;;  %2239 = vmatprep.mubr.bf16.mxu0 %v3708_v37  ;;  %v3466_v37 = vld [vmem:[#allocation5 + $0x6a0] ss:$24 sps:$4 sm:$0xff]   ;;  %v3762_v32 = vpop.f32.mrf.mxu1 }
 0x142   :  { %2292 = vmatprep.mubr.bf16.mxu1 %v3712_v43  ;;  %v3471_v43 = vld [vmem:[#allocation5 + $0x674] ss:$24 sps:$4 sm:$0xff]   ;;  %v1917_v33 = vpop.f32.mrf.mxu0 }
 0x143   :  { %2306 = vmatpush1.bf16.msra.mxu0 %v3457_v8  ;;  %v3764_v34 = vpop.f32.mrf.mxu1 }
 0x144   :  { %3045 = vmatpush1.bf16.msra.mxu1 %v3457_v8  ;;  %2307 = vmatprep.subr.bf16.mxu0 %v3462_v9  ;;  %v1919_v35 = vpop.f32.mrf.mxu0 }
 0x145   :  { %3030 = vmatprep.subr.bf16.mxu1 %v3462_v9  ;;  %v3766_v39 = vpop.f32.mrf.mxu1 }
 0x146   :  { %2240 = vmatmul.mubr.bf16.gmra.mxu0 %v3710_v42  ;;  %v3469_v42 = vld [vmem:[#allocation5 + $0x670] ss:$24 sps:$4 sm:$0xff]   ;;  %v1923_v36 = vpop.f32.mrf.mxu0 }
 0x147   :  { %2293 = vmatmul.mubr.bf16.gmra.mxu1 %v3717_v49  ;;  %2308 = vmatpush1.bf16.msra.mxu0 %v3460_v10  ;;  %v3474_v49 = vld [vmem:[#allocation5 + $0x644] ss:$24 sps:$4 sm:$0xff]   ;;  %v3768_v40 = vpop.f32.mrf.mxu1 }
 0x148   :  { %3046 = vmatpush1.bf16.msra.mxu1 %v3460_v10  ;;  %2309 = vmatprep.subr.bf16.mxu0 %v3465_v11 }
 0x149   :  { %3031 = vmatprep.subr.bf16.mxu1 %v3465_v11  ;;  %2335 = vmatprep.mubr.bf16.mxu0 %v3721_v61  ;;  %v3477_v61 = vld [vmem:[#allocation5 + $0x614] ss:$24 sps:$4 sm:$0xff]   ;;  %v3770_v41 = vpop.f32.mrf.mxu1 }
 0x14a   :  { %2345 = vmatprep.mubr.bf16.mxu1 %v3726_v47  ;;  %v3475_v47 = vld [vmem:[#allocation5 + $0x610] ss:$24 sps:$4 sm:$0xff]  }
 0x14b   :  { %2310 = vmatpush1.bf16.msra.mxu0 %v3463_v12  ;;  %v3772_v44 = vpop.f32.mrf.mxu1 }
 0x14c   :  { %3047 = vmatpush1.bf16.msra.mxu1 %v3463_v12  ;;  %2311 = vmatprep.subr.bf16.mxu0 %v3468_v13 }
 0x14d   :  { %3032 = vmatprep.subr.bf16.mxu1 %v3468_v13  ;;  %v3776_v48 = vpop.f32.mrf.mxu1 }
 0x14f   :  { %2312 = vmatpush1.bf16.msra.mxu0 %v3466_v37 }
 0x150   :  { %3048 = vmatpush1.bf16.msra.mxu1 %v3466_v37  ;;  %2313 = vmatprep.subr.bf16.mxu0 %v3471_v43 }
 0x151   :  { %3033 = vmatprep.subr.bf16.mxu1 %v3471_v43 }
 0x153   :  { %2314 = vmatpush1.bf16.msra.mxu0 %v3469_v42 }
 0x154   :  { %3049 = vmatpush1.bf16.msra.mxu1 %v3469_v42  ;;  %2315 = vmatprep.subr.bf16.mxu0 %v3474_v49 }
 0x155   :  { %3034 = vmatprep.subr.bf16.mxu1 %v3474_v49  ;;  %v409_v49 = vlaneseq }
 0x157   :  { %2316 = vmatpush1.bf16.msra.mxu0 %v3472_v14 }
 0x158   :  { %3050 = vmatpush1.bf16.msra.mxu1 %v3472_v14  ;;  %2317 = vmatprep.subr.bf16.mxu0 %v3477_v61 }
 0x159   :  { %3035 = vmatprep.subr.bf16.mxu1 %v3477_v61 }
 0x15b   :  { %2318 = vmatpush1.bf16.msra.mxu0 %v3475_v47 }
 0x15c   :  { %3051 = vmatpush1.bf16.msra.mxu1 %v3475_v47  ;;  %2319 = vmatprep.subr.bf16.mxu0 %v3480_v15  ;;  %v410_v47 = vshrl.u32 %v409_v49, 7 }
 0x15d   :  { %3036 = vmatprep.subr.bf16.mxu1 %v3480_v15 }
 0x15f   :  { %2320 = vmatpush2.bf16.msra.mxu0 %v3478_v16 }
 0x160   :  { %3052 = vmatpush2.bf16.msra.mxu1 %v3478_v16  ;;  %2321 = vmatprep.subr.bf16.mxu0 %v3483_v17 }
 0x161   :  { %3037 = vmatprep.subr.bf16.mxu1 %v3483_v17 }
 0x163   :  { %2322 = vmatpush2.bf16.msra.mxu0 %v3481_v18 }
 0x164   :  { %3053 = vmatpush2.bf16.msra.mxu1 %v3481_v18  ;;  %2323 = vmatprep.subr.bf16.mxu0 %v3486_v19 }
 0x165   :  { %3038 = vmatprep.subr.bf16.mxu1 %v3486_v19  ;;  %v3836_v19 = vsub.s32 0, %v410_v47 }
 0x167   :  { %2324 = vmatpush2.bf16.msra.mxu0 %v3484_v20  ;;  %4194 = vst [vmem:[#allocation22_spill] sm:$0xff] %v3836_v19 }
 0x168   :  { %3054 = vmatpush2.bf16.msra.mxu1 %v3484_v20  ;;  %2325 = vmatprep.subr.bf16.mxu0 %v3489_v21  ;;  %v3838_v20 = vsub.s32 1, %v410_v47 }
 0x169   :  { %3039 = vmatprep.subr.bf16.mxu1 %v3489_v21  ;;  %v407_v21 = vld [vmem:[#allocation7] sm:$0x3f] }
 0x16a   :  { %4195 = vst [vmem:[#allocation23_spill] sm:$0xff] %v3838_v20 }
 0x16b   :  { %2326 = vmatpush2.bf16.msra.mxu0 %v3487_v22 }
 0x16c   :  { %3055 = vmatpush2.bf16.msra.mxu1 %v3487_v22  ;;  %2327 = vmatprep.subr.bf16.mxu0 %v3492_v53 }
 0x16d   :  { %3040 = vmatprep.subr.bf16.mxu1 %v3492_v53  ;;  %v3842_v53 = vsub.s32 2, %v410_v47 }
 0x16f   :  { %2328 = vmatpush2.bf16.msra.mxu0 %v3490_v54  ;;  %4197 = vst [vmem:[#allocation25_spill] sm:$0xff] %v3842_v53 }
 0x170   :  { %3056 = vmatpush2.bf16.msra.mxu1 %v3490_v54  ;;  %2329 = vmatprep.subr.bf16.mxu0 %v3495_v23 }
 0x171   :  { %3041 = vmatprep.subr.bf16.mxu1 %v3495_v23  ;;  %v412_v23 = vrot.slane %v407_v21, %v3836_v19 }
 0x173   :  { %2330 = vmatpush2.bf16.msra.mxu0 %v3493_v24  ;;  %v1914_v49 = vadd.f32 %v3756_v29, %v412_v23 }
 0x174   :  { %3057 = vmatpush2.bf16.msra.mxu1 %v3493_v24  ;;  %2331 = vmatprep.subr.bf16.mxu0 %v3498_v25  ;;  %v416_v24 = vrot.slane %v407_v21, %v3838_v20 }
 0x175   :  { %3042 = vmatprep.subr.bf16.mxu1 %v3498_v25 }
 0x177   :  { %2332 = vmatpush2.bf16.msra.mxu0 %v3496_v26 }
 0x178   :  { %3058 = vmatpush2.bf16.msra.mxu1 %v3496_v26  ;;  %2333 = vmatprep.subr.bf16.mxu0 %v3501_v27  ;;  %v420_v26 = vrot.slane %v407_v21, %v3842_v53 }
 0x179   :  { %3043 = vmatprep.subr.bf16.mxu1 %v3501_v27  ;;  %v3851_v27 = vsub.s32 3, %v410_v47 }
 0x17b   :  { %2334 = vmatpush2.bf16.msra.mxu0 %v3499_v28  ;;  %v424_v53 = vrot.slane %v407_v21, %v3851_v27 }
 0x17c   :  { %3059 = vmatpush2.bf16.msra.mxu1 %v3499_v28 }
 0x17e   :  { %2336 = vmatmul.mubr.bf16.vlgmr.msra.gmra.mxu0 %v3724_v38  ;;  %v1925_v38 = vpop.f32.mrf.mxu0 }
 0x17f   :  { %2346 = vmatmul.mubr.bf16.vlgmr.msra.gmra.mxu1 %v3732_v55  ;;  %v2072_v50 = vpop.f32.mrf.mxu1  ;;  %v1926_v19 = vadd.f32 %v1925_v38, %v416_v24 }
 0x180   :  { %v1927_v55 = vpop.f32.mrf.mxu0 }
 0x181   :  { %v3780_v52 = vpop.f32.mrf.mxu1  ;;  %v1928_v20 = vadd.f32 %v1927_v55, %v412_v23 }
 0x182   :  { %v1929_v45 = vpop.f32.mrf.mxu0 }
 0x183   :  { %v3784_v57 = vpop.f32.mrf.mxu1 }
 0x184   :  { %v3774_v46 = vpop.f32.mrf.mxu0 }
 0x185   :  { %v3788_v59 = vpop.f32.mrf.mxu1 }
 0x186   :  { %v3778_v51 = vpop.f32.mrf.mxu0 }
 0x187   :  { %v2082_v62 = vpop.f32.mrf.mxu1 }
 0x188   :  { %v3782_v56 = vpop.f32.mrf.mxu0 }
 0x189   :  { %v3794_v0 = vpop.f32.mrf.mxu1 }
 0x18a   :  { %v3786_v58 = vpop.f32.mrf.mxu0 }
 0x18b   :  { %v3798_v2 = vpop.f32.mrf.mxu1 }
 0x18c   :  { %v3790_v60 = vpop.f32.mrf.mxu0 }
 0x18d   :  { %v3802_v4 = vpop.f32.mrf.mxu1 }
 0x18e   :  { %v3792_v63 = vpop.f32.mrf.mxu0 }
 0x190   :  { %v3796_v1 = vpop.f32.mrf.mxu0 }
 0x192   :  { %v3800_v3 = vpop.f32.mrf.mxu0 }
 0x1be   :  { %v2125_v5 = vpop.f32.mrf.mxu0 }
 0x1bf   :  { %v3804_v6 = vpop.f32.mrf.mxu1 }
 0x1c0   :  { %v3806_v7 = vpop.f32.mrf.mxu0 }
 0x1c1   :  { %v3808_v8 = vpop.f32.mrf.mxu1 }
 0x1c2   :  { %v3810_v9 = vpop.f32.mrf.mxu0 }
 0x1c3   :  { %v3812_v10 = vpop.f32.mrf.mxu1 }
 0x1c4   :  { %v3814_v11 = vpop.f32.mrf.mxu0 }
 0x1c5   :  { %v3816_v12 = vpop.f32.mrf.mxu1 }
 0x1c6   :  { %4188 = vst [vmem:[#allocation16_spill] sm:$0xff] %v3816_v12  ;;  %v2135_v13 = vpop.f32.mrf.mxu0  ;;  %v1920_v12 = vadd.f32 %v1919_v35, %v416_v24 }
 0x1c7   :  { %v3818_v37 = vpop.f32.mrf.mxu1 }
 0x1c8   :  { %v3820_v43 = vpop.f32.mrf.mxu0  ;;  %v1973_v38 = vadd.f32 %v3766_v39, %v1920_v12  ;;  %v2077_v39 = vadd.f32 %v3784_v57, %v420_v26 }
 0x1c9   :  { %v3822_v42 = vpop.f32.mrf.mxu1 }
 0x1ca   :  { %v3824_v14 = vpop.f32.mrf.mxu0 }
 0x1cb   :  { %v3826_v61 = vpop.f32.mrf.mxu1 }
 0x1cc   :  { %4189 = vst [vmem:[#allocation17_spill] sm:$0xff] %v3826_v61  ;;  %v3828_v15 = vpop.f32.mrf.mxu0 }
 0x1cd   :  { %4190 = vst [vmem:[#allocation18_spill] sm:$0xff] %v3828_v15  ;;  %v3830_v16 = vpop.f32.mrf.mxu1  ;;  %v2073_v15 = vadd.f32 %v2072_v50, %v420_v26 }
 0x1ce   :  { %4191 = vst [vmem:[#allocation19_spill] sm:$0xff] %v3830_v16  ;;  %v1916_v16 = vadd.f32 %v3760_v31, %v416_v24  ;;  %v2083_v31 = vadd.f32 %v2082_v62, %v420_v26  ;;  %v1981_v62 = vadd.f32 %v3772_v44, %v1928_v20 }
 0x1d0   :  { %v1969_v29 = vadd.f32 %v3762_v32, %v1916_v16  ;;  %v2136_v32 = vadd.f32 %v2135_v13, %v2083_v31  ;;  %v2087_v13 = vadd.f32 %v3798_v2, %v420_v26 }
 0x1fe   :  { %v3832_v17 = vpop.f32.mrf.mxu0 }
 0x1ff   :  { %4192 = vst [vmem:[#allocation20_spill] sm:$0xff] %v3832_v17  ;;  %v3834_v18 = vpop.f32.mrf.mxu1 }
 0x200   :  { %4193 = vst [vmem:[#allocation21_spill] sm:$0xff] %v3834_v18  ;;  %v3840_v22 = vpop.f32.mrf.mxu0  ;;  %v1918_v18 = vadd.f32 %v1917_v33, %v412_v23  ;;  %v3866_v33 = vsub.s32 5, %v410_v47 }
 0x201   :  { %4196 = vst [vmem:[#allocation24_spill] sm:$0xff] %v3840_v22  ;;  %v3844_v54 = vpop.f32.mrf.mxu1  ;;  %v3857_v22 = vsub.s32 4, %v410_v47 }
 0x202   :  { %4198 = vst [vmem:[#allocation26_spill] sm:$0xff] %v3844_v54  ;;  %v3848_v25 = vpop.f32.mrf.mxu0  ;;  %v1924_v54 = vadd.f32 %v1923_v36, %v412_v23  ;;  %v1971_v36 = vadd.f32 %v3764_v34, %v1918_v18  ;;  %v1979_v23 = vadd.f32 %v3770_v41, %v1926_v19  ;;  %v2075_v34 = vadd.f32 %v3780_v52, %v424_v53 }
 0x203   :  { %4199 = vst [vmem:[#allocation27_spill] sm:$0xff] %v3848_v25  ;;  %v3853_v28 = vpop.f32.mrf.mxu1  ;;  %v1930_v25 = vadd.f32 %v1929_v45, %v416_v24  ;;  %v428_v55 = vrot.slane %v407_v21, %v3857_v22  ;;  %v432_v41 = vrot.slane %v407_v21, %v3866_v33  ;;  %v2130_v52 = vadd.f32 %v3810_v9, %v2077_v39  ;;  %v4209_v39 = vld [vmem:[#allocation19_spill] sm:$0xff] }
 0x204   :  { %4200 = vst [vmem:[#allocation28_spill] sm:$0xff] %v3853_v28  ;;  %v3859_v61 = vpop.f32.mrf.mxu0  ;;  %v1967_v28 = vadd.f32 %v3758_v30, %v1914_v49  ;;  %v1977_v50 = vadd.f32 %v3768_v40, %v1924_v54  ;;  %v3874_v30 = vadd.f32 %v3778_v51, %v1969_v29  ;;  %v3884_v12 = vadd.f32 %v3792_v63, %v1979_v23  ;;  %v4204_v54 = vld [vmem:[#allocation17_spill] sm:$0xff] }
 0x205   :  { %4201 = vst [vmem:[#allocation29_spill] sm:$0xff] %v3859_v61  ;;  %v3862_v17 = vpop.f32.mrf.mxu1  ;;  %v2126_v61 = vadd.f32 %v2125_v5, %v2073_v15  ;;  %v1983_v47 = vadd.f32 %v3776_v48, %v1930_v25  ;;  %v2085_v40 = vadd.f32 %v3794_v0, %v424_v53  ;;  %v2128_v48 = vadd.f32 %v3806_v7, %v2075_v34 }
 0x206   :  { %v2241_v35 = vpop.f32.mrf.mxu0  ;;  %v3881_v5 = vadd.f32 %v3774_v46, %v1967_v28  ;;  %v3897_v63 = vadd.f32 %v3790_v60, %v1977_v50  ;;  %v3901_v15 = vadd.f32 %v3818_v37, %v2136_v32  ;;  %v3904_v2 = vadd.f32 %v3782_v56, %v1971_v36 }
 0x207   :  { %v2294_v45 = vpop.f32.mrf.mxu1  ;;  %v3890_v44 = vadd.f32 %v3804_v6, %v2126_v61  ;;  %v2138_v0 = vadd.f32 %v3820_v43, %v2085_v40  ;;  %v3907_v6 = vadd.f32 %v3786_v58, %v1973_v38  ;;  %v2079_v7 = vadd.f32 %v3788_v59, %v424_v53  ;;  %v4207_v38 = vld [vmem:[#allocation16_spill] sm:$0xff]  ;;  %v4208_v32 = vld [vmem:[#allocation21_spill] sm:$0xff] }
 0x208   :  { %v2243_v51 = vpop.f32.mrf.mxu0  ;;  %v2356_v46 = vadd.f32 %v3874_v30, %v3881_v5  ;;  %v2140_v9 = vadd.f32 %v3824_v14, %v2087_v13  ;;  %v2370_v61 = vadd.f32 %v3884_v12, %v3897_v63  ;;  %v3914_v60 = vadd.f32 %v3796_v1, %v1981_v62 }
 0x209   :  { %v2296_v57 = vpop.f32.mrf.mxu1  ;;  %v3917_v43 = vadd.f32 %v3800_v3, %v1983_v47  ;;  %v2089_v37 = vadd.f32 %v3802_v4, %v424_v53  ;;  %v3922_v58 = vadd.f32 %v3808_v8, %v2128_v48  ;;  %v3925_v59 = vadd.f32 %v3812_v10, %v2130_v52  ;;  %v4202_v3 = vld [vmem:[#allocation20_spill] sm:$0xff]  ;;  %v4203_v53 = vld [vmem:[#allocation18_spill] sm:$0xff] }
 0x20a   :  { %v2245_v56 = vpop.f32.mrf.mxu0  ;;  %v2357_v16 = vadd.f32 %v2356_v46, %v3890_v44  ;;  %v2132_v14 = vadd.f32 %v3814_v11, %v2079_v7  ;;  %v2371_v1 = vadd.f32 %v2370_v61, %v3901_v15  ;;  %v3930_v19 = vadd.f32 %v3822_v42, %v2138_v0  ;;  %v4205_v11 = vld [vmem:[#allocation24_spill] sm:$0xff]  ;;  %v4206_v29 = vld [vmem:[#allocation27_spill] sm:$0xff] }
 0x20b   :  { %v2298_v18 = vpop.f32.mrf.mxu1  ;;  %v2232_v20 = vadd.f32 %v4202_v3, %v428_v55  ;;  %v2242_v4 = vadd.f32 %v2241_v35, %v428_v55  ;;  %v2363_v21 = vadd.f32 %v3907_v6, %v3904_v2  ;;  %v2142_v8 = vadd.f32 %v4203_v53, %v2089_v37  ;;  %v4212_v37 = vld [vmem:[#allocation28_spill] sm:$0xff] }
 0x20c   :  { %v3937_v24 = vadd.f32 %v4204_v54, %v2140_v9  ;;  %v2377_v10 = vadd.f32 %v3917_v43, %v3914_v60  ;;  %v2234_v25 = vadd.f32 %v4205_v11, %v432_v41  ;;  %v2244_v26 = vadd.f32 %v2243_v51, %v432_v41  ;;  %v2247_v28 = vpop.f32.mrf.mxu0  ;;  %v4210_v51 = vld [vmem:[#allocation29_spill] sm:$0xff] }
 0x20d   :  { %v2358_v42 = vadd.f32 %v2357_v16, %v3922_v58  ;;  %v2364_v49 = vadd.f32 %v2363_v21, %v3925_v59  ;;  %v2236_v31 = vadd.f32 %v4206_v29, %v428_v55  ;;  %v2246_v35 = vadd.f32 %v2245_v56, %v428_v55  ;;  %v2300_v36 = vpop.f32.mrf.mxu1  ;;  %v4211_v55 = vld [vmem:[#allocation26_spill] sm:$0xff] }
 0x20e   :  { %v3946_v50 = vadd.f32 %v4207_v38, %v2132_v14  ;;  %v2372_v23 = vadd.f32 %v2371_v1, %v3930_v19  ;;  %v2285_v62 = vadd.f32 %v4208_v32, %v2232_v20  ;;  %v2295_v47 = vadd.f32 %v2294_v45, %v2242_v4 }
 0x20f   :  { %v2378_v34 = vadd.f32 %v2377_v10, %v3937_v24  ;;  %v3952_v40 = vadd.f32 %v4209_v39, %v2142_v8  ;;  %v2238_v13 = vadd.f32 %v4210_v51, %v432_v41  ;;  %v2248_v48 = vadd.f32 %v2247_v28, %v432_v41 }
 0x210   :  { %v2287_v0 = vadd.f32 %v4211_v55, %v2234_v25  ;;  %v2297_v7 = vadd.f32 %v2296_v57, %v2244_v26  ;;  %v2289_v56 = vadd.f32 %v4212_v37, %v2236_v31  ;;  %v2299_v16 = vadd.f32 %v2298_v18, %v2246_v35 }
 0x211   :  { %v2365_v21 = vadd.f32 %v2364_v49, %v3946_v50  ;;  %v2379_v41 = vadd.f32 %v2378_v34, %v3952_v40  ;;  %v2291_v53 = vadd.f32 %v3862_v17, %v2238_v13  ;;  %v2301_v8 = vadd.f32 %v2300_v36, %v2248_v48 }
 0x23e   :  { %v2337_v52 = vpop.f32.mrf.mxu0 }
 0x23f   :  { %v2347_v46 = vpop.f32.mrf.mxu1  ;;  %v2338_v9 = vadd.f32 %v2337_v52, %v2285_v62 }
 0x240   :  { %v2348_v61 = vadd.f32 %v2347_v46, %v2295_v47  ;;  %v2339_v14 = vpop.f32.mrf.mxu0 }
 0x241   :  { %v2349_v45 = vpop.f32.mrf.mxu1  ;;  %v2340_v1 = vadd.f32 %v2339_v14, %v2287_v0  ;;  %v2359_v4 = vadd.f32 %v2358_v42, %v2338_v9 }
 0x242   :  { %v2350_v3 = vadd.f32 %v2349_v45, %v2297_v7  ;;  %v2373_v20 = vadd.f32 %v2372_v23, %v2348_v61  ;;  %v2341_v54 = vpop.f32.mrf.mxu0 }
 0x243   :  { %v2351_v57 = vpop.f32.mrf.mxu1  ;;  %v2342_v10 = vadd.f32 %v2341_v54, %v2289_v56  ;;  %v2360_v18 = vadd.f32 %v2359_v4, %v2340_v1 }
 0x244   :  { %v3960_v11 = vadd.f32 %v2351_v57, %v2299_v16  ;;  %v2374_v25 = vadd.f32 %v2373_v20, %v2350_v3  ;;  %v2343_v26 = vpop.f32.mrf.mxu0 }
 0x245   :  { %v2353_v28 = vpop.f32.mrf.mxu1  ;;  %v2366_v29 = vadd.f32 %v2365_v21, %v2342_v10  ;;  %v2344_v42 = vadd.f32 %v2343_v26, %v2291_v53  ;;  %2361 = vadd.xlane.f32.xlu0 %v2360_v18 }
 0x246   :  { %v2380_v31 = vadd.f32 %v2379_v41, %v3960_v11  ;;  %v3963_v35 = vadd.f32 %v2353_v28, %v2301_v8  ;;  %2375 = vadd.xlane.f32.xlu1 %v2374_v25 }
 0x247   :  { %v2367_v49 = vadd.f32 %v2366_v29, %v2344_v42 }
 0x248   :  { %v2381_v17 = vadd.f32 %v2380_v31, %v3963_v35 }
 0x249   :  { %2368 = vadd.xlane.f32.xlu0 %v2367_v49 }
 0x24a   :  { %2382 = vadd.xlane.f32.xlu1 %v2381_v17 }
 0x2ce   :  { %v2362_v23 = vpop.xlane.xlu0 %2361 }
 0x2cf   :  { %v2376_v36 = vpop.xlane.xlu1 %2375  ;;  %v2385_v32 = vmul.f32 0.0013020834, %v2362_v23 }
 0x2d0   :  { %v2387_v38 = vmul.f32 0.0013020834, %v2376_v36 }
 0x2d1   :  { %v3970_v34 = vsub.f32 %v3881_v5, %v2385_v32  ;;  %v3973_v39 = vsub.f32 %v3874_v30, %v2385_v32  ;;  %v3976_v51 = vsub.f32 %v3890_v44, %v2385_v32  ;;  %v3982_v52 = vsub.f32 %v3922_v58, %v2385_v32 }
 0x2d2   :  { %v3967_v62 = vsub.f32 %v3897_v63, %v2387_v38  ;;  %v3979_v13 = vsub.f32 %v3884_v12, %v2387_v38  ;;  %v2369_v48 = vpop.xlane.xlu0 %2368  ;;  %v3984_v46 = vsub.f32 %v2338_v9, %v2385_v32  ;;  %v3987_v63 = vsub.f32 %v3901_v15, %v2387_v38 }
 0x2d3   :  { %v2383_v47 = vpop.xlane.xlu1 %2382  ;;  %v2386_v5 = vmul.f32 0.0013020834, %v2369_v48  ;;  %v2413_v30 = vmul.f32 %v3970_v34, %v3970_v34  ;;  %v2414_v44 = vmul.f32 %v3973_v39, %v3973_v39  ;;  %v3993_v0 = vsub.f32 %v2340_v1, %v2385_v32 }
 0x2d4   :  { %v2388_v55 = vmul.f32 0.0013020834, %v2383_v47  ;;  %v3996_v12 = vsub.f32 %v3930_v19, %v2387_v38  ;;  %v3998_v58 = vsub.f32 %v2348_v61, %v2387_v38  ;;  %v2415_v7 = vmul.f32 %v3976_v51, %v3976_v51 }
 0x2d5   :  { %v2437_v15 = vadd.f32 %v2414_v44, %v2413_v30  ;;  %v2425_v9 = vmul.f32 %v3967_v62, %v3967_v62  ;;  %v2426_v37 = vmul.f32 %v3979_v13, %v3979_v13  ;;  %v2416_v56 = vmul.f32 %v3982_v52, %v3982_v52 }
 0x2d6   :  { %v2417_v16 = vmul.f32 %v3984_v46, %v3984_v46  ;;  %v2427_v19 = vmul.f32 %v3987_v63, %v3987_v63  ;;  %v4013_v61 = vsub.f32 %v3904_v2, %v2386_v5  ;;  %v4016_v1 = vsub.f32 %v3907_v6, %v2386_v5 }
 0x2d7   :  { %v2438_v14 = vadd.f32 %v2437_v15, %v2415_v7  ;;  %v2451_v45 = vadd.f32 %v2426_v37, %v2425_v9  ;;  %v4019_v20 = vsub.f32 %v3925_v59, %v2386_v5  ;;  %v2418_v4 = vmul.f32 %v3993_v0, %v3993_v0 }
 0x2d8   :  { %v4023_v21 = vsub.f32 %v2350_v3, %v2387_v38  ;;  %v4026_v41 = vsub.f32 %v3946_v50, %v2386_v5  ;;  %v2419_v2 = vmul.f32 %v4013_v61, %v4013_v61  ;;  %v2428_v8 = vmul.f32 %v3996_v12, %v3996_v12 }
 0x2d9   :  { %v2439_v53 = vadd.f32 %v2438_v14, %v2416_v56  ;;  %v2452_v6 = vadd.f32 %v2451_v45, %v2427_v19  ;;  %v2420_v59 = vmul.f32 %v4016_v1, %v4016_v1  ;;  %v2429_v54 = vmul.f32 %v3998_v58, %v3998_v58 }
 0x2da   :  { %v4036_v57 = vsub.f32 %v2342_v10, %v2386_v5  ;;  %v2421_v50 = vmul.f32 %v4019_v20, %v4019_v20  ;;  %v4041_v3 = vsub.f32 %v3914_v60, %v2388_v55  ;;  %v4044_v28 = vsub.f32 %v3917_v43, %v2388_v55 }
 0x2db   :  { %v2440_v25 = vadd.f32 %v2439_v53, %v2417_v16  ;;  %v2453_v18 = vadd.f32 %v2452_v6, %v2428_v8  ;;  %v2444_v26 = vadd.f32 %v2420_v59, %v2419_v2  ;;  %v4046_v29 = vsub.f32 %v2344_v42, %v2386_v5 }
 0x2dc   :  { %v2422_v31 = vmul.f32 %v4026_v41, %v4026_v41  ;;  %v4051_v10 = vsub.f32 %v3937_v24, %v2388_v55  ;;  %v2431_v60 = vmul.f32 %v4041_v3, %v4041_v3  ;;  %v4056_v38 = vsub.f32 %v3952_v40, %v2388_v55 }
 0x2dd   :  { %v2441_v17 = vadd.f32 %v2440_v25, %v2418_v4  ;;  %v2454_v49 = vadd.f32 %v2453_v18, %v2429_v54  ;;  %v2445_v36 = vadd.f32 %v2444_v26, %v2421_v50  ;;  %v2432_v43 = vmul.f32 %v4044_v28, %v4044_v28  ;;  %v2501_v50 = vld [vmem:[#allocation8] sm:$0x3f]  ;;  %v2557_v25 = vld [vmem:[#allocation10] sm:$0x3f] }
 0x2de   :  { %v2430_v42 = vmul.f32 %v4023_v21, %v4023_v21  ;;  %v2423_v24 = vmul.f32 %v4036_v57, %v4036_v57  ;;  %v4065_v32 = vsub.f32 %v3960_v11, %v2388_v55  ;;  %v2433_v47 = vmul.f32 %v4051_v10, %v4051_v10  ;;  %v4213_v26 = vld [vmem:[#allocation22_spill] sm:$0xff] }
 0x2df   :  { %2442 = vadd.xlane.f32.xlu0 %v2441_v17  ;;  %v2446_v23 = vadd.f32 %v2445_v36, %v2422_v31  ;;  %v2458_v48 = vadd.f32 %v2432_v43, %v2431_v60  ;;  %v2424_v5 = vmul.f32 %v4046_v29, %v4046_v29  ;;  %v4072_v44 = vsub.f32 %v3963_v35, %v2388_v55 }
 0x2e0   :  { %v2455_v40 = vadd.f32 %v2454_v49, %v2430_v42  ;;  %v2434_v7 = vmul.f32 %v4056_v38, %v4056_v38  ;;  %v2435_v11 = vmul.f32 %v4065_v32, %v4065_v32  ;;  %v4081_v31 = vrot.slane %v2501_v50, %v4213_v26  ;;  %v4214_v49 = vld [vmem:[#allocation23_spill] sm:$0xff]  ;;  %v4215_v42 = vld [vmem:[#allocation25_spill] sm:$0xff] }
 0x2e1   :  { %v2447_v30 = vadd.f32 %v2446_v23, %v2423_v24  ;;  %v2459_v15 = vadd.f32 %v2458_v48, %v2433_v47  ;;  %v2436_v56 = vmul.f32 %v4072_v44, %v4072_v44  ;;  %v4084_v17 = vrot.slane %v2557_v25, %v4213_v26 }
 0x2e2   :  { %v4087_v36 = vrot.slane %v2501_v50, %v4214_v49  ;;  %v4090_v60 = vrot.slane %v2557_v25, %v4214_v49  ;;  %v2514_v24 = vrot.slane %v2501_v50, %v4215_v42  ;;  %v2518_v23 = vrot.slane %v2501_v50, %v3851_v27 }
 0x2e3   :  { %2456 = vadd.xlane.f32.xlu0 %v2455_v40  ;;  %v2448_v9 = vadd.f32 %v2447_v30, %v2424_v5  ;;  %v2460_v37 = vadd.f32 %v2459_v15, %v2434_v7  ;;  %v2522_v47 = vrot.slane %v2501_v50, %v3857_v22  ;;  %v2526_v48 = vrot.slane %v2501_v50, %v3866_v33 }
 0x2e4   :  { %v4101_v15 = vrot.slane %v2557_v25, %v4215_v42 }
 0x2e5   :  { %2449 = vadd.xlane.f32.xlu1 %v2448_v9  ;;  %v2461_v16 = vadd.f32 %v2460_v37, %v2435_v11  ;;  %v4104_v9 = vrot.slane %v2557_v25, %v3851_v27 }
 0x2e7   :  { %v2462_v19 = vadd.f32 %v2461_v16, %v2436_v56  ;;  %v4109_v56 = vrot.slane %v2557_v25, %v3857_v22 }
 0x2e9   :  { %2463 = vadd.xlane.f32.xlu1 %v2462_v19 }
 0x368   :  { %v2443_v14 = vpop.xlane.xlu0 %2442 }
 0x369   :  { %v2465_v35 = vmul.f32 0.0013020834, %v2443_v14 }
 0x36b   :  { %v2469_v55 = vadd.f32 1e-13, %v2465_v35 }
 0x36c   :  { %v2457_v45 = vpop.xlane.xlu0 %2456 }
 0x36d   :  { %3502 = vrsqrt.f32 %v2469_v55  ;;  %v2467_v4 = vmul.f32 0.0013020834, %v2457_v45 }
 0x36e   :  { %v2450_v2 = vpop.xlane.xlu1 %2449 }
 0x36f   :  { %v2466_v53 = vmul.f32 0.0013020834, %v2450_v2  ;;  %v2471_v8 = vadd.f32 1e-13, %v2467_v4 }
 0x371   :  { %v2470_v6 = vadd.f32 1e-13, %v2466_v53  ;;  %3504 = vrsqrt.f32 %v2471_v8 }
 0x372   :  { %v2464_v59 = vpop.xlane.xlu1 %2463 }
 0x373   :  { %3506 = vrsqrt.f32 %v2470_v6  ;;  %v2468_v54 = vmul.f32 0.0013020834, %v2464_v59 }
 0x375   :  { %v2472_v18 = vadd.f32 1e-13, %v2468_v54 }
 0x377   :  { %3508 = vrsqrt.f32 %v2472_v18 }
 0x37a   :  { %v3503_v43 = vpop.eup %3502 }
 0x37b   :  { %v2477_v40 = vmul.f32 %v3503_v43, %v3970_v34  ;;  %v2478_v5 = vmul.f32 %v3503_v43, %v3973_v39  ;;  %v2479_v30 = vmul.f32 %v3503_v43, %v3976_v51  ;;  %v2480_v7 = vmul.f32 %v3503_v43, %v3982_v52 }
 0x37c   :  { %v2481_v11 = vmul.f32 %v3503_v43, %v3984_v46  ;;  %v2482_v37 = vmul.f32 %v3503_v43, %v3993_v0  ;;  %v4112_v34 = vrot.slane %v2557_v25, %v3866_v33 }
 0x37d   :  { %v2533_v39 = vmul.f32 %v4081_v31, %v2477_v40  ;;  %v2534_v51 = vmul.f32 %v4087_v36, %v2478_v5  ;;  %v2535_v16 = vmul.f32 %v2514_v24, %v2479_v30  ;;  %v2536_v19 = vmul.f32 %v2518_v23, %v2480_v7 }
 0x37e   :  { %v3505_v52 = vpop.eup %3504  ;;  %v2537_v14 = vmul.f32 %v2522_v47, %v2481_v11  ;;  %v2538_v27 = vmul.f32 %v2526_v48, %v2482_v37 }
 0x37f   :  { %v2489_v35 = vmul.f32 %v3505_v52, %v3967_v62  ;;  %v2490_v46 = vmul.f32 %v3505_v52, %v3979_v13  ;;  %v2491_v0 = vmul.f32 %v3505_v52, %v3987_v63  ;;  %v2492_v22 = vmul.f32 %v3505_v52, %v3996_v12 }
 0x380   :  { %v3507_v55 = vpop.eup %3506  ;;  %v2493_v33 = vmul.f32 %v3505_v52, %v3998_v58  ;;  %v2494_v45 = vmul.f32 %v3505_v52, %v4023_v21  ;;  %v4123_v4 = vadd.f32 %v4084_v17, %v2533_v39  ;;  %v4126_v2 = vadd.f32 %v4090_v60, %v2534_v51 }
 0x381   :  { %v2483_v53 = vmul.f32 %v3507_v55, %v4013_v61  ;;  %v2484_v62 = vmul.f32 %v3507_v55, %v4016_v1  ;;  %v2485_v13 = vmul.f32 %v3507_v55, %v4019_v20  ;;  %v2486_v63 = vmul.f32 %v3507_v55, %v4026_v41 }
 0x382   :  { %v2487_v12 = vmul.f32 %v3507_v55, %v4036_v57  ;;  %v2488_v58 = vmul.f32 %v3507_v55, %v4046_v29  ;;  %v2545_v21 = vmul.f32 %v4081_v31, %v2489_v35  ;;  %v2546_v8 = vmul.f32 %v4087_v36, %v2490_v46 }
 0x383   :  { %v2539_v6 = vmul.f32 %v4081_v31, %v2483_v53  ;;  %v2540_v59 = vmul.f32 %v4087_v36, %v2484_v62  ;;  %v2541_v54 = vmul.f32 %v2514_v24, %v2485_v13  ;;  %v2542_v61 = vmul.f32 %v2518_v23, %v2486_v63 }
 0x384   :  { %v2543_v50 = vmul.f32 %v2522_v47, %v2487_v12  ;;  %v2544_v1 = vmul.f32 %v2526_v48, %v2488_v58  ;;  %v2547_v25 = vmul.f32 %v2514_v24, %v2491_v0  ;;  %v2548_v20 = vmul.f32 %v2518_v23, %v2492_v22  ;;  %v3509_v18 = vpop.eup %3508 }
 0x385   :  { %v2549_v41 = vmul.f32 %v2522_v47, %v2493_v33  ;;  %v2550_v26 = vmul.f32 %v2526_v48, %v2494_v45  ;;  %v2591_v57 = vadd.f32 %v4101_v15, %v2535_v16  ;;  %v2592_v29 = vadd.f32 %v4104_v9, %v2536_v19 }
 0x386   :  { %v2495_v49 = vmul.f32 %v3509_v18, %v4041_v3  ;;  %v2496_v43 = vmul.f32 %v3509_v18, %v4044_v28  ;;  %v2497_v42 = vmul.f32 %v3509_v18, %v4051_v10  ;;  %v2498_v40 = vmul.f32 %v3509_v18, %v4056_v38 }
 0x387   :  { %v2499_v5 = vmul.f32 %v3509_v18, %v4065_v32  ;;  %v2500_v30 = vmul.f32 %v3509_v18, %v4072_v44  ;;  %v2593_v7 = vadd.f32 %v4109_v56, %v2537_v14  ;;  %v2594_v11 = vadd.f32 %v4112_v34, %v2538_v27 }
 0x388   :  { %v2551_v37 = vmul.f32 %v4081_v31, %v2495_v49  ;;  %v2552_v39 = vmul.f32 %v4087_v36, %v2496_v43  ;;  %v2553_v51 = vmul.f32 %v2514_v24, %v2497_v42  ;;  %v2554_v3 = vmul.f32 %v2518_v23, %v2498_v40 }
 0x389   :  { %v2555_v52 = vmul.f32 %v2522_v47, %v2499_v5  ;;  %v2556_v28 = vmul.f32 %v2526_v48, %v2500_v30  ;;  %v2595_v10 = vadd.f32 %v4084_v17, %v2539_v6  ;;  %v2596_v38 = vadd.f32 %v4090_v60, %v2540_v59 }
 0x38a   :  { %v2597_v32 = vadd.f32 %v4101_v15, %v2541_v54  ;;  %v2598_v44 = vadd.f32 %v4104_v9, %v2542_v61  ;;  %v2599_v16 = vadd.f32 %v4109_v56, %v2543_v50  ;;  %v2600_v19 = vadd.f32 %v4112_v34, %v2544_v1 }
 0x38b   :  { %v2601_v31 = vadd.f32 %v4084_v17, %v2545_v21  ;;  %v2602_v36 = vadd.f32 %v4090_v60, %v2546_v8  ;;  %v2603_v24 = vadd.f32 %v4101_v15, %v2547_v25  ;;  %v2604_v23 = vadd.f32 %v4104_v9, %v2548_v20 }
 0x38c   :  { %v2605_v47 = vadd.f32 %v4109_v56, %v2549_v41  ;;  %v2606_v48 = vadd.f32 %v4112_v34, %v2550_v26  ;;  %v2607_v14 = vadd.f32 %v4084_v17, %v2551_v37  ;;  %v2608_v27 = vadd.f32 %v4090_v60, %v2552_v39 }
 0x38d   :  { %v2609_v35 = vadd.f32 %v4101_v15, %v2553_v51  ;;  %v2610_v46 = vadd.f32 %v4104_v9, %v2554_v3  ;;  %v2611_v0 = vadd.f32 %v4109_v56, %v2555_v52  ;;  %v2612_v22 = vadd.f32 %v4112_v34, %v2556_v28 }
 0x38e   :  { %v3016_v55 = vpack.c.bf16 %v4126_v2, %v4123_v4  ;;  %v3017_v33 = vpack.c.bf16 %v2592_v29, %v2591_v57  ;;  %v3018_v45 = vpack.c.bf16 %v2594_v11, %v2593_v7  ;;  %v3019_v53 = vpack.c.bf16 %v2596_v38, %v2595_v10 }
 0x38f   :  { %v3020_v62 = vpack.c.bf16 %v2598_v44, %v2597_v32  ;;  %v3021_v17 = vpack.c.bf16 %v2600_v19, %v2599_v16  ;;  %v3022_v13 = vpack.c.bf16 %v2602_v36, %v2601_v31  ;;  %v3023_v60 = vpack.c.bf16 %v2604_v23, %v2603_v24 }
 0x390   :  { %v3024_v63 = vpack.c.bf16 %v2606_v48, %v2605_v47  ;;  %v3025_v15 = vpack.c.bf16 %v2608_v27, %v2607_v14  ;;  %v3026_v12 = vpack.c.bf16 %v2610_v46, %v2609_v35  ;;  %v3027_v9 = vpack.c.bf16 %v2612_v22, %v2611_v0  ;;  %2685 = vst [vmem:[#allocation11] sm:$0xff] %v3016_v55 }
 0x391   :  { %2686 = vst [vmem:[#allocation11 + $0x8] sm:$0xff] %v3017_v33  ;;  %2687 = vst [vmem:[#allocation11 + $0x10] sm:$0xff] %v3018_v45 }
 0x392   :  { %2688 = vst [vmem:[#allocation11 + $0x18] sm:$0xff] %v3019_v53  ;;  %2689 = vst [vmem:[#allocation11 + $0x20] sm:$0xff] %v3020_v62 }
 0x393   :  { %2690 = vst [vmem:[#allocation11 + $0x28] sm:$0xff] %v3021_v17  ;;  %2691 = vst [vmem:[#allocation11 + $0x30] sm:$0xff] %v3022_v13 }
 0x394   :  { %2692 = vst [vmem:[#allocation11 + $0x38] sm:$0xff] %v3023_v60  ;;  %2693 = vst [vmem:[#allocation11 + $0x40] sm:$0xff] %v3024_v63 }
 0x395   :  { %2694 = vst [vmem:[#allocation11 + $0x48] sm:$0xff] %v3025_v15  ;;  %2695 = vst [vmem:[#allocation11 + $0x50] sm:$0xff] %v3026_v12 }
 0x396   :  { %2696 = vst [vmem:[#allocation11 + $0x58] sm:$0xff] %v3027_v9 }
 0x397   :  { %3621 = shalt.err (!%p3618_p1)
}
 0x398   :  { %2708 = dma.vmem_to_hbm [thread:$0]  %s2703_s4, 1536, %s4181_s5, [#allocation4], %s3639_s21, %s3639_s21, %s3640_s22  }
 0x399   :  { %3636 = dma.done.wait [#allocation4], 1536  }
 0x39a   :  { %3637 = vsyncadd [#allocation4], 4294965760 }
 0x39b   :  { %2712 = vsyncpa [#allocation3], 1 }
 0x39c   :  { %2713 = vsyncpa [#allocation6], 1 }
 0x39d   :  { %2714 = vsyncpa [#allocation9], 1 }
 0x39e   :  { %2715 = vsyncpa [#allocation4], 1 }

// kernel: tpu_custom_call.1
= control target key start
LH: loop header
LB: loop body
LE: loop exit
PB: predicated region body
PF: predicated region fallthrough
CT: control target
= control target key end

     0   :  { %10 = vsyncpa [#allocation3], 0  ;;  %s4176_s0 = inlined_call_operand.hbm [shape: f32[32,768], index: 0, kind: input, shape index: {}]   ;;  %s4177_s1 = inlined_call_operand.hbm [shape: bf16[768,768], index: 1, kind: input, shape index: {}]   ;;  %s4178_s2 = inlined_call_operand.hbm [shape: f32[1,768], index: 2, kind: input, shape index: {}]   ;;  %s4179_s3 = inlined_call_operand.hbm [shape: f32[1,768], index: 3, kind: input, shape index: {}]   ;;  %s4180_s4 = inlined_call_operand.hbm [shape: f32[1,768], index: 4, kind: input, shape index: {}]   ;;  %s4181_s5 = inlined_call_operand.hbm [shape: bf16[32,768], index: 5, kind: output, shape index: {}]  }
   0x1   :  { %11 = vsyncpa [#allocation6], 0 }
   0x2   :  { %12 = vsyncpa [#allocation9], 0 }
   0x3   :  { %13 = vsyncpa [#allocation4], 0  ;;  %s3638_s18 = smov [#allocation5]  }
   0x4   :  { %s31_s19 = sshll.u32 %s3638_s18, 4  ;;  %s32_s19 = int_to_ptr.vmem [resolvable:$true] %s31_s19 }
   0x5   :  { %s3518_s20 = scalar_lea.vmem %s32_s19, 36864  ;;  %p3523_p1 = scmp.lt.s32.totalorder %s32_s19, %s32_s19 }
   0x6   :  { %p3519_p0 = scmp.ne.s32.totalorder %s32_s19, %s3518_s20  ;;  %p3524_p2 = scmp.lt.s32.totalorder %s3518_s20, %s3518_s20 }
   0x8   :  { %p3525_p3 = por %p3524_p2, %p3523_p1 }
   0xa   :  { %p3526_p4 = pnand %p3525_p3, %p3519_p0 }
   0xc   :  { %3529 = shalt.err (!%p3526_p4)
}
   0xd   :  { %s3639_s21 = smov 384   ;;  %s3640_s22 = smov 24  }
   0xe   :  { %37 = dma.hbm_to_vmem [thread:$0]  %s4177_s1, 36864, %s32_s19, [#allocation6], %s3639_s21, %s3639_s21, %s3640_s22  }
   0xf   :  { %s3641_s25 = smov [#allocation8]   ;;  %s3642_s27 = smov [#allocation2]  }
  0x10   :  { %s54_s26 = sshll.u32 %s3641_s25, 4  ;;  %s19_s28 = sshll.u32 %s3642_s27, 4  ;;  %s55_s26 = int_to_ptr.vmem [resolvable:$true] %s54_s26  ;;  %s20_s28 = int_to_ptr.vmem [resolvable:$true] %s19_s28 }
  0x11   :  { %s3538_s29 = scalar_lea.vmem %s55_s26, 96  ;;  %p3543_p6 = scmp.lt.s32.totalorder %s55_s26, %s55_s26 }
  0x12   :  { %p3539_p5 = scmp.ne.s32.totalorder %s55_s26, %s3538_s29  ;;  %p3544_p7 = scmp.lt.s32.totalorder %s3538_s29, %s3538_s29 }
  0x14   :  { %p3545_p8 = por %p3544_p7, %p3543_p6 }
  0x16   :  { %p3546_p9 = pnand %p3545_p8, %p3539_p5 }
  0x18   :  { %3549 = shalt.err (!%p3546_p9)
}
  0x19   :  { %57 = dma.hbm_to_vmem [thread:$0]  %s4179_s3, 96, %s55_s26, [#allocation9]  }
  0x1a   :  { %s3558_s7 = scalar_lea.vmem %s20_s28, 3072  ;;  %p3563_p11 = scmp.lt.s32.totalorder %s20_s28, %s20_s28 }
  0x1b   :  { %p3559_p10 = scmp.ne.s32.totalorder %s20_s28, %s3558_s7  ;;  %p3564_p12 = scmp.lt.s32.totalorder %s3558_s7, %s3558_s7 }
  0x1d   :  { %p3565_p13 = por %p3564_p12, %p3563_p11 }
  0x1f   :  { %p3566_p0 = pnand %p3565_p13, %p3559_p10 }
  0x21   :  { %3569 = shalt.err (!%p3566_p0)
}
  0x22   :  { %s3643_s1 = smov 768   ;;  %s3644_s8 = smov 48  }
  0x23   :  { %25 = dma.hbm_to_vmem [thread:$0]  %s4176_s0, 3072, %s20_s28, [#allocation3], %s3643_s1, %s3643_s1, %s3644_s8  }
  0x24   :  { %s3645_s11 = smov [#allocation7]   ;;  %s3646_s13 = smov [#allocation10]  }
  0x25   :  { %s44_s12 = sshll.u32 %s3645_s11, 4  ;;  %s64_s14 = sshll.u32 %s3646_s13, 4  ;;  %s45_s12 = int_to_ptr.vmem [resolvable:$true] %s44_s12  ;;  %s65_s14 = int_to_ptr.vmem [resolvable:$true] %s64_s14 }
  0x26   :  { %s3578_s3 = scalar_lea.vmem %s45_s12, 96  ;;  %p3583_p2 = scmp.lt.s32.totalorder %s45_s12, %s45_s12 }
  0x27   :  { %p3579_p1 = scmp.ne.s32.totalorder %s45_s12, %s3578_s3  ;;  %p3584_p3 = scmp.lt.s32.totalorder %s3578_s3, %s3578_s3 }
  0x29   :  { %p3585_p4 = por %p3584_p3, %p3583_p2 }
  0x2b   :  { %p3586_p5 = pnand %p3585_p4, %p3579_p1 }
  0x2d   :  { %3589 = shalt.err (!%p3586_p5)
}
  0x2e   :  { %47 = dma.hbm_to_vmem [thread:$0]  %s4178_s2, 96, %s45_s12, [#allocation6]  }
  0x2f   :  { %s3598_s17 = scalar_lea.vmem %s65_s14, 96  ;;  %p3603_p7 = scmp.lt.s32.totalorder %s65_s14, %s65_s14 }
  0x30   :  { %p3599_p6 = scmp.ne.s32.totalorder %s65_s14, %s3598_s17  ;;  %p3604_p8 = scmp.lt.s32.totalorder %s3598_s17, %s3598_s17 }
  0x32   :  { %p3605_p9 = por %p3604_p8, %p3603_p7 }
  0x34   :  { %p3606_p10 = pnand %p3605_p9, %p3599_p6 }
  0x36   :  { %3609 = shalt.err (!%p3606_p10)
}
  0x37   :  { %67 = dma.hbm_to_vmem [thread:$0]  %s4180_s4, 96, %s65_s14, [#allocation9]  }
  0x38   :  { %3630 = dma.done.wait [#allocation3], 3072  }
  0x39   :  { %3631 = vsyncadd [#allocation3], 4294964224 }
  0x3a   :  { %3632 = dma.done.wait [#allocation6], 36960  }
  0x3b   :  { %3633 = vsyncadd [#allocation6], 4294930336 }
  0x3c   :  { %3634 = dma.done.wait [#allocation9], 192  }
  0x3d   :  { %3635 = vsyncadd [#allocation9], 4294967104  ;;  %v3070_v0 = vld [vmem:[#allocation5 + $0x154] ss:$24 sps:$4 sm:$0xff]   ;;  %v3074_v2 = vld [vmem:[#allocation5 + $0x150] ss:$24 sps:$4 sm:$0xff]  }
  0x3e   :  { %v3072_v1 = vld [vmem:[#allocation5 + $0x454] ss:$24 sps:$4 sm:$0xff]   ;;  %1879 = vmatprep.subr.bf16.mxu0 %v3070_v0  ;;  %v3075_v3 = vld [vmem:[#allocation5 + $0x450] ss:$24 sps:$4 sm:$0xff]   ;;  %v3076_v4 = vld [vmem:[#allocation5 + $0x124] ss:$24 sps:$4 sm:$0xff]  }
  0x3f   :  { %1932 = vmatprep.subr.bf16.mxu1 %v3072_v1  ;;  %1880 = vmatpush1.bf16.msra.mxu0 %v3074_v2  ;;  %v3078_v5 = vld [vmem:[#allocation5 + $0x424] ss:$24 sps:$4 sm:$0xff]   ;;  %v3080_v6 = vld [vmem:[#allocation5 + $0x120] ss:$24 sps:$4 sm:$0xff]   ;;  %v3082_v8 = vld [vmem:[#allocation5 + $0xf4] ss:$24 sps:$4 sm:$0xff]  }
  0x40   :  { %1933 = vmatpush1.bf16.msra.mxu1 %v3075_v3  ;;  %1881 = vmatprep.subr.bf16.mxu0 %v3076_v4  ;;  %v3081_v7 = vld [vmem:[#allocation5 + $0x420] ss:$24 sps:$4 sm:$0xff]   ;;  %v3084_v9 = vld [vmem:[#allocation5 + $0x3f4] ss:$24 sps:$4 sm:$0xff]   ;;  %v3086_v10 = vld [vmem:[#allocation5 + $0xf0] ss:$24 sps:$4 sm:$0xff]  }
  0x41   :  { %1934 = vmatprep.subr.bf16.mxu1 %v3078_v5  ;;  %v3087_v11 = vld [vmem:[#allocation5 + $0x3f0] ss:$24 sps:$4 sm:$0xff]   ;;  %v3088_v12 = vld [vmem:[#allocation5 + $0xc4] ss:$24 sps:$4 sm:$0xff]   ;;  %v3092_v14 = vld [vmem:[#allocation5 + $0xc0] ss:$24 sps:$4 sm:$0xff]  }
  0x42   :  { %v3090_v13 = vld [vmem:[#allocation5 + $0x3c4] ss:$24 sps:$4 sm:$0xff]   ;;  %v3093_v15 = vld [vmem:[#allocation5 + $0x3c0] ss:$24 sps:$4 sm:$0xff]   ;;  %v3094_v16 = vld [vmem:[#allocation5 + $0x94] ss:$24 sps:$4 sm:$0xff]  }
  0x43   :  { %1882 = vmatpush1.bf16.msra.mxu0 %v3080_v6  ;;  %v3096_v17 = vld [vmem:[#allocation5 + $0x394] ss:$24 sps:$4 sm:$0xff]   ;;  %v3098_v18 = vld [vmem:[#allocation5 + $0x90] ss:$24 sps:$4 sm:$0xff]   ;;  %v3100_v20 = vld [vmem:[#allocation5 + $0x64] ss:$24 sps:$4 sm:$0xff]  }
  0x44   :  { %1935 = vmatpush1.bf16.msra.mxu1 %v3081_v7  ;;  %1883 = vmatprep.subr.bf16.mxu0 %v3082_v8  ;;  %v3099_v19 = vld [vmem:[#allocation5 + $0x390] ss:$24 sps:$4 sm:$0xff]   ;;  %v3102_v21 = vld [vmem:[#allocation5 + $0x364] ss:$24 sps:$4 sm:$0xff]   ;;  %v3104_v22 = vld [vmem:[#allocation5 + $0x60] ss:$24 sps:$4 sm:$0xff]  }
  0x45   :  { %1936 = vmatprep.subr.bf16.mxu1 %v3084_v9  ;;  %v3105_v23 = vld [vmem:[#allocation5 + $0x360] ss:$24 sps:$4 sm:$0xff]   ;;  %v3106_v24 = vld [vmem:[#allocation5 + $0x34] ss:$24 sps:$4 sm:$0xff]   ;;  %v3110_v26 = vld [vmem:[#allocation5 + $0x30] ss:$24 sps:$4 sm:$0xff]  }
  0x46   :  { %v3108_v25 = vld [vmem:[#allocation5 + $0x334] ss:$24 sps:$4 sm:$0xff]   ;;  %v3111_v27 = vld [vmem:[#allocation5 + $0x330] ss:$24 sps:$4 sm:$0xff]   ;;  %v3112_v28 = vld [vmem:[#allocation5 + $0x4] ss:$24 sps:$4 sm:$0xff]  }
  0x47   :  { %1884 = vmatpush1.bf16.msra.mxu0 %v3086_v10  ;;  %v3114_v29 = vld [vmem:[#allocation5 + $0x304] ss:$24 sps:$4 sm:$0xff]   ;;  %v3116_v30 = vld [vmem:[#allocation5] ss:$24 sps:$4 sm:$0xff]   ;;  %v3118_v32 = vld [vmem:[#allocation5 + $0x2d4] ss:$24 sps:$4 sm:$0xff]  }
  0x48   :  { %1937 = vmatpush1.bf16.msra.mxu1 %v3087_v11  ;;  %1885 = vmatprep.subr.bf16.mxu0 %v3088_v12  ;;  %v3117_v31 = vld [vmem:[#allocation5 + $0x300] ss:$24 sps:$4 sm:$0xff]   ;;  %v3120_v33 = vld [vmem:[#allocation5 + $0x5d4] ss:$24 sps:$4 sm:$0xff]   ;;  %v3122_v34 = vld [vmem:[#allocation5 + $0x2d0] ss:$24 sps:$4 sm:$0xff]  }
  0x49   :  { %1938 = vmatprep.subr.bf16.mxu1 %v3090_v13  ;;  %v3123_v35 = vld [vmem:[#allocation5 + $0x5d0] ss:$24 sps:$4 sm:$0xff]   ;;  %v3124_v36 = vld [vmem:[#allocation5 + $0x2a4] ss:$24 sps:$4 sm:$0xff]   ;;  %v3128_v38 = vld [vmem:[#allocation5 + $0x2a0] ss:$24 sps:$4 sm:$0xff]  }
  0x4a   :  { %v3126_v37 = vld [vmem:[#allocation5 + $0x5a4] ss:$24 sps:$4 sm:$0xff]   ;;  %v3129_v39 = vld [vmem:[#allocation5 + $0x5a0] ss:$24 sps:$4 sm:$0xff]   ;;  %v3130_v40 = vld [vmem:[#allocation5 + $0x274] ss:$24 sps:$4 sm:$0xff]  }
  0x4b   :  { %1886 = vmatpush1.bf16.msra.mxu0 %v3092_v14  ;;  %v3132_v41 = vld [vmem:[#allocation5 + $0x574] ss:$24 sps:$4 sm:$0xff]   ;;  %v3134_v42 = vld [vmem:[#allocation5 + $0x270] ss:$24 sps:$4 sm:$0xff]   ;;  %v3136_v44 = vld [vmem:[#allocation5 + $0x244] ss:$24 sps:$4 sm:$0xff]  }
  0x4c   :  { %1939 = vmatpush1.bf16.msra.mxu1 %v3093_v15  ;;  %1887 = vmatprep.subr.bf16.mxu0 %v3094_v16  ;;  %v3135_v43 = vld [vmem:[#allocation5 + $0x570] ss:$24 sps:$4 sm:$0xff]   ;;  %v3138_v45 = vld [vmem:[#allocation5 + $0x544] ss:$24 sps:$4 sm:$0xff]   ;;  %v3140_v50 = vld [vmem:[#allocation5 + $0x240] ss:$24 sps:$4 sm:$0xff]  }
  0x4d   :  { %1940 = vmatprep.subr.bf16.mxu1 %v3096_v17  ;;  %v84_v46 = vld [vmem:[#allocation2 + $0x8] sm:$0xff]  ;;  %v90_v47 = vld [vmem:[#allocation2 + $0x38] sm:$0xff]  ;;  %v83_v6 = vld [vmem:[#allocation2] sm:$0xff]  ;;  %s3647_s2 = smov [#allocation11]  }
  0x4e   :  { %v86_v48 = vld [vmem:[#allocation2 + $0x18] sm:$0xff]  ;;  %v92_v49 = vld [vmem:[#allocation2 + $0x48] sm:$0xff]  ;;  %v3696_v53 = vpack.c.bf16 %v90_v47, %v84_v46  ;;  %v89_v7 = vld [vmem:[#allocation2 + $0x30] sm:$0xff]  ;;  %s2702_s4 = sshll.u32 %s3647_s2, 4  ;;  %s2703_s4 = int_to_ptr.vmem [resolvable:$true] %s2702_s4 }
  0x4f   :  { %1888 = vmatpush1.bf16.msra.mxu0 %v3098_v18  ;;  %v3141_v51 = vld [vmem:[#allocation5 + $0x540] ss:$24 sps:$4 sm:$0xff]   ;;  %v3142_v52 = vld [vmem:[#allocation5 + $0x214] ss:$24 sps:$4 sm:$0xff]   ;;  %v3698_v54 = vpack.c.bf16 %v92_v49, %v86_v48  ;;  %v3146_v56 = vld [vmem:[#allocation5 + $0x210] ss:$24 sps:$4 sm:$0xff]   ;;  %v3702_v12 = vpack.c.bf16 %v89_v7, %v83_v6  ;;  %p3615_p12 = scmp.lt.s32.totalorder %s2703_s4, %s2703_s4 }
  0x50   :  { %1941 = vmatpush1.bf16.msra.mxu1 %v3099_v19  ;;  %1889 = vmatprep.subr.bf16.mxu0 %v3100_v20  ;;  %v3144_v55 = vld [vmem:[#allocation5 + $0x514] ss:$24 sps:$4 sm:$0xff]   ;;  %v3147_v57 = vld [vmem:[#allocation5 + $0x510] ss:$24 sps:$4 sm:$0xff]   ;;  %v3148_v58 = vld [vmem:[#allocation5 + $0x1e4] ss:$24 sps:$4 sm:$0xff]  }
  0x51   :  { %1942 = vmatprep.subr.bf16.mxu1 %v3102_v21  ;;  %1911 = vmatprep.mubr.bf16.mxu0 %v3696_v53  ;;  %v3150_v59 = vld [vmem:[#allocation5 + $0x4e4] ss:$24 sps:$4 sm:$0xff]   ;;  %v3152_v60 = vld [vmem:[#allocation5 + $0x1e0] ss:$24 sps:$4 sm:$0xff]   ;;  %v3154_v62 = vld [vmem:[#allocation5 + $0x1b4] ss:$24 sps:$4 sm:$0xff]  }
  0x52   :  { %1964 = vmatprep.mubr.bf16.mxu1 %v3698_v54  ;;  %v3153_v61 = vld [vmem:[#allocation5 + $0x4e0] ss:$24 sps:$4 sm:$0xff]   ;;  %v3156_v63 = vld [vmem:[#allocation5 + $0x4b4] ss:$24 sps:$4 sm:$0xff]   ;;  %v3158_v0 = vld [vmem:[#allocation5 + $0x1b0] ss:$24 sps:$4 sm:$0xff]  }
  0x53   :  { %1890 = vmatpush1.bf16.msra.mxu0 %v3104_v22  ;;  %v3159_v1 = vld [vmem:[#allocation5 + $0x4b0] ss:$24 sps:$4 sm:$0xff]   ;;  %v3160_v2 = vld [vmem:[#allocation5 + $0x184] ss:$24 sps:$4 sm:$0xff]   ;;  %v3164_v4 = vld [vmem:[#allocation5 + $0x180] ss:$24 sps:$4 sm:$0xff]  }
  0x54   :  { %1943 = vmatpush1.bf16.msra.mxu1 %v3105_v23  ;;  %1891 = vmatprep.subr.bf16.mxu0 %v3106_v24  ;;  %v3162_v3 = vld [vmem:[#allocation5 + $0x484] ss:$24 sps:$4 sm:$0xff]   ;;  %v3165_v5 = vld [vmem:[#allocation5 + $0x480] ss:$24 sps:$4 sm:$0xff]   ;;  %v85_v8 = vld [vmem:[#allocation2 + $0x10] sm:$0xff]  ;;  %s3610_s19 = scalar_lea.vmem %s2703_s4, 1536 }
  0x55   :  { %1944 = vmatprep.subr.bf16.mxu1 %v3108_v25  ;;  %v91_v9 = vld [vmem:[#allocation2 + $0x40] sm:$0xff]  ;;  %v3168_v10 = vld [vmem:[#allocation5 + $0x754] ss:$24 sps:$4 sm:$0xff]   ;;  %v3166_v14 = vld [vmem:[#allocation5 + $0x750] ss:$24 sps:$4 sm:$0xff]   ;;  %p3611_p11 = scmp.ne.s32.totalorder %s2703_s4, %s3610_s19  ;;  %p3616_p13 = scmp.lt.s32.totalorder %s3610_s19, %s3610_s19 }
  0x56   :  { %v3171_v11 = vld [vmem:[#allocation5 + $0x15c] ss:$24 sps:$4 sm:$0xff]   ;;  %v3704_v13 = vpack.c.bf16 %v91_v9, %v85_v8  ;;  %v3169_v15 = vld [vmem:[#allocation5 + $0x158] ss:$24 sps:$4 sm:$0xff]   ;;  %v3177_v17 = vld [vmem:[#allocation5 + $0x12c] ss:$24 sps:$4 sm:$0xff]  }
  0x57   :  { %1892 = vmatpush1.bf16.msra.mxu0 %v3110_v26  ;;  %v3174_v16 = vld [vmem:[#allocation5 + $0x724] ss:$24 sps:$4 sm:$0xff]   ;;  %v3172_v18 = vld [vmem:[#allocation5 + $0x720] ss:$24 sps:$4 sm:$0xff]   ;;  %v3180_v20 = vld [vmem:[#allocation5 + $0x6f4] ss:$24 sps:$4 sm:$0xff]   ;;  %p3617_p0 = por %p3616_p13, %p3615_p12 }
  0x58   :  { %1945 = vmatpush1.bf16.msra.mxu1 %v3111_v27  ;;  %1893 = vmatprep.subr.bf16.mxu0 %v3112_v28  ;;  %v3175_v19 = vld [vmem:[#allocation5 + $0x128] ss:$24 sps:$4 sm:$0xff]   ;;  %v3183_v21 = vld [vmem:[#allocation5 + $0xfc] ss:$24 sps:$4 sm:$0xff]   ;;  %v3181_v23 = vld [vmem:[#allocation5 + $0xf8] ss:$24 sps:$4 sm:$0xff]  }
  0x59   :  { %1946 = vmatprep.subr.bf16.mxu1 %v3114_v29  ;;  %v3178_v22 = vld [vmem:[#allocation5 + $0x6f0] ss:$24 sps:$4 sm:$0xff]   ;;  %v3186_v24 = vld [vmem:[#allocation5 + $0x6c4] ss:$24 sps:$4 sm:$0xff]   ;;  %v3184_v26 = vld [vmem:[#allocation5 + $0x6c0] ss:$24 sps:$4 sm:$0xff]   ;;  %p3618_p1 = pnand %p3617_p0, %p3611_p11 }
  0x5a   :  { %v3189_v25 = vld [vmem:[#allocation5 + $0xcc] ss:$24 sps:$4 sm:$0xff]   ;;  %v3187_v27 = vld [vmem:[#allocation5 + $0xc8] ss:$24 sps:$4 sm:$0xff]   ;;  %v3195_v29 = vld [vmem:[#allocation5 + $0x9c] ss:$24 sps:$4 sm:$0xff]  }
  0x5b   :  { %1894 = vmatpush1.bf16.msra.mxu0 %v3116_v30  ;;  %v3192_v28 = vld [vmem:[#allocation5 + $0x694] ss:$24 sps:$4 sm:$0xff]   ;;  %v3190_v30 = vld [vmem:[#allocation5 + $0x690] ss:$24 sps:$4 sm:$0xff]   ;;  %v103_v48 = vld [vmem:[#allocation2 + $0xa0] sm:$0xff] }
  0x5c   :  { %1947 = vmatpush1.bf16.msra.mxu1 %v3117_v31  ;;  %1895 = vmatprep.subr.bf16.mxu0 %v3118_v32  ;;  %v3193_v31 = vld [vmem:[#allocation5 + $0x98] ss:$24 sps:$4 sm:$0xff]   ;;  %v3198_v32 = vld [vmem:[#allocation5 + $0x664] ss:$24 sps:$4 sm:$0xff]  }
  0x5d   :  { %1948 = vmatprep.subr.bf16.mxu1 %v3120_v33  ;;  %v3201_v33 = vld [vmem:[#allocation5 + $0x6c] ss:$24 sps:$4 sm:$0xff]   ;;  %v3207_v46 = vld [vmem:[#allocation5 + $0x3c] ss:$24 sps:$4 sm:$0xff]   ;;  %v3226_v7 = vld [vmem:[#allocation5 + $0x870] ss:$24 sps:$4 sm:$0xff]  }
  0x5e   :  { %v97_v47 = vld [vmem:[#allocation2 + $0x70] sm:$0xff]  ;;  %v3234_v9 = vld [vmem:[#allocation5 + $0x844] ss:$24 sps:$4 sm:$0xff]  }
  0x5f   :  { %1896 = vmatpush2.bf16.msra.mxu0 %v3122_v34  ;;  %v96_v34 = vld [vmem:[#allocation2 + $0x68] sm:$0xff]  ;;  %v3717_v49 = vpack.c.bf16 %v103_v48, %v97_v47  ;;  %v3231_v6 = vld [vmem:[#allocation5 + $0x27c] ss:$24 sps:$4 sm:$0xff]   ;;  %v3229_v8 = vld [vmem:[#allocation5 + $0x278] ss:$24 sps:$4 sm:$0xff]  }
  0x60   :  { %1949 = vmatpush2.bf16.msra.mxu1 %v3123_v35  ;;  %1897 = vmatprep.subr.bf16.mxu0 %v3124_v36  ;;  %v102_v35 = vld [vmem:[#allocation2 + $0x98] sm:$0xff]  ;;  %v95_v36 = vld [vmem:[#allocation2 + $0x60] sm:$0xff] }
  0x61   :  { %1950 = vmatprep.subr.bf16.mxu1 %v3126_v37  ;;  %v3708_v37 = vpack.c.bf16 %v102_v35, %v96_v34  ;;  %v3267_v34 = vld [vmem:[#allocation5 + $0x75c] ss:$24 sps:$4 sm:$0xff]   ;;  %v3262_v35 = vld [vmem:[#allocation5 + $0x458] ss:$24 sps:$4 sm:$0xff]   ;;  %v99_v48 = vld [vmem:[#allocation2 + $0x80] sm:$0xff] }
  0x63   :  { %1898 = vmatpush2.bf16.msra.mxu0 %v3128_v38  ;;  %v101_v38 = vld [vmem:[#allocation2 + $0x90] sm:$0xff] }
  0x64   :  { %1951 = vmatpush2.bf16.msra.mxu1 %v3129_v39  ;;  %1899 = vmatprep.subr.bf16.mxu0 %v3130_v40  ;;  %v98_v39 = vld [vmem:[#allocation2 + $0x78] sm:$0xff]  ;;  %v104_v40 = vld [vmem:[#allocation2 + $0xa8] sm:$0xff] }
  0x65   :  { %1952 = vmatprep.subr.bf16.mxu1 %v3132_v41  ;;  %v3196_v41 = vld [vmem:[#allocation5 + $0x660] ss:$24 sps:$4 sm:$0xff]  }
  0x67   :  { %1900 = vmatpush2.bf16.msra.mxu0 %v3134_v42  ;;  %v3710_v42 = vpack.c.bf16 %v101_v38, %v95_v36  ;;  %v3265_v36 = vld [vmem:[#allocation5 + $0x758] ss:$24 sps:$4 sm:$0xff]  }
  0x68   :  { %1953 = vmatpush2.bf16.msra.mxu1 %v3135_v43  ;;  %1901 = vmatprep.subr.bf16.mxu0 %v3136_v44  ;;  %v3712_v43 = vpack.c.bf16 %v104_v40, %v98_v39  ;;  %v3199_v44 = vld [vmem:[#allocation5 + $0x68] ss:$24 sps:$4 sm:$0xff]   ;;  %v106_v40 = vld [vmem:[#allocation2 + $0xb8] sm:$0xff] }
  0x69   :  { %1954 = vmatprep.subr.bf16.mxu1 %v3138_v45  ;;  %v3204_v45 = vld [vmem:[#allocation5 + $0x634] ss:$24 sps:$4 sm:$0xff]  }
  0x6a   :  { %v100_v39 = vld [vmem:[#allocation2 + $0x88] sm:$0xff] }
  0x6b   :  { %1902 = vmatpush2.bf16.msra.mxu0 %v3140_v50  ;;  %v3202_v50 = vld [vmem:[#allocation5 + $0x630] ss:$24 sps:$4 sm:$0xff]   ;;  %v3726_v47 = vpack.c.bf16 %v106_v40, %v100_v39  ;;  %v3342_v39 = vld [vmem:[#allocation5 + $0x4ec] ss:$24 sps:$4 sm:$0xff]  }
  0x6c   :  { %1955 = vmatpush2.bf16.msra.mxu1 %v3141_v51  ;;  %1903 = vmatprep.subr.bf16.mxu0 %v3142_v52  ;;  %v3205_v51 = vld [vmem:[#allocation5 + $0x38] ss:$24 sps:$4 sm:$0xff]   ;;  %v3210_v52 = vld [vmem:[#allocation5 + $0x604] ss:$24 sps:$4 sm:$0xff]  }
  0x6d   :  { %1956 = vmatprep.subr.bf16.mxu1 %v3144_v55  ;;  %v3213_v55 = vld [vmem:[#allocation5 + $0xc] ss:$24 sps:$4 sm:$0xff]  }
  0x6e   :  { %v3345_v40 = vld [vmem:[#allocation5 + $0x7ec] ss:$24 sps:$4 sm:$0xff]  }
  0x6f   :  { %1904 = vmatpush2.bf16.msra.mxu0 %v3146_v56  ;;  %v88_v56 = vld [vmem:[#allocation2 + $0x28] sm:$0xff] }
  0x70   :  { %1957 = vmatpush2.bf16.msra.mxu1 %v3147_v57  ;;  %1905 = vmatprep.subr.bf16.mxu0 %v3148_v58  ;;  %v3208_v57 = vld [vmem:[#allocation5 + $0x600] ss:$24 sps:$4 sm:$0xff]  }
  0x71   :  { %1958 = vmatprep.subr.bf16.mxu1 %v3150_v59  ;;  %v3211_v58 = vld [vmem:[#allocation5 + $0x8] ss:$24 sps:$4 sm:$0xff]   ;;  %v94_v59 = vld [vmem:[#allocation2 + $0x58] sm:$0xff] }
  0x73   :  { %1906 = vmatpush2.bf16.msra.mxu0 %v3152_v60  ;;  %v3216_v60 = vld [vmem:[#allocation5 + $0x8d4] ss:$24 sps:$4 sm:$0xff]  }
  0x74   :  { %1959 = vmatpush2.bf16.msra.mxu1 %v3153_v61  ;;  %1907 = vmatprep.subr.bf16.mxu0 %v3154_v62  ;;  %v3721_v61 = vpack.c.bf16 %v94_v59, %v88_v56  ;;  %v3219_v62 = vld [vmem:[#allocation5 + $0x2dc] ss:$24 sps:$4 sm:$0xff]   ;;  %v3274_v56 = vld [vmem:[#allocation5 + $0x3f8] ss:$24 sps:$4 sm:$0xff]   ;;  %v3285_v59 = vld [vmem:[#allocation5 + $0x6cc] ss:$24 sps:$4 sm:$0xff]  }
  0x75   :  { %1960 = vmatprep.subr.bf16.mxu1 %v3156_v63  ;;  %v3214_v63 = vld [vmem:[#allocation5 + $0x8d0] ss:$24 sps:$4 sm:$0xff]  }
  0x77   :  { %1908 = vmatpush2.bf16.msra.mxu0 %v3158_v0  ;;  %v3217_v0 = vld [vmem:[#allocation5 + $0x2d8] ss:$24 sps:$4 sm:$0xff]  }
  0x78   :  { %1961 = vmatpush2.bf16.msra.mxu1 %v3159_v1  ;;  %1909 = vmatprep.subr.bf16.mxu0 %v3160_v2  ;;  %v3222_v1 = vld [vmem:[#allocation5 + $0x8a4] ss:$24 sps:$4 sm:$0xff]  }
  0x79   :  { %1962 = vmatprep.subr.bf16.mxu1 %v3162_v3  ;;  %v3225_v2 = vld [vmem:[#allocation5 + $0x2ac] ss:$24 sps:$4 sm:$0xff]   ;;  %v3220_v3 = vld [vmem:[#allocation5 + $0x8a0] ss:$24 sps:$4 sm:$0xff]  }
  0x7b   :  { %1910 = vmatpush2.bf16.msra.mxu0 %v3164_v4  ;;  %v3223_v4 = vld [vmem:[#allocation5 + $0x2a8] ss:$24 sps:$4 sm:$0xff]  }
  0x7c   :  { %1963 = vmatpush2.bf16.msra.mxu1 %v3165_v5  ;;  %1985 = vmatprep.subr.bf16.mxu0 %v3168_v10  ;;  %v3228_v5 = vld [vmem:[#allocation5 + $0x874] ss:$24 sps:$4 sm:$0xff]  }
  0x7d   :  { %2038 = vmatprep.subr.bf16.mxu1 %v3171_v11  ;;  %v3237_v10 = vld [vmem:[#allocation5 + $0x24c] ss:$24 sps:$4 sm:$0xff]   ;;  %v3232_v11 = vld [vmem:[#allocation5 + $0x840] ss:$24 sps:$4 sm:$0xff]  }
  0x7e   :  { %1912 = vmatmul.mubr.bf16.vlgmr.msra.gmra.mxu0 %v3702_v12 }
  0x7f   :  { %1965 = vmatmul.mubr.bf16.vlgmr.msra.gmra.mxu1 %v3704_v13  ;;  %1986 = vmatpush1.bf16.msra.mxu0 %v3166_v14  ;;  %v3235_v14 = vld [vmem:[#allocation5 + $0x248] ss:$24 sps:$4 sm:$0xff]  }
  0x80   :  { %2039 = vmatpush1.bf16.msra.mxu1 %v3169_v15  ;;  %1987 = vmatprep.subr.bf16.mxu0 %v3174_v16  ;;  %v3240_v15 = vld [vmem:[#allocation5 + $0x814] ss:$24 sps:$4 sm:$0xff]  }
  0x81   :  { %2040 = vmatprep.subr.bf16.mxu1 %v3177_v17  ;;  %1921 = vmatprep.mubr.bf16.mxu0 %v3708_v37  ;;  %v3243_v16 = vld [vmem:[#allocation5 + $0x21c] ss:$24 sps:$4 sm:$0xff]   ;;  %v3238_v17 = vld [vmem:[#allocation5 + $0x810] ss:$24 sps:$4 sm:$0xff]  }
  0x82   :  { %1974 = vmatprep.mubr.bf16.mxu1 %v3712_v43 }
  0x83   :  { %1988 = vmatpush1.bf16.msra.mxu0 %v3172_v18  ;;  %v3241_v18 = vld [vmem:[#allocation5 + $0x218] ss:$24 sps:$4 sm:$0xff]  }
  0x84   :  { %2041 = vmatpush1.bf16.msra.mxu1 %v3175_v19  ;;  %1989 = vmatprep.subr.bf16.mxu0 %v3180_v20  ;;  %v3246_v19 = vld [vmem:[#allocation5 + $0x7e4] ss:$24 sps:$4 sm:$0xff]  }
  0x85   :  { %2042 = vmatprep.subr.bf16.mxu1 %v3183_v21  ;;  %v3249_v20 = vld [vmem:[#allocation5 + $0x1ec] ss:$24 sps:$4 sm:$0xff]   ;;  %v3244_v21 = vld [vmem:[#allocation5 + $0x7e0] ss:$24 sps:$4 sm:$0xff]  }
  0x86   :  { %1922 = vmatmul.mubr.bf16.gmra.mxu0 %v3710_v42 }
  0x87   :  { %1990 = vmatpush1.bf16.msra.mxu0 %v3178_v22  ;;  %1975 = vmatmul.mubr.bf16.gmra.mxu1 %v3717_v49  ;;  %v3247_v22 = vld [vmem:[#allocation5 + $0x1e8] ss:$24 sps:$4 sm:$0xff]  }
  0x88   :  { %2043 = vmatpush1.bf16.msra.mxu1 %v3181_v23  ;;  %1991 = vmatprep.subr.bf16.mxu0 %v3186_v24  ;;  %v3252_v23 = vld [vmem:[#allocation5 + $0x7b4] ss:$24 sps:$4 sm:$0xff]  }
  0x89   :  { %2044 = vmatprep.subr.bf16.mxu1 %v3189_v25  ;;  %2070 = vmatprep.mubr.bf16.mxu1 %v3696_v53  ;;  %v3255_v24 = vld [vmem:[#allocation5 + $0x1bc] ss:$24 sps:$4 sm:$0xff]   ;;  %v3250_v25 = vld [vmem:[#allocation5 + $0x7b0] ss:$24 sps:$4 sm:$0xff]  }
  0x8a   :  { %2017 = vmatprep.mubr.bf16.mxu0 %v3721_v61 }
  0x8b   :  { %1992 = vmatpush1.bf16.msra.mxu0 %v3184_v26  ;;  %v3253_v26 = vld [vmem:[#allocation5 + $0x1b8] ss:$24 sps:$4 sm:$0xff]  }
  0x8c   :  { %2045 = vmatpush1.bf16.msra.mxu1 %v3187_v27  ;;  %1993 = vmatprep.subr.bf16.mxu0 %v3192_v28  ;;  %v3258_v27 = vld [vmem:[#allocation5 + $0x784] ss:$24 sps:$4 sm:$0xff]  }
  0x8d   :  { %2046 = vmatprep.subr.bf16.mxu1 %v3195_v29  ;;  %v3261_v28 = vld [vmem:[#allocation5 + $0x18c] ss:$24 sps:$4 sm:$0xff]   ;;  %v3256_v29 = vld [vmem:[#allocation5 + $0x780] ss:$24 sps:$4 sm:$0xff]  }
  0x8f   :  { %1994 = vmatpush1.bf16.msra.mxu0 %v3190_v30  ;;  %v3259_v30 = vld [vmem:[#allocation5 + $0x188] ss:$24 sps:$4 sm:$0xff]  }
  0x90   :  { %2047 = vmatpush1.bf16.msra.mxu1 %v3193_v31  ;;  %1995 = vmatprep.subr.bf16.mxu0 %v3198_v32  ;;  %v87_v31 = vld [vmem:[#allocation2 + $0x20] sm:$0xff]  ;;  %v93_v32 = vld [vmem:[#allocation2 + $0x50] sm:$0xff] }
  0x91   :  { %2048 = vmatprep.subr.bf16.mxu1 %v3201_v33  ;;  %v3264_v33 = vld [vmem:[#allocation5 + $0x45c] ss:$24 sps:$4 sm:$0xff]   ;;  %v3724_v38 = vpack.c.bf16 %v93_v32, %v87_v31  ;;  %v3328_v31 = vld [vmem:[#allocation5 + $0x548] ss:$24 sps:$4 sm:$0xff]  }
  0x92   :  { %v3331_v32 = vld [vmem:[#allocation5 + $0x848] ss:$24 sps:$4 sm:$0xff]  }
  0x93   :  { %1996 = vmatpush1.bf16.msra.mxu0 %v3196_v41  ;;  %v3270_v41 = vld [vmem:[#allocation5 + $0x42c] ss:$24 sps:$4 sm:$0xff]  }
  0x94   :  { %2049 = vmatpush1.bf16.msra.mxu1 %v3199_v44  ;;  %1997 = vmatprep.subr.bf16.mxu0 %v3204_v45  ;;  %v3273_v44 = vld [vmem:[#allocation5 + $0x72c] ss:$24 sps:$4 sm:$0xff]   ;;  %v3268_v45 = vld [vmem:[#allocation5 + $0x428] ss:$24 sps:$4 sm:$0xff]  }
  0x95   :  { %2050 = vmatprep.subr.bf16.mxu1 %v3207_v46  ;;  %v3271_v46 = vld [vmem:[#allocation5 + $0x728] ss:$24 sps:$4 sm:$0xff]  }
  0x97   :  { %1998 = vmatpush1.bf16.msra.mxu0 %v3202_v50  ;;  %v105_v50 = vld [vmem:[#allocation2 + $0xb0] sm:$0xff] }
  0x98   :  { %2051 = vmatpush1.bf16.msra.mxu1 %v3205_v51  ;;  %1999 = vmatprep.subr.bf16.mxu0 %v3210_v52  ;;  %v3276_v51 = vld [vmem:[#allocation5 + $0x3fc] ss:$24 sps:$4 sm:$0xff]  }
  0x99   :  { %2052 = vmatprep.subr.bf16.mxu1 %v3213_v55  ;;  %v3279_v52 = vld [vmem:[#allocation5 + $0x6fc] ss:$24 sps:$4 sm:$0xff]   ;;  %v3732_v55 = vpack.c.bf16 %v105_v50, %v99_v48  ;;  %v3346_v48 = vld [vmem:[#allocation5 + $0x4b8] ss:$24 sps:$4 sm:$0xff]  }
  0x9a   :  { %v3349_v50 = vld [vmem:[#allocation5 + $0x7b8] ss:$24 sps:$4 sm:$0xff]  }
  0x9b   :  { %2000 = vmatpush1.bf16.msra.mxu0 %v3208_v57  ;;  %v3277_v57 = vld [vmem:[#allocation5 + $0x6f8] ss:$24 sps:$4 sm:$0xff]  }
  0x9c   :  { %2053 = vmatpush1.bf16.msra.mxu1 %v3211_v58  ;;  %2001 = vmatprep.subr.bf16.mxu0 %v3216_v60  ;;  %v3282_v58 = vld [vmem:[#allocation5 + $0x3cc] ss:$24 sps:$4 sm:$0xff]   ;;  %v3280_v60 = vld [vmem:[#allocation5 + $0x3c8] ss:$24 sps:$4 sm:$0xff]  }
  0x9d   :  { %2054 = vmatprep.subr.bf16.mxu1 %v3219_v62  ;;  %v3283_v62 = vld [vmem:[#allocation5 + $0x6c8] ss:$24 sps:$4 sm:$0xff]  }
  0x9f   :  { %2002 = vmatpush2.bf16.msra.mxu0 %v3214_v63  ;;  %v3288_v63 = vld [vmem:[#allocation5 + $0x39c] ss:$24 sps:$4 sm:$0xff]  }
  0xa0   :  { %2055 = vmatpush2.bf16.msra.mxu1 %v3217_v0  ;;  %2003 = vmatprep.subr.bf16.mxu0 %v3222_v1  ;;  %v3291_v0 = vld [vmem:[#allocation5 + $0x69c] ss:$24 sps:$4 sm:$0xff]   ;;  %v3286_v1 = vld [vmem:[#allocation5 + $0x398] ss:$24 sps:$4 sm:$0xff]  }
  0xa1   :  { %2056 = vmatprep.subr.bf16.mxu1 %v3225_v2  ;;  %v3289_v2 = vld [vmem:[#allocation5 + $0x698] ss:$24 sps:$4 sm:$0xff]  }
  0xa3   :  { %2004 = vmatpush2.bf16.msra.mxu0 %v3220_v3  ;;  %v3294_v3 = vld [vmem:[#allocation5 + $0x36c] ss:$24 sps:$4 sm:$0xff]  }
  0xa4   :  { %2057 = vmatpush2.bf16.msra.mxu1 %v3223_v4  ;;  %2005 = vmatprep.subr.bf16.mxu0 %v3228_v5  ;;  %v3297_v4 = vld [vmem:[#allocation5 + $0x66c] ss:$24 sps:$4 sm:$0xff]   ;;  %v3292_v5 = vld [vmem:[#allocation5 + $0x368] ss:$24 sps:$4 sm:$0xff]  }
  0xa5   :  { %2058 = vmatprep.subr.bf16.mxu1 %v3231_v6  ;;  %v3295_v6 = vld [vmem:[#allocation5 + $0x668] ss:$24 sps:$4 sm:$0xff]  }
  0xa7   :  { %2006 = vmatpush2.bf16.msra.mxu0 %v3226_v7  ;;  %v3300_v7 = vld [vmem:[#allocation5 + $0x33c] ss:$24 sps:$4 sm:$0xff]  }
  0xa8   :  { %2059 = vmatpush2.bf16.msra.mxu1 %v3229_v8  ;;  %2007 = vmatprep.subr.bf16.mxu0 %v3234_v9  ;;  %v3303_v8 = vld [vmem:[#allocation5 + $0x63c] ss:$24 sps:$4 sm:$0xff]   ;;  %v3298_v9 = vld [vmem:[#allocation5 + $0x338] ss:$24 sps:$4 sm:$0xff]  }
  0xa9   :  { %2060 = vmatprep.subr.bf16.mxu1 %v3237_v10  ;;  %v3301_v10 = vld [vmem:[#allocation5 + $0x638] ss:$24 sps:$4 sm:$0xff]  }
  0xab   :  { %2008 = vmatpush2.bf16.msra.mxu0 %v3232_v11  ;;  %v3306_v11 = vld [vmem:[#allocation5 + $0x30c] ss:$24 sps:$4 sm:$0xff]  }
  0xac   :  { %2061 = vmatpush2.bf16.msra.mxu1 %v3235_v14  ;;  %2009 = vmatprep.subr.bf16.mxu0 %v3240_v15  ;;  %v3309_v14 = vld [vmem:[#allocation5 + $0x60c] ss:$24 sps:$4 sm:$0xff]   ;;  %v3304_v15 = vld [vmem:[#allocation5 + $0x308] ss:$24 sps:$4 sm:$0xff]  }
  0xad   :  { %2062 = vmatprep.subr.bf16.mxu1 %v3243_v16  ;;  %v3307_v16 = vld [vmem:[#allocation5 + $0x608] ss:$24 sps:$4 sm:$0xff]  }
  0xaf   :  { %2010 = vmatpush2.bf16.msra.mxu0 %v3238_v17  ;;  %v3312_v17 = vld [vmem:[#allocation5 + $0x5dc] ss:$24 sps:$4 sm:$0xff]  }
  0xb0   :  { %2063 = vmatpush2.bf16.msra.mxu1 %v3241_v18  ;;  %2011 = vmatprep.subr.bf16.mxu0 %v3246_v19  ;;  %v3315_v18 = vld [vmem:[#allocation5 + $0x8dc] ss:$24 sps:$4 sm:$0xff]   ;;  %v3310_v19 = vld [vmem:[#allocation5 + $0x5d8] ss:$24 sps:$4 sm:$0xff]  }
  0xb1   :  { %2064 = vmatprep.subr.bf16.mxu1 %v3249_v20  ;;  %v3313_v20 = vld [vmem:[#allocation5 + $0x8d8] ss:$24 sps:$4 sm:$0xff]  }
  0xb3   :  { %2012 = vmatpush2.bf16.msra.mxu0 %v3244_v21  ;;  %v3318_v21 = vld [vmem:[#allocation5 + $0x5ac] ss:$24 sps:$4 sm:$0xff]  }
  0xb4   :  { %2065 = vmatpush2.bf16.msra.mxu1 %v3247_v22  ;;  %2013 = vmatprep.subr.bf16.mxu0 %v3252_v23  ;;  %v3321_v22 = vld [vmem:[#allocation5 + $0x8ac] ss:$24 sps:$4 sm:$0xff]   ;;  %v3316_v23 = vld [vmem:[#allocation5 + $0x5a8] ss:$24 sps:$4 sm:$0xff]  }
  0xb5   :  { %2066 = vmatprep.subr.bf16.mxu1 %v3255_v24  ;;  %v3319_v24 = vld [vmem:[#allocation5 + $0x8a8] ss:$24 sps:$4 sm:$0xff]  }
  0xb7   :  { %2014 = vmatpush2.bf16.msra.mxu0 %v3250_v25  ;;  %v3324_v25 = vld [vmem:[#allocation5 + $0x57c] ss:$24 sps:$4 sm:$0xff]  }
  0xb8   :  { %2067 = vmatpush2.bf16.msra.mxu1 %v3253_v26  ;;  %2015 = vmatprep.subr.bf16.mxu0 %v3258_v27  ;;  %v3327_v26 = vld [vmem:[#allocation5 + $0x87c] ss:$24 sps:$4 sm:$0xff]   ;;  %v3322_v27 = vld [vmem:[#allocation5 + $0x578] ss:$24 sps:$4 sm:$0xff]  }
  0xb9   :  { %2068 = vmatprep.subr.bf16.mxu1 %v3261_v28  ;;  %v3325_v28 = vld [vmem:[#allocation5 + $0x878] ss:$24 sps:$4 sm:$0xff]  }
  0xbb   :  { %2016 = vmatpush2.bf16.msra.mxu0 %v3256_v29  ;;  %v3330_v29 = vld [vmem:[#allocation5 + $0x54c] ss:$24 sps:$4 sm:$0xff]  }
  0xbc   :  { %2069 = vmatpush2.bf16.msra.mxu1 %v3259_v30  ;;  %2091 = vmatprep.subr.bf16.mxu0 %v3264_v33  ;;  %v3333_v30 = vld [vmem:[#allocation5 + $0x84c] ss:$24 sps:$4 sm:$0xff]   ;;  %v3336_v33 = vld [vmem:[#allocation5 + $0x51c] ss:$24 sps:$4 sm:$0xff]  }
  0xbd   :  { %2144 = vmatprep.subr.bf16.mxu1 %v3267_v34  ;;  %v3339_v34 = vld [vmem:[#allocation5 + $0x81c] ss:$24 sps:$4 sm:$0xff]  }
  0xbe   :  { %2018 = vmatmul.mubr.bf16.vlgmr.msra.gmra.mxu0 %v3724_v38 }
  0xbf   :  { %2071 = vmatmul.mubr.bf16.vlgmr.msra.gmra.mxu1 %v3702_v12  ;;  %2092 = vmatpush1.bf16.msra.mxu0 %v3262_v35  ;;  %v3334_v35 = vld [vmem:[#allocation5 + $0x518] ss:$24 sps:$4 sm:$0xff]  }
  0xc0   :  { %2145 = vmatpush1.bf16.msra.mxu1 %v3265_v36  ;;  %2093 = vmatprep.subr.bf16.mxu0 %v3270_v41  ;;  %v3337_v36 = vld [vmem:[#allocation5 + $0x818] ss:$24 sps:$4 sm:$0xff]   ;;  %v3340_v41 = vld [vmem:[#allocation5 + $0x4e8] ss:$24 sps:$4 sm:$0xff]  }
  0xc1   :  { %2146 = vmatprep.subr.bf16.mxu1 %v3273_v44  ;;  %2027 = vmatprep.mubr.bf16.mxu0 %v3726_v47  ;;  %v3343_v44 = vld [vmem:[#allocation5 + $0x7e8] ss:$24 sps:$4 sm:$0xff]  }
  0xc2   :  { %2080 = vmatprep.mubr.bf16.mxu1 %v3708_v37 }
  0xc3   :  { %2094 = vmatpush1.bf16.msra.mxu0 %v3268_v45  ;;  %v3348_v45 = vld [vmem:[#allocation5 + $0x4bc] ss:$24 sps:$4 sm:$0xff]  }
  0xc4   :  { %2147 = vmatpush1.bf16.msra.mxu1 %v3271_v46  ;;  %2095 = vmatprep.subr.bf16.mxu0 %v3276_v51  ;;  %v3351_v46 = vld [vmem:[#allocation5 + $0x7bc] ss:$24 sps:$4 sm:$0xff]   ;;  %v3354_v51 = vld [vmem:[#allocation5 + $0x48c] ss:$24 sps:$4 sm:$0xff]  }
  0xc5   :  { %2148 = vmatprep.subr.bf16.mxu1 %v3279_v52  ;;  %v3357_v52 = vld [vmem:[#allocation5 + $0x78c] ss:$24 sps:$4 sm:$0xff]  }
  0xc6   :  { %2028 = vmatmul.mubr.bf16.gmra.mxu0 %v3732_v55 }
  0xc7   :  { %2081 = vmatmul.mubr.bf16.gmra.mxu1 %v3710_v42  ;;  %2096 = vmatpush1.bf16.msra.mxu0 %v3274_v56  ;;  %v3352_v56 = vld [vmem:[#allocation5 + $0x488] ss:$24 sps:$4 sm:$0xff]  }
  0xc8   :  { %2149 = vmatpush1.bf16.msra.mxu1 %v3277_v57  ;;  %2097 = vmatprep.subr.bf16.mxu0 %v3282_v58  ;;  %v3355_v57 = vld [vmem:[#allocation5 + $0x788] ss:$24 sps:$4 sm:$0xff]   ;;  %v3360_v58 = vld [vmem:[#allocation5 + $0x164] ss:$24 sps:$4 sm:$0xff]  }
  0xc9   :  { %2150 = vmatprep.subr.bf16.mxu1 %v3285_v59  ;;  %2123 = vmatprep.mubr.bf16.mxu0 %v3698_v54  ;;  %v3363_v59 = vld [vmem:[#allocation5 + $0x464] ss:$24 sps:$4 sm:$0xff]  }
  0xca   :  { %2176 = vmatprep.mubr.bf16.mxu1 %v3721_v61 }
  0xcb   :  { %2098 = vmatpush1.bf16.msra.mxu0 %v3280_v60  ;;  %v3358_v60 = vld [vmem:[#allocation5 + $0x160] ss:$24 sps:$4 sm:$0xff]  }
  0xcc   :  { %2151 = vmatpush1.bf16.msra.mxu1 %v3283_v62  ;;  %2099 = vmatprep.subr.bf16.mxu0 %v3288_v63  ;;  %v3361_v62 = vld [vmem:[#allocation5 + $0x460] ss:$24 sps:$4 sm:$0xff]   ;;  %v3366_v63 = vld [vmem:[#allocation5 + $0x134] ss:$24 sps:$4 sm:$0xff]  }
  0xcd   :  { %2152 = vmatprep.subr.bf16.mxu1 %v3291_v0  ;;  %v3369_v0 = vld [vmem:[#allocation5 + $0x434] ss:$24 sps:$4 sm:$0xff]  }
  0xcf   :  { %2100 = vmatpush1.bf16.msra.mxu0 %v3286_v1  ;;  %v3364_v1 = vld [vmem:[#allocation5 + $0x130] ss:$24 sps:$4 sm:$0xff]  }
  0xd0   :  { %2153 = vmatpush1.bf16.msra.mxu1 %v3289_v2  ;;  %2101 = vmatprep.subr.bf16.mxu0 %v3294_v3  ;;  %v3367_v2 = vld [vmem:[#allocation5 + $0x430] ss:$24 sps:$4 sm:$0xff]   ;;  %v3372_v3 = vld [vmem:[#allocation5 + $0x104] ss:$24 sps:$4 sm:$0xff]  }
  0xd1   :  { %2154 = vmatprep.subr.bf16.mxu1 %v3297_v4  ;;  %v3375_v4 = vld [vmem:[#allocation5 + $0x404] ss:$24 sps:$4 sm:$0xff]  }
  0xd3   :  { %2102 = vmatpush1.bf16.msra.mxu0 %v3292_v5  ;;  %v3370_v5 = vld [vmem:[#allocation5 + $0x100] ss:$24 sps:$4 sm:$0xff]  }
  0xd4   :  { %2155 = vmatpush1.bf16.msra.mxu1 %v3295_v6  ;;  %2103 = vmatprep.subr.bf16.mxu0 %v3300_v7  ;;  %v3373_v6 = vld [vmem:[#allocation5 + $0x400] ss:$24 sps:$4 sm:$0xff]   ;;  %v3378_v7 = vld [vmem:[#allocation5 + $0xd4] ss:$24 sps:$4 sm:$0xff]  }
  0xd5   :  { %2156 = vmatprep.subr.bf16.mxu1 %v3303_v8  ;;  %v3381_v8 = vld [vmem:[#allocation5 + $0x3d4] ss:$24 sps:$4 sm:$0xff]  }
  0xd7   :  { %2104 = vmatpush1.bf16.msra.mxu0 %v3298_v9  ;;  %v3376_v9 = vld [vmem:[#allocation5 + $0xd0] ss:$24 sps:$4 sm:$0xff]  }
  0xd8   :  { %2157 = vmatpush1.bf16.msra.mxu1 %v3301_v10  ;;  %2105 = vmatprep.subr.bf16.mxu0 %v3306_v11  ;;  %v3379_v10 = vld [vmem:[#allocation5 + $0x3d0] ss:$24 sps:$4 sm:$0xff]   ;;  %v3384_v11 = vld [vmem:[#allocation5 + $0xa4] ss:$24 sps:$4 sm:$0xff]  }
  0xd9   :  { %2158 = vmatprep.subr.bf16.mxu1 %v3309_v14  ;;  %v3387_v14 = vld [vmem:[#allocation5 + $0x3a4] ss:$24 sps:$4 sm:$0xff]  }
  0xdb   :  { %2106 = vmatpush1.bf16.msra.mxu0 %v3304_v15  ;;  %v3382_v15 = vld [vmem:[#allocation5 + $0xa0] ss:$24 sps:$4 sm:$0xff]  }
  0xdc   :  { %2159 = vmatpush1.bf16.msra.mxu1 %v3307_v16  ;;  %2107 = vmatprep.subr.bf16.mxu0 %v3312_v17  ;;  %v3385_v16 = vld [vmem:[#allocation5 + $0x3a0] ss:$24 sps:$4 sm:$0xff]   ;;  %v3390_v17 = vld [vmem:[#allocation5 + $0x74] ss:$24 sps:$4 sm:$0xff]  }
  0xdd   :  { %2160 = vmatprep.subr.bf16.mxu1 %v3315_v18  ;;  %v3393_v18 = vld [vmem:[#allocation5 + $0x374] ss:$24 sps:$4 sm:$0xff]  }
  0xdf   :  { %2108 = vmatpush2.bf16.msra.mxu0 %v3310_v19  ;;  %v3388_v19 = vld [vmem:[#allocation5 + $0x70] ss:$24 sps:$4 sm:$0xff]  }
  0xe0   :  { %2161 = vmatpush2.bf16.msra.mxu1 %v3313_v20  ;;  %2109 = vmatprep.subr.bf16.mxu0 %v3318_v21  ;;  %v3391_v20 = vld [vmem:[#allocation5 + $0x370] ss:$24 sps:$4 sm:$0xff]   ;;  %v3396_v21 = vld [vmem:[#allocation5 + $0x44] ss:$24 sps:$4 sm:$0xff]  }
  0xe1   :  { %2162 = vmatprep.subr.bf16.mxu1 %v3321_v22  ;;  %v3399_v22 = vld [vmem:[#allocation5 + $0x344] ss:$24 sps:$4 sm:$0xff]  }
  0xe3   :  { %2110 = vmatpush2.bf16.msra.mxu0 %v3316_v23  ;;  %v3402_v23 = vld [vmem:[#allocation5 + $0x14] ss:$24 sps:$4 sm:$0xff]  }
  0xe4   :  { %2163 = vmatpush2.bf16.msra.mxu1 %v3319_v24  ;;  %2111 = vmatprep.subr.bf16.mxu0 %v3324_v25  ;;  %v3405_v24 = vld [vmem:[#allocation5 + $0x314] ss:$24 sps:$4 sm:$0xff]   ;;  %v3400_v25 = vld [vmem:[#allocation5 + $0x10] ss:$24 sps:$4 sm:$0xff]  }
  0xe5   :  { %2164 = vmatprep.subr.bf16.mxu1 %v3327_v26  ;;  %v3403_v26 = vld [vmem:[#allocation5 + $0x310] ss:$24 sps:$4 sm:$0xff]  }
  0xe7   :  { %2112 = vmatpush2.bf16.msra.mxu0 %v3322_v27  ;;  %v3408_v27 = vld [vmem:[#allocation5 + $0x2e4] ss:$24 sps:$4 sm:$0xff]  }
  0xe8   :  { %2165 = vmatpush2.bf16.msra.mxu1 %v3325_v28  ;;  %2113 = vmatprep.subr.bf16.mxu0 %v3330_v29  ;;  %v3411_v28 = vld [vmem:[#allocation5 + $0x5e4] ss:$24 sps:$4 sm:$0xff]   ;;  %v3406_v29 = vld [vmem:[#allocation5 + $0x2e0] ss:$24 sps:$4 sm:$0xff]  }
  0xe9   :  { %2166 = vmatprep.subr.bf16.mxu1 %v3333_v30  ;;  %v3409_v30 = vld [vmem:[#allocation5 + $0x5e0] ss:$24 sps:$4 sm:$0xff]  }
  0xeb   :  { %2114 = vmatpush2.bf16.msra.mxu0 %v3328_v31  ;;  %v3414_v31 = vld [vmem:[#allocation5 + $0x2b4] ss:$24 sps:$4 sm:$0xff]  }
  0xec   :  { %2167 = vmatpush2.bf16.msra.mxu1 %v3331_v32  ;;  %2115 = vmatprep.subr.bf16.mxu0 %v3336_v33  ;;  %v3417_v32 = vld [vmem:[#allocation5 + $0x5b4] ss:$24 sps:$4 sm:$0xff]   ;;  %v3412_v33 = vld [vmem:[#allocation5 + $0x2b0] ss:$24 sps:$4 sm:$0xff]  }
  0xed   :  { %2168 = vmatprep.subr.bf16.mxu1 %v3339_v34  ;;  %v3415_v34 = vld [vmem:[#allocation5 + $0x5b0] ss:$24 sps:$4 sm:$0xff]  }
  0xef   :  { %2116 = vmatpush2.bf16.msra.mxu0 %v3334_v35  ;;  %v3420_v35 = vld [vmem:[#allocation5 + $0x284] ss:$24 sps:$4 sm:$0xff]  }
  0xf0   :  { %2169 = vmatpush2.bf16.msra.mxu1 %v3337_v36  ;;  %2117 = vmatprep.subr.bf16.mxu0 %v3342_v39  ;;  %v3423_v36 = vld [vmem:[#allocation5 + $0x584] ss:$24 sps:$4 sm:$0xff]   ;;  %v3418_v39 = vld [vmem:[#allocation5 + $0x280] ss:$24 sps:$4 sm:$0xff]  }
  0xf1   :  { %2170 = vmatprep.subr.bf16.mxu1 %v3345_v40  ;;  %v3421_v40 = vld [vmem:[#allocation5 + $0x580] ss:$24 sps:$4 sm:$0xff]  }
  0xf3   :  { %2118 = vmatpush2.bf16.msra.mxu0 %v3340_v41  ;;  %v3426_v41 = vld [vmem:[#allocation5 + $0x254] ss:$24 sps:$4 sm:$0xff]  }
  0xf4   :  { %2171 = vmatpush2.bf16.msra.mxu1 %v3343_v44  ;;  %2119 = vmatprep.subr.bf16.mxu0 %v3348_v45  ;;  %v3429_v44 = vld [vmem:[#allocation5 + $0x554] ss:$24 sps:$4 sm:$0xff]   ;;  %v3424_v45 = vld [vmem:[#allocation5 + $0x250] ss:$24 sps:$4 sm:$0xff]  }
  0xf5   :  { %2172 = vmatprep.subr.bf16.mxu1 %v3351_v46  ;;  %v3427_v46 = vld [vmem:[#allocation5 + $0x550] ss:$24 sps:$4 sm:$0xff]  }
  0xf7   :  { %2120 = vmatpush2.bf16.msra.mxu0 %v3346_v48  ;;  %v3432_v48 = vld [vmem:[#allocation5 + $0x224] ss:$24 sps:$4 sm:$0xff]  }
  0xf8   :  { %2173 = vmatpush2.bf16.msra.mxu1 %v3349_v50  ;;  %2121 = vmatprep.subr.bf16.mxu0 %v3354_v51  ;;  %v3435_v50 = vld [vmem:[#allocation5 + $0x524] ss:$24 sps:$4 sm:$0xff]   ;;  %v3430_v51 = vld [vmem:[#allocation5 + $0x220] ss:$24 sps:$4 sm:$0xff]  }
  0xf9   :  { %2174 = vmatprep.subr.bf16.mxu1 %v3357_v52  ;;  %v3433_v52 = vld [vmem:[#allocation5 + $0x520] ss:$24 sps:$4 sm:$0xff]  }
  0xfb   :  { %2122 = vmatpush2.bf16.msra.mxu0 %v3352_v56  ;;  %v3438_v56 = vld [vmem:[#allocation5 + $0x1f4] ss:$24 sps:$4 sm:$0xff]  }
  0xfc   :  { %2175 = vmatpush2.bf16.msra.mxu1 %v3355_v57  ;;  %2197 = vmatprep.subr.bf16.mxu0 %v3360_v58  ;;  %v3441_v57 = vld [vmem:[#allocation5 + $0x4f4] ss:$24 sps:$4 sm:$0xff]   ;;  %v3436_v58 = vld [vmem:[#allocation5 + $0x1f0] ss:$24 sps:$4 sm:$0xff]  }
  0xfd   :  { %2250 = vmatprep.subr.bf16.mxu1 %v3363_v59  ;;  %v3439_v59 = vld [vmem:[#allocation5 + $0x4f0] ss:$24 sps:$4 sm:$0xff]  }
  0xfe   :  { %2124 = vmatmul.mubr.bf16.vlgmr.msra.gmra.mxu0 %v3704_v13 }
  0xff   :  { %2177 = vmatmul.mubr.bf16.vlgmr.msra.gmra.mxu1 %v3724_v38  ;;  %2198 = vmatpush1.bf16.msra.mxu0 %v3358_v60  ;;  %v3444_v60 = vld [vmem:[#allocation5 + $0x1c4] ss:$24 sps:$4 sm:$0xff]  }
 0x100   :  { %2251 = vmatpush1.bf16.msra.mxu1 %v3361_v62  ;;  %2199 = vmatprep.subr.bf16.mxu0 %v3366_v63  ;;  %v3447_v62 = vld [vmem:[#allocation5 + $0x4c4] ss:$24 sps:$4 sm:$0xff]   ;;  %v3442_v63 = vld [vmem:[#allocation5 + $0x1c0] ss:$24 sps:$4 sm:$0xff]  }
 0x101   :  { %2252 = vmatprep.subr.bf16.mxu1 %v3369_v0  ;;  %2133 = vmatprep.mubr.bf16.mxu0 %v3712_v43  ;;  %v3445_v0 = vld [vmem:[#allocation5 + $0x4c0] ss:$24 sps:$4 sm:$0xff]  }
 0x102   :  { %2186 = vmatprep.mubr.bf16.mxu1 %v3726_v47 }
 0x103   :  { %2200 = vmatpush1.bf16.msra.mxu0 %v3364_v1  ;;  %v3450_v1 = vld [vmem:[#allocation5 + $0x194] ss:$24 sps:$4 sm:$0xff]  }
 0x104   :  { %2253 = vmatpush1.bf16.msra.mxu1 %v3367_v2  ;;  %2201 = vmatprep.subr.bf16.mxu0 %v3372_v3  ;;  %v3453_v2 = vld [vmem:[#allocation5 + $0x494] ss:$24 sps:$4 sm:$0xff]   ;;  %v3448_v3 = vld [vmem:[#allocation5 + $0x190] ss:$24 sps:$4 sm:$0xff]  }
 0x105   :  { %2254 = vmatprep.subr.bf16.mxu1 %v3375_v4  ;;  %v3451_v4 = vld [vmem:[#allocation5 + $0x490] ss:$24 sps:$4 sm:$0xff]  }
 0x106   :  { %2134 = vmatmul.mubr.bf16.gmra.mxu0 %v3717_v49 }
 0x107   :  { %2187 = vmatmul.mubr.bf16.gmra.mxu1 %v3732_v55  ;;  %2202 = vmatpush1.bf16.msra.mxu0 %v3370_v5  ;;  %v3456_v5 = vld [vmem:[#allocation5 + $0x764] ss:$24 sps:$4 sm:$0xff]  }
 0x108   :  { %2255 = vmatpush1.bf16.msra.mxu1 %v3373_v6  ;;  %2203 = vmatprep.subr.bf16.mxu0 %v3378_v7  ;;  %v3454_v6 = vld [vmem:[#allocation5 + $0x760] ss:$24 sps:$4 sm:$0xff]   ;;  %v3459_v7 = vld [vmem:[#allocation5 + $0x734] ss:$24 sps:$4 sm:$0xff]  }
 0x109   :  { %2256 = vmatprep.subr.bf16.mxu1 %v3381_v8  ;;  %2229 = vmatprep.mubr.bf16.mxu0 %v3696_v53  ;;  %v3394_v53 = vld [vmem:[#allocation5 + $0x40] ss:$24 sps:$4 sm:$0xff]   ;;  %v3457_v8 = vld [vmem:[#allocation5 + $0x730] ss:$24 sps:$4 sm:$0xff]  }
 0x10a   :  { %2282 = vmatprep.mubr.bf16.mxu1 %v3698_v54  ;;  %v3397_v54 = vld [vmem:[#allocation5 + $0x340] ss:$24 sps:$4 sm:$0xff]  }
 0x10b   :  { %2204 = vmatpush1.bf16.msra.mxu0 %v3376_v9  ;;  %v3462_v9 = vld [vmem:[#allocation5 + $0x704] ss:$24 sps:$4 sm:$0xff]  }
 0x10c   :  { %2257 = vmatpush1.bf16.msra.mxu1 %v3379_v10  ;;  %2205 = vmatprep.subr.bf16.mxu0 %v3384_v11  ;;  %v3460_v10 = vld [vmem:[#allocation5 + $0x700] ss:$24 sps:$4 sm:$0xff]   ;;  %v3465_v11 = vld [vmem:[#allocation5 + $0x6d4] ss:$24 sps:$4 sm:$0xff]  }
 0x10d   :  { %2258 = vmatprep.subr.bf16.mxu1 %v3387_v14  ;;  %v3472_v14 = vld [vmem:[#allocation5 + $0x640] ss:$24 sps:$4 sm:$0xff]  }
 0x10f   :  { %2206 = vmatpush1.bf16.msra.mxu0 %v3382_v15  ;;  %v3480_v15 = vld [vmem:[#allocation5 + $0x8e4] ss:$24 sps:$4 sm:$0xff]  }
 0x110   :  { %2259 = vmatpush1.bf16.msra.mxu1 %v3385_v16  ;;  %2207 = vmatprep.subr.bf16.mxu0 %v3390_v17  ;;  %v3478_v16 = vld [vmem:[#allocation5 + $0x8e0] ss:$24 sps:$4 sm:$0xff]   ;;  %v3483_v17 = vld [vmem:[#allocation5 + $0x8b4] ss:$24 sps:$4 sm:$0xff]  }
 0x111   :  { %2260 = vmatprep.subr.bf16.mxu1 %v3393_v18  ;;  %v3481_v18 = vld [vmem:[#allocation5 + $0x8b0] ss:$24 sps:$4 sm:$0xff]  }
 0x113   :  { %2208 = vmatpush1.bf16.msra.mxu0 %v3388_v19  ;;  %v3486_v19 = vld [vmem:[#allocation5 + $0x884] ss:$24 sps:$4 sm:$0xff]  }
 0x114   :  { %2261 = vmatpush1.bf16.msra.mxu1 %v3391_v20  ;;  %2209 = vmatprep.subr.bf16.mxu0 %v3396_v21  ;;  %v3484_v20 = vld [vmem:[#allocation5 + $0x880] ss:$24 sps:$4 sm:$0xff]   ;;  %v3489_v21 = vld [vmem:[#allocation5 + $0x854] ss:$24 sps:$4 sm:$0xff]  }
 0x115   :  { %2262 = vmatprep.subr.bf16.mxu1 %v3399_v22  ;;  %v3487_v22 = vld [vmem:[#allocation5 + $0x850] ss:$24 sps:$4 sm:$0xff]  }
 0x117   :  { %2210 = vmatpush1.bf16.msra.mxu0 %v3394_v53  ;;  %v3492_v53 = vld [vmem:[#allocation5 + $0x824] ss:$24 sps:$4 sm:$0xff]  }
 0x118   :  { %2263 = vmatpush1.bf16.msra.mxu1 %v3397_v54  ;;  %2211 = vmatprep.subr.bf16.mxu0 %v3402_v23  ;;  %v3490_v54 = vld [vmem:[#allocation5 + $0x820] ss:$24 sps:$4 sm:$0xff]   ;;  %v3495_v23 = vld [vmem:[#allocation5 + $0x7f4] ss:$24 sps:$4 sm:$0xff]  }
 0x119   :  { %2264 = vmatprep.subr.bf16.mxu1 %v3405_v24  ;;  %v3493_v24 = vld [vmem:[#allocation5 + $0x7f0] ss:$24 sps:$4 sm:$0xff]  }
 0x11b   :  { %2212 = vmatpush1.bf16.msra.mxu0 %v3400_v25  ;;  %v3498_v25 = vld [vmem:[#allocation5 + $0x7c4] ss:$24 sps:$4 sm:$0xff]  }
 0x11c   :  { %2265 = vmatpush1.bf16.msra.mxu1 %v3403_v26  ;;  %2213 = vmatprep.subr.bf16.mxu0 %v3408_v27  ;;  %v3496_v26 = vld [vmem:[#allocation5 + $0x7c0] ss:$24 sps:$4 sm:$0xff]   ;;  %v3501_v27 = vld [vmem:[#allocation5 + $0x794] ss:$24 sps:$4 sm:$0xff]  }
 0x11d   :  { %2266 = vmatprep.subr.bf16.mxu1 %v3411_v28  ;;  %v3499_v28 = vld [vmem:[#allocation5 + $0x790] ss:$24 sps:$4 sm:$0xff]  }
 0x11f   :  { %2214 = vmatpush2.bf16.msra.mxu0 %v3406_v29 }
 0x120   :  { %2267 = vmatpush2.bf16.msra.mxu1 %v3409_v30  ;;  %2215 = vmatprep.subr.bf16.mxu0 %v3414_v31 }
 0x121   :  { %2268 = vmatprep.subr.bf16.mxu1 %v3417_v32 }
 0x123   :  { %2216 = vmatpush2.bf16.msra.mxu0 %v3412_v33 }
 0x124   :  { %2269 = vmatpush2.bf16.msra.mxu1 %v3415_v34  ;;  %2217 = vmatprep.subr.bf16.mxu0 %v3420_v35 }
 0x125   :  { %2270 = vmatprep.subr.bf16.mxu1 %v3423_v36 }
 0x127   :  { %2218 = vmatpush2.bf16.msra.mxu0 %v3418_v39 }
 0x128   :  { %2271 = vmatpush2.bf16.msra.mxu1 %v3421_v40  ;;  %2219 = vmatprep.subr.bf16.mxu0 %v3426_v41 }
 0x129   :  { %2272 = vmatprep.subr.bf16.mxu1 %v3429_v44 }
 0x12b   :  { %2220 = vmatpush2.bf16.msra.mxu0 %v3424_v45 }
 0x12c   :  { %2273 = vmatpush2.bf16.msra.mxu1 %v3427_v46  ;;  %2221 = vmatprep.subr.bf16.mxu0 %v3432_v48 }
 0x12d   :  { %2274 = vmatprep.subr.bf16.mxu1 %v3435_v50 }
 0x12f   :  { %2222 = vmatpush2.bf16.msra.mxu0 %v3430_v51 }
 0x130   :  { %2275 = vmatpush2.bf16.msra.mxu1 %v3433_v52  ;;  %2223 = vmatprep.subr.bf16.mxu0 %v3438_v56 }
 0x131   :  { %2276 = vmatprep.subr.bf16.mxu1 %v3441_v57 }
 0x133   :  { %2224 = vmatpush2.bf16.msra.mxu0 %v3436_v58 }
 0x134   :  { %2277 = vmatpush2.bf16.msra.mxu1 %v3439_v59  ;;  %2225 = vmatprep.subr.bf16.mxu0 %v3444_v60 }
 0x135   :  { %2278 = vmatprep.subr.bf16.mxu1 %v3447_v62 }
 0x137   :  { %2226 = vmatpush2.bf16.msra.mxu0 %v3442_v63 }
 0x138   :  { %2279 = vmatpush2.bf16.msra.mxu1 %v3445_v0  ;;  %2227 = vmatprep.subr.bf16.mxu0 %v3450_v1 }
 0x139   :  { %2280 = vmatprep.subr.bf16.mxu1 %v3453_v2 }
 0x13b   :  { %2228 = vmatpush2.bf16.msra.mxu0 %v3448_v3 }
 0x13c   :  { %2281 = vmatpush2.bf16.msra.mxu1 %v3451_v4  ;;  %2303 = vmatprep.subr.bf16.mxu0 %v3456_v5 }
 0x13d   :  { %3028 = vmatprep.subr.bf16.mxu1 %v3456_v5 }
 0x13e   :  { %2230 = vmatmul.mubr.bf16.vlgmr.msra.gmra.mxu0 %v3702_v12  ;;  %v3463_v12 = vld [vmem:[#allocation5 + $0x6d0] ss:$24 sps:$4 sm:$0xff]   ;;  %v3756_v29 = vpop.f32.mrf.mxu0 }
 0x13f   :  { %2283 = vmatmul.mubr.bf16.vlgmr.msra.gmra.mxu1 %v3704_v13  ;;  %2304 = vmatpush1.bf16.msra.mxu0 %v3454_v6  ;;  %v3468_v13 = vld [vmem:[#allocation5 + $0x6a4] ss:$24 sps:$4 sm:$0xff]   ;;  %v3758_v30 = vpop.f32.mrf.mxu1 }
 0x140   :  { %3044 = vmatpush1.bf16.msra.mxu1 %v3454_v6  ;;  %2305 = vmatprep.subr.bf16.mxu0 %v3459_v7  ;;  %v3760_v31 = vpop.f32.mrf.mxu0 }
 0x141   :  { %3029 = vmatprep.subr.bf16.mxu1 %v3459_v7  ;;  %2239 = vmatprep.mubr.bf16.mxu0 %v3708_v37  ;;  %v3466_v37 = vld [vmem:[#allocation5 + $0x6a0] ss:$24 sps:$4 sm:$0xff]   ;;  %v3762_v32 = vpop.f32.mrf.mxu1 }
 0x142   :  { %2292 = vmatprep.mubr.bf16.mxu1 %v3712_v43  ;;  %v3471_v43 = vld [vmem:[#allocation5 + $0x674] ss:$24 sps:$4 sm:$0xff]   ;;  %v1917_v33 = vpop.f32.mrf.mxu0 }
 0x143   :  { %2306 = vmatpush1.bf16.msra.mxu0 %v3457_v8  ;;  %v3764_v34 = vpop.f32.mrf.mxu1 }
 0x144   :  { %3045 = vmatpush1.bf16.msra.mxu1 %v3457_v8  ;;  %2307 = vmatprep.subr.bf16.mxu0 %v3462_v9  ;;  %v1919_v35 = vpop.f32.mrf.mxu0 }
 0x145   :  { %3030 = vmatprep.subr.bf16.mxu1 %v3462_v9  ;;  %v3766_v39 = vpop.f32.mrf.mxu1 }
 0x146   :  { %2240 = vmatmul.mubr.bf16.gmra.mxu0 %v3710_v42  ;;  %v3469_v42 = vld [vmem:[#allocation5 + $0x670] ss:$24 sps:$4 sm:$0xff]   ;;  %v1923_v36 = vpop.f32.mrf.mxu0 }
 0x147   :  { %2293 = vmatmul.mubr.bf16.gmra.mxu1 %v3717_v49  ;;  %2308 = vmatpush1.bf16.msra.mxu0 %v3460_v10  ;;  %v3474_v49 = vld [vmem:[#allocation5 + $0x644] ss:$24 sps:$4 sm:$0xff]   ;;  %v3768_v40 = vpop.f32.mrf.mxu1 }
 0x148   :  { %3046 = vmatpush1.bf16.msra.mxu1 %v3460_v10  ;;  %2309 = vmatprep.subr.bf16.mxu0 %v3465_v11 }
 0x149   :  { %3031 = vmatprep.subr.bf16.mxu1 %v3465_v11  ;;  %2335 = vmatprep.mubr.bf16.mxu0 %v3721_v61  ;;  %v3477_v61 = vld [vmem:[#allocation5 + $0x614] ss:$24 sps:$4 sm:$0xff]   ;;  %v3770_v41 = vpop.f32.mrf.mxu1 }
 0x14a   :  { %2345 = vmatprep.mubr.bf16.mxu1 %v3726_v47  ;;  %v3475_v47 = vld [vmem:[#allocation5 + $0x610] ss:$24 sps:$4 sm:$0xff]  }
 0x14b   :  { %2310 = vmatpush1.bf16.msra.mxu0 %v3463_v12  ;;  %v3772_v44 = vpop.f32.mrf.mxu1 }
 0x14c   :  { %3047 = vmatpush1.bf16.msra.mxu1 %v3463_v12  ;;  %2311 = vmatprep.subr.bf16.mxu0 %v3468_v13 }
 0x14d   :  { %3032 = vmatprep.subr.bf16.mxu1 %v3468_v13  ;;  %v3776_v48 = vpop.f32.mrf.mxu1 }
 0x14f   :  { %2312 = vmatpush1.bf16.msra.mxu0 %v3466_v37 }
 0x150   :  { %3048 = vmatpush1.bf16.msra.mxu1 %v3466_v37  ;;  %2313 = vmatprep.subr.bf16.mxu0 %v3471_v43 }
 0x151   :  { %3033 = vmatprep.subr.bf16.mxu1 %v3471_v43 }
 0x153   :  { %2314 = vmatpush1.bf16.msra.mxu0 %v3469_v42 }
 0x154   :  { %3049 = vmatpush1.bf16.msra.mxu1 %v3469_v42  ;;  %2315 = vmatprep.subr.bf16.mxu0 %v3474_v49 }
 0x155   :  { %3034 = vmatprep.subr.bf16.mxu1 %v3474_v49  ;;  %v409_v49 = vlaneseq }
 0x157   :  { %2316 = vmatpush1.bf16.msra.mxu0 %v3472_v14 }
 0x158   :  { %3050 = vmatpush1.bf16.msra.mxu1 %v3472_v14  ;;  %2317 = vmatprep.subr.bf16.mxu0 %v3477_v61 }
 0x159   :  { %3035 = vmatprep.subr.bf16.mxu1 %v3477_v61 }
 0x15b   :  { %2318 = vmatpush1.bf16.msra.mxu0 %v3475_v47 }
 0x15c   :  { %3051 = vmatpush1.bf16.msra.mxu1 %v3475_v47  ;;  %2319 = vmatprep.subr.bf16.mxu0 %v3480_v15  ;;  %v410_v47 = vshrl.u32 %v409_v49, 7 }
 0x15d   :  { %3036 = vmatprep.subr.bf16.mxu1 %v3480_v15 }
 0x15f   :  { %2320 = vmatpush2.bf16.msra.mxu0 %v3478_v16 }
 0x160   :  { %3052 = vmatpush2.bf16.msra.mxu1 %v3478_v16  ;;  %2321 = vmatprep.subr.bf16.mxu0 %v3483_v17 }
 0x161   :  { %3037 = vmatprep.subr.bf16.mxu1 %v3483_v17 }
 0x163   :  { %2322 = vmatpush2.bf16.msra.mxu0 %v3481_v18 }
 0x164   :  { %3053 = vmatpush2.bf16.msra.mxu1 %v3481_v18  ;;  %2323 = vmatprep.subr.bf16.mxu0 %v3486_v19 }
 0x165   :  { %3038 = vmatprep.subr.bf16.mxu1 %v3486_v19  ;;  %v3836_v19 = vsub.s32 0, %v410_v47 }
 0x167   :  { %2324 = vmatpush2.bf16.msra.mxu0 %v3484_v20  ;;  %4194 = vst [vmem:[#allocation22_spill] sm:$0xff] %v3836_v19 }
 0x168   :  { %3054 = vmatpush2.bf16.msra.mxu1 %v3484_v20  ;;  %2325 = vmatprep.subr.bf16.mxu0 %v3489_v21  ;;  %v3838_v20 = vsub.s32 1, %v410_v47 }
 0x169   :  { %3039 = vmatprep.subr.bf16.mxu1 %v3489_v21  ;;  %v407_v21 = vld [vmem:[#allocation7] sm:$0x3f] }
 0x16a   :  { %4195 = vst [vmem:[#allocation23_spill] sm:$0xff] %v3838_v20 }
 0x16b   :  { %2326 = vmatpush2.bf16.msra.mxu0 %v3487_v22 }
 0x16c   :  { %3055 = vmatpush2.bf16.msra.mxu1 %v3487_v22  ;;  %2327 = vmatprep.subr.bf16.mxu0 %v3492_v53 }
 0x16d   :  { %3040 = vmatprep.subr.bf16.mxu1 %v3492_v53  ;;  %v3842_v53 = vsub.s32 2, %v410_v47 }
 0x16f   :  { %2328 = vmatpush2.bf16.msra.mxu0 %v3490_v54  ;;  %4197 = vst [vmem:[#allocation25_spill] sm:$0xff] %v3842_v53 }
 0x170   :  { %3056 = vmatpush2.bf16.msra.mxu1 %v3490_v54  ;;  %2329 = vmatprep.subr.bf16.mxu0 %v3495_v23 }
 0x171   :  { %3041 = vmatprep.subr.bf16.mxu1 %v3495_v23  ;;  %v412_v23 = vrot.slane %v407_v21, %v3836_v19 }
 0x173   :  { %2330 = vmatpush2.bf16.msra.mxu0 %v3493_v24  ;;  %v1914_v49 = vadd.f32 %v3756_v29, %v412_v23 }
 0x174   :  { %3057 = vmatpush2.bf16.msra.mxu1 %v3493_v24  ;;  %2331 = vmatprep.subr.bf16.mxu0 %v3498_v25  ;;  %v416_v24 = vrot.slane %v407_v21, %v3838_v20 }
 0x175   :  { %3042 = vmatprep.subr.bf16.mxu1 %v3498_v25 }
 0x177   :  { %2332 = vmatpush2.bf16.msra.mxu0 %v3496_v26 }
 0x178   :  { %3058 = vmatpush2.bf16.msra.mxu1 %v3496_v26  ;;  %2333 = vmatprep.subr.bf16.mxu0 %v3501_v27  ;;  %v420_v26 = vrot.slane %v407_v21, %v3842_v53 }
 0x179   :  { %3043 = vmatprep.subr.bf16.mxu1 %v3501_v27  ;;  %v3851_v27 = vsub.s32 3, %v410_v47 }
 0x17b   :  { %2334 = vmatpush2.bf16.msra.mxu0 %v3499_v28  ;;  %v424_v53 = vrot.slane %v407_v21, %v3851_v27 }
 0x17c   :  { %3059 = vmatpush2.bf16.msra.mxu1 %v3499_v28 }
 0x17e   :  { %2336 = vmatmul.mubr.bf16.vlgmr.msra.gmra.mxu0 %v3724_v38  ;;  %v1925_v38 = vpop.f32.mrf.mxu0 }
 0x17f   :  { %2346 = vmatmul.mubr.bf16.vlgmr.msra.gmra.mxu1 %v3732_v55  ;;  %v2072_v50 = vpop.f32.mrf.mxu1  ;;  %v1926_v19 = vadd.f32 %v1925_v38, %v416_v24 }
 0x180   :  { %v1927_v55 = vpop.f32.mrf.mxu0 }
 0x181   :  { %v3780_v52 = vpop.f32.mrf.mxu1  ;;  %v1928_v20 = vadd.f32 %v1927_v55, %v412_v23 }
 0x182   :  { %v1929_v45 = vpop.f32.mrf.mxu0 }
 0x183   :  { %v3784_v57 = vpop.f32.mrf.mxu1 }
 0x184   :  { %v3774_v46 = vpop.f32.mrf.mxu0 }
 0x185   :  { %v3788_v59 = vpop.f32.mrf.mxu1 }
 0x186   :  { %v3778_v51 = vpop.f32.mrf.mxu0 }
 0x187   :  { %v2082_v62 = vpop.f32.mrf.mxu1 }
 0x188   :  { %v3782_v56 = vpop.f32.mrf.mxu0 }
 0x189   :  { %v3794_v0 = vpop.f32.mrf.mxu1 }
 0x18a   :  { %v3786_v58 = vpop.f32.mrf.mxu0 }
 0x18b   :  { %v3798_v2 = vpop.f32.mrf.mxu1 }
 0x18c   :  { %v3790_v60 = vpop.f32.mrf.mxu0 }
 0x18d   :  { %v3802_v4 = vpop.f32.mrf.mxu1 }
 0x18e   :  { %v3792_v63 = vpop.f32.mrf.mxu0 }
 0x190   :  { %v3796_v1 = vpop.f32.mrf.mxu0 }
 0x192   :  { %v3800_v3 = vpop.f32.mrf.mxu0 }
 0x1be   :  { %v2125_v5 = vpop.f32.mrf.mxu0 }
 0x1bf   :  { %v3804_v6 = vpop.f32.mrf.mxu1 }
 0x1c0   :  { %v3806_v7 = vpop.f32.mrf.mxu0 }
 0x1c1   :  { %v3808_v8 = vpop.f32.mrf.mxu1 }
 0x1c2   :  { %v3810_v9 = vpop.f32.mrf.mxu0 }
 0x1c3   :  { %v3812_v10 = vpop.f32.mrf.mxu1 }
 0x1c4   :  { %v3814_v11 = vpop.f32.mrf.mxu0 }
 0x1c5   :  { %v3816_v12 = vpop.f32.mrf.mxu1 }
 0x1c6   :  { %4188 = vst [vmem:[#allocation16_spill] sm:$0xff] %v3816_v12  ;;  %v2135_v13 = vpop.f32.mrf.mxu0  ;;  %v1920_v12 = vadd.f32 %v1919_v35, %v416_v24 }
 0x1c7   :  { %v3818_v37 = vpop.f32.mrf.mxu1 }
 0x1c8   :  { %v3820_v43 = vpop.f32.mrf.mxu0  ;;  %v1973_v38 = vadd.f32 %v3766_v39, %v1920_v12  ;;  %v2077_v39 = vadd.f32 %v3784_v57, %v420_v26 }
 0x1c9   :  { %v3822_v42 = vpop.f32.mrf.mxu1 }
 0x1ca   :  { %v3824_v14 = vpop.f32.mrf.mxu0 }
 0x1cb   :  { %v3826_v61 = vpop.f32.mrf.mxu1 }
 0x1cc   :  { %4189 = vst [vmem:[#allocation17_spill] sm:$0xff] %v3826_v61  ;;  %v3828_v15 = vpop.f32.mrf.mxu0 }
 0x1cd   :  { %4190 = vst [vmem:[#allocation18_spill] sm:$0xff] %v3828_v15  ;;  %v3830_v16 = vpop.f32.mrf.mxu1  ;;  %v2073_v15 = vadd.f32 %v2072_v50, %v420_v26 }
 0x1ce   :  { %4191 = vst [vmem:[#allocation19_spill] sm:$0xff] %v3830_v16  ;;  %v1916_v16 = vadd.f32 %v3760_v31, %v416_v24  ;;  %v2083_v31 = vadd.f32 %v2082_v62, %v420_v26  ;;  %v1981_v62 = vadd.f32 %v3772_v44, %v1928_v20 }
 0x1d0   :  { %v1969_v29 = vadd.f32 %v3762_v32, %v1916_v16  ;;  %v2136_v32 = vadd.f32 %v2135_v13, %v2083_v31  ;;  %v2087_v13 = vadd.f32 %v3798_v2, %v420_v26 }
 0x1fe   :  { %v3832_v17 = vpop.f32.mrf.mxu0 }
 0x1ff   :  { %4192 = vst [vmem:[#allocation20_spill] sm:$0xff] %v3832_v17  ;;  %v3834_v18 = vpop.f32.mrf.mxu1 }
 0x200   :  { %4193 = vst [vmem:[#allocation21_spill] sm:$0xff] %v3834_v18  ;;  %v3840_v22 = vpop.f32.mrf.mxu0  ;;  %v1918_v18 = vadd.f32 %v1917_v33, %v412_v23  ;;  %v3866_v33 = vsub.s32 5, %v410_v47 }
 0x201   :  { %4196 = vst [vmem:[#allocation24_spill] sm:$0xff] %v3840_v22  ;;  %v3844_v54 = vpop.f32.mrf.mxu1  ;;  %v3857_v22 = vsub.s32 4, %v410_v47 }
 0x202   :  { %4198 = vst [vmem:[#allocation26_spill] sm:$0xff] %v3844_v54  ;;  %v3848_v25 = vpop.f32.mrf.mxu0  ;;  %v1924_v54 = vadd.f32 %v1923_v36, %v412_v23  ;;  %v1971_v36 = vadd.f32 %v3764_v34, %v1918_v18  ;;  %v1979_v23 = vadd.f32 %v3770_v41, %v1926_v19  ;;  %v2075_v34 = vadd.f32 %v3780_v52, %v424_v53 }
 0x203   :  { %4199 = vst [vmem:[#allocation27_spill] sm:$0xff] %v3848_v25  ;;  %v3853_v28 = vpop.f32.mrf.mxu1  ;;  %v1930_v25 = vadd.f32 %v1929_v45, %v416_v24  ;;  %v428_v55 = vrot.slane %v407_v21, %v3857_v22  ;;  %v432_v41 = vrot.slane %v407_v21, %v3866_v33  ;;  %v2130_v52 = vadd.f32 %v3810_v9, %v2077_v39  ;;  %v4209_v39 = vld [vmem:[#allocation19_spill] sm:$0xff] }
 0x204   :  { %4200 = vst [vmem:[#allocation28_spill] sm:$0xff] %v3853_v28  ;;  %v3859_v61 = vpop.f32.mrf.mxu0  ;;  %v1967_v28 = vadd.f32 %v3758_v30, %v1914_v49  ;;  %v1977_v50 = vadd.f32 %v3768_v40, %v1924_v54  ;;  %v3874_v30 = vadd.f32 %v3778_v51, %v1969_v29  ;;  %v3884_v12 = vadd.f32 %v3792_v63, %v1979_v23  ;;  %v4204_v54 = vld [vmem:[#allocation17_spill] sm:$0xff] }
 0x205   :  { %4201 = vst [vmem:[#allocation29_spill] sm:$0xff] %v3859_v61  ;;  %v3862_v17 = vpop.f32.mrf.mxu1  ;;  %v2126_v61 = vadd.f32 %v2125_v5, %v2073_v15  ;;  %v1983_v47 = vadd.f32 %v3776_v48, %v1930_v25  ;;  %v2085_v40 = vadd.f32 %v3794_v0, %v424_v53  ;;  %v2128_v48 = vadd.f32 %v3806_v7, %v2075_v34 }
 0x206   :  { %v2241_v35 = vpop.f32.mrf.mxu0  ;;  %v3881_v5 = vadd.f32 %v3774_v46, %v1967_v28  ;;  %v3897_v63 = vadd.f32 %v3790_v60, %v1977_v50  ;;  %v3901_v15 = vadd.f32 %v3818_v37, %v2136_v32  ;;  %v3904_v2 = vadd.f32 %v3782_v56, %v1971_v36 }
 0x207   :  { %v2294_v45 = vpop.f32.mrf.mxu1  ;;  %v3890_v44 = vadd.f32 %v3804_v6, %v2126_v61  ;;  %v2138_v0 = vadd.f32 %v3820_v43, %v2085_v40  ;;  %v3907_v6 = vadd.f32 %v3786_v58, %v1973_v38  ;;  %v2079_v7 = vadd.f32 %v3788_v59, %v424_v53  ;;  %v4207_v38 = vld [vmem:[#allocation16_spill] sm:$0xff]  ;;  %v4208_v32 = vld [vmem:[#allocation21_spill] sm:$0xff] }
 0x208   :  { %v2243_v51 = vpop.f32.mrf.mxu0  ;;  %v2356_v46 = vadd.f32 %v3874_v30, %v3881_v5  ;;  %v2140_v9 = vadd.f32 %v3824_v14, %v2087_v13  ;;  %v2370_v61 = vadd.f32 %v3884_v12, %v3897_v63  ;;  %v3914_v60 = vadd.f32 %v3796_v1, %v1981_v62 }
 0x209   :  { %v2296_v57 = vpop.f32.mrf.mxu1  ;;  %v3917_v43 = vadd.f32 %v3800_v3, %v1983_v47  ;;  %v2089_v37 = vadd.f32 %v3802_v4, %v424_v53  ;;  %v3922_v58 = vadd.f32 %v3808_v8, %v2128_v48  ;;  %v3925_v59 = vadd.f32 %v3812_v10, %v2130_v52  ;;  %v4202_v3 = vld [vmem:[#allocation20_spill] sm:$0xff]  ;;  %v4203_v53 = vld [vmem:[#allocation18_spill] sm:$0xff] }
 0x20a   :  { %v2245_v56 = vpop.f32.mrf.mxu0  ;;  %v2357_v16 = vadd.f32 %v2356_v46, %v3890_v44  ;;  %v2132_v14 = vadd.f32 %v3814_v11, %v2079_v7  ;;  %v2371_v1 = vadd.f32 %v2370_v61, %v3901_v15  ;;  %v3930_v19 = vadd.f32 %v3822_v42, %v2138_v0  ;;  %v4205_v11 = vld [vmem:[#allocation24_spill] sm:$0xff]  ;;  %v4206_v29 = vld [vmem:[#allocation27_spill] sm:$0xff] }
 0x20b   :  { %v2298_v18 = vpop.f32.mrf.mxu1  ;;  %v2232_v20 = vadd.f32 %v4202_v3, %v428_v55  ;;  %v2242_v4 = vadd.f32 %v2241_v35, %v428_v55  ;;  %v2363_v21 = vadd.f32 %v3907_v6, %v3904_v2  ;;  %v2142_v8 = vadd.f32 %v4203_v53, %v2089_v37  ;;  %v4212_v37 = vld [vmem:[#allocation28_spill] sm:$0xff] }
 0x20c   :  { %v3937_v24 = vadd.f32 %v4204_v54, %v2140_v9  ;;  %v2377_v10 = vadd.f32 %v3917_v43, %v3914_v60  ;;  %v2234_v25 = vadd.f32 %v4205_v11, %v432_v41  ;;  %v2244_v26 = vadd.f32 %v2243_v51, %v432_v41  ;;  %v2247_v28 = vpop.f32.mrf.mxu0  ;;  %v4210_v51 = vld [vmem:[#allocation29_spill] sm:$0xff] }
 0x20d   :  { %v2358_v42 = vadd.f32 %v2357_v16, %v3922_v58  ;;  %v2364_v49 = vadd.f32 %v2363_v21, %v3925_v59  ;;  %v2236_v31 = vadd.f32 %v4206_v29, %v428_v55  ;;  %v2246_v35 = vadd.f32 %v2245_v56, %v428_v55  ;;  %v2300_v36 = vpop.f32.mrf.mxu1  ;;  %v4211_v55 = vld [vmem:[#allocation26_spill] sm:$0xff] }
 0x20e   :  { %v3946_v50 = vadd.f32 %v4207_v38, %v2132_v14  ;;  %v2372_v23 = vadd.f32 %v2371_v1, %v3930_v19  ;;  %v2285_v62 = vadd.f32 %v4208_v32, %v2232_v20  ;;  %v2295_v47 = vadd.f32 %v2294_v45, %v2242_v4 }
 0x20f   :  { %v2378_v34 = vadd.f32 %v2377_v10, %v3937_v24  ;;  %v3952_v40 = vadd.f32 %v4209_v39, %v2142_v8  ;;  %v2238_v13 = vadd.f32 %v4210_v51, %v432_v41  ;;  %v2248_v48 = vadd.f32 %v2247_v28, %v432_v41 }
 0x210   :  { %v2287_v0 = vadd.f32 %v4211_v55, %v2234_v25  ;;  %v2297_v7 = vadd.f32 %v2296_v57, %v2244_v26  ;;  %v2289_v56 = vadd.f32 %v4212_v37, %v2236_v31  ;;  %v2299_v16 = vadd.f32 %v2298_v18, %v2246_v35 }
 0x211   :  { %v2365_v21 = vadd.f32 %v2364_v49, %v3946_v50  ;;  %v2379_v41 = vadd.f32 %v2378_v34, %v3952_v40  ;;  %v2291_v53 = vadd.f32 %v3862_v17, %v2238_v13  ;;  %v2301_v8 = vadd.f32 %v2300_v36, %v2248_v48 }
 0x23e   :  { %v2337_v52 = vpop.f32.mrf.mxu0 }
 0x23f   :  { %v2347_v46 = vpop.f32.mrf.mxu1  ;;  %v2338_v9 = vadd.f32 %v2337_v52, %v2285_v62 }
 0x240   :  { %v2348_v61 = vadd.f32 %v2347_v46, %v2295_v47  ;;  %v2339_v14 = vpop.f32.mrf.mxu0 }
 0x241   :  { %v2349_v45 = vpop.f32.mrf.mxu1  ;;  %v2340_v1 = vadd.f32 %v2339_v14, %v2287_v0  ;;  %v2359_v4 = vadd.f32 %v2358_v42, %v2338_v9 }
 0x242   :  { %v2350_v3 = vadd.f32 %v2349_v45, %v2297_v7  ;;  %v2373_v20 = vadd.f32 %v2372_v23, %v2348_v61  ;;  %v2341_v54 = vpop.f32.mrf.mxu0 }
 0x243   :  { %v2351_v57 = vpop.f32.mrf.mxu1  ;;  %v2342_v10 = vadd.f32 %v2341_v54, %v2289_v56  ;;  %v2360_v18 = vadd.f32 %v2359_v4, %v2340_v1 }
 0x244   :  { %v3960_v11 = vadd.f32 %v2351_v57, %v2299_v16  ;;  %v2374_v25 = vadd.f32 %v2373_v20, %v2350_v3  ;;  %v2343_v26 = vpop.f32.mrf.mxu0 }
 0x245   :  { %v2353_v28 = vpop.f32.mrf.mxu1  ;;  %v2366_v29 = vadd.f32 %v2365_v21, %v2342_v10  ;;  %v2344_v42 = vadd.f32 %v2343_v26, %v2291_v53  ;;  %2361 = vadd.xlane.f32.xlu0 %v2360_v18 }
 0x246   :  { %v2380_v31 = vadd.f32 %v2379_v41, %v3960_v11  ;;  %v3963_v35 = vadd.f32 %v2353_v28, %v2301_v8  ;;  %2375 = vadd.xlane.f32.xlu1 %v2374_v25 }
 0x247   :  { %v2367_v49 = vadd.f32 %v2366_v29, %v2344_v42 }
 0x248   :  { %v2381_v17 = vadd.f32 %v2380_v31, %v3963_v35 }
 0x249   :  { %2368 = vadd.xlane.f32.xlu0 %v2367_v49 }
 0x24a   :  { %2382 = vadd.xlane.f32.xlu1 %v2381_v17 }
 0x2ce   :  { %v2362_v23 = vpop.xlane.xlu0 %2361 }
 0x2cf   :  { %v2376_v36 = vpop.xlane.xlu1 %2375  ;;  %v2385_v32 = vmul.f32 0.0013020834, %v2362_v23 }
 0x2d0   :  { %v2387_v38 = vmul.f32 0.0013020834, %v2376_v36 }
 0x2d1   :  { %v3970_v34 = vsub.f32 %v3881_v5, %v2385_v32  ;;  %v3973_v39 = vsub.f32 %v3874_v30, %v2385_v32  ;;  %v3976_v51 = vsub.f32 %v3890_v44, %v2385_v32  ;;  %v3982_v52 = vsub.f32 %v3922_v58, %v2385_v32 }
 0x2d2   :  { %v3967_v62 = vsub.f32 %v3897_v63, %v2387_v38  ;;  %v3979_v13 = vsub.f32 %v3884_v12, %v2387_v38  ;;  %v2369_v48 = vpop.xlane.xlu0 %2368  ;;  %v3984_v46 = vsub.f32 %v2338_v9, %v2385_v32  ;;  %v3987_v63 = vsub.f32 %v3901_v15, %v2387_v38 }
 0x2d3   :  { %v2383_v47 = vpop.xlane.xlu1 %2382  ;;  %v2386_v5 = vmul.f32 0.0013020834, %v2369_v48  ;;  %v2413_v30 = vmul.f32 %v3970_v34, %v3970_v34  ;;  %v2414_v44 = vmul.f32 %v3973_v39, %v3973_v39  ;;  %v3993_v0 = vsub.f32 %v2340_v1, %v2385_v32 }
 0x2d4   :  { %v2388_v55 = vmul.f32 0.0013020834, %v2383_v47  ;;  %v3996_v12 = vsub.f32 %v3930_v19, %v2387_v38  ;;  %v3998_v58 = vsub.f32 %v2348_v61, %v2387_v38  ;;  %v2415_v7 = vmul.f32 %v3976_v51, %v3976_v51 }
 0x2d5   :  { %v2437_v15 = vadd.f32 %v2414_v44, %v2413_v30  ;;  %v2425_v9 = vmul.f32 %v3967_v62, %v3967_v62  ;;  %v2426_v37 = vmul.f32 %v3979_v13, %v3979_v13  ;;  %v2416_v56 = vmul.f32 %v3982_v52, %v3982_v52 }
 0x2d6   :  { %v2417_v16 = vmul.f32 %v3984_v46, %v3984_v46  ;;  %v2427_v19 = vmul.f32 %v3987_v63, %v3987_v63  ;;  %v4013_v61 = vsub.f32 %v3904_v2, %v2386_v5  ;;  %v4016_v1 = vsub.f32 %v3907_v6, %v2386_v5 }
 0x2d7   :  { %v2438_v14 = vadd.f32 %v2437_v15, %v2415_v7  ;;  %v2451_v45 = vadd.f32 %v2426_v37, %v2425_v9  ;;  %v4019_v20 = vsub.f32 %v3925_v59, %v2386_v5  ;;  %v2418_v4 = vmul.f32 %v3993_v0, %v3993_v0 }
 0x2d8   :  { %v4023_v21 = vsub.f32 %v2350_v3, %v2387_v38  ;;  %v4026_v41 = vsub.f32 %v3946_v50, %v2386_v5  ;;  %v2419_v2 = vmul.f32 %v4013_v61, %v4013_v61  ;;  %v2428_v8 = vmul.f32 %v3996_v12, %v3996_v12 }
 0x2d9   :  { %v2439_v53 = vadd.f32 %v2438_v14, %v2416_v56  ;;  %v2452_v6 = vadd.f32 %v2451_v45, %v2427_v19  ;;  %v2420_v59 = vmul.f32 %v4016_v1, %v4016_v1  ;;  %v2429_v54 = vmul.f32 %v3998_v58, %v3998_v58 }
 0x2da   :  { %v4036_v57 = vsub.f32 %v2342_v10, %v2386_v5  ;;  %v2421_v50 = vmul.f32 %v4019_v20, %v4019_v20  ;;  %v4041_v3 = vsub.f32 %v3914_v60, %v2388_v55  ;;  %v4044_v28 = vsub.f32 %v3917_v43, %v2388_v55 }
 0x2db   :  { %v2440_v25 = vadd.f32 %v2439_v53, %v2417_v16  ;;  %v2453_v18 = vadd.f32 %v2452_v6, %v2428_v8  ;;  %v2444_v26 = vadd.f32 %v2420_v59, %v2419_v2  ;;  %v4046_v29 = vsub.f32 %v2344_v42, %v2386_v5 }
 0x2dc   :  { %v2422_v31 = vmul.f32 %v4026_v41, %v4026_v41  ;;  %v4051_v10 = vsub.f32 %v3937_v24, %v2388_v55  ;;  %v2431_v60 = vmul.f32 %v4041_v3, %v4041_v3  ;;  %v4056_v38 = vsub.f32 %v3952_v40, %v2388_v55 }
 0x2dd   :  { %v2441_v17 = vadd.f32 %v2440_v25, %v2418_v4  ;;  %v2454_v49 = vadd.f32 %v2453_v18, %v2429_v54  ;;  %v2445_v36 = vadd.f32 %v2444_v26, %v2421_v50  ;;  %v2432_v43 = vmul.f32 %v4044_v28, %v4044_v28  ;;  %v2501_v50 = vld [vmem:[#allocation8] sm:$0x3f]  ;;  %v2557_v25 = vld [vmem:[#allocation10] sm:$0x3f] }
 0x2de   :  { %v2430_v42 = vmul.f32 %v4023_v21, %v4023_v21  ;;  %v2423_v24 = vmul.f32 %v4036_v57, %v4036_v57  ;;  %v4065_v32 = vsub.f32 %v3960_v11, %v2388_v55  ;;  %v2433_v47 = vmul.f32 %v4051_v10, %v4051_v10  ;;  %v4213_v26 = vld [vmem:[#allocation22_spill] sm:$0xff] }
 0x2df   :  { %2442 = vadd.xlane.f32.xlu0 %v2441_v17  ;;  %v2446_v23 = vadd.f32 %v2445_v36, %v2422_v31  ;;  %v2458_v48 = vadd.f32 %v2432_v43, %v2431_v60  ;;  %v2424_v5 = vmul.f32 %v4046_v29, %v4046_v29  ;;  %v4072_v44 = vsub.f32 %v3963_v35, %v2388_v55 }
 0x2e0   :  { %v2455_v40 = vadd.f32 %v2454_v49, %v2430_v42  ;;  %v2434_v7 = vmul.f32 %v4056_v38, %v4056_v38  ;;  %v2435_v11 = vmul.f32 %v4065_v32, %v4065_v32  ;;  %v4081_v31 = vrot.slane %v2501_v50, %v4213_v26  ;;  %v4214_v49 = vld [vmem:[#allocation23_spill] sm:$0xff]  ;;  %v4215_v42 = vld [vmem:[#allocation25_spill] sm:$0xff] }
 0x2e1   :  { %v2447_v30 = vadd.f32 %v2446_v23, %v2423_v24  ;;  %v2459_v15 = vadd.f32 %v2458_v48, %v2433_v47  ;;  %v2436_v56 = vmul.f32 %v4072_v44, %v4072_v44  ;;  %v4084_v17 = vrot.slane %v2557_v25, %v4213_v26 }
 0x2e2   :  { %v4087_v36 = vrot.slane %v2501_v50, %v4214_v49  ;;  %v4090_v60 = vrot.slane %v2557_v25, %v4214_v49  ;;  %v2514_v24 = vrot.slane %v2501_v50, %v4215_v42  ;;  %v2518_v23 = vrot.slane %v2501_v50, %v3851_v27 }
 0x2e3   :  { %2456 = vadd.xlane.f32.xlu0 %v2455_v40  ;;  %v2448_v9 = vadd.f32 %v2447_v30, %v2424_v5  ;;  %v2460_v37 = vadd.f32 %v2459_v15, %v2434_v7  ;;  %v2522_v47 = vrot.slane %v2501_v50, %v3857_v22  ;;  %v2526_v48 = vrot.slane %v2501_v50, %v3866_v33 }
 0x2e4   :  { %v4101_v15 = vrot.slane %v2557_v25, %v4215_v42 }
 0x2e5   :  { %2449 = vadd.xlane.f32.xlu1 %v2448_v9  ;;  %v2461_v16 = vadd.f32 %v2460_v37, %v2435_v11  ;;  %v4104_v9 = vrot.slane %v2557_v25, %v3851_v27 }
 0x2e7   :  { %v2462_v19 = vadd.f32 %v2461_v16, %v2436_v56  ;;  %v4109_v56 = vrot.slane %v2557_v25, %v3857_v22 }
 0x2e9   :  { %2463 = vadd.xlane.f32.xlu1 %v2462_v19 }
 0x368   :  { %v2443_v14 = vpop.xlane.xlu0 %2442 }
 0x369   :  { %v2465_v35 = vmul.f32 0.0013020834, %v2443_v14 }
 0x36b   :  { %v2469_v55 = vadd.f32 1e-13, %v2465_v35 }
 0x36c   :  { %v2457_v45 = vpop.xlane.xlu0 %2456 }
 0x36d   :  { %3502 = vrsqrt.f32 %v2469_v55  ;;  %v2467_v4 = vmul.f32 0.0013020834, %v2457_v45 }
 0x36e   :  { %v2450_v2 = vpop.xlane.xlu1 %2449 }
 0x36f   :  { %v2466_v53 = vmul.f32 0.0013020834, %v2450_v2  ;;  %v2471_v8 = vadd.f32 1e-13, %v2467_v4 }
 0x371   :  { %v2470_v6 = vadd.f32 1e-13, %v2466_v53  ;;  %3504 = vrsqrt.f32 %v2471_v8 }
 0x372   :  { %v2464_v59 = vpop.xlane.xlu1 %2463 }
 0x373   :  { %3506 = vrsqrt.f32 %v2470_v6  ;;  %v2468_v54 = vmul.f32 0.0013020834, %v2464_v59 }
 0x375   :  { %v2472_v18 = vadd.f32 1e-13, %v2468_v54 }
 0x377   :  { %3508 = vrsqrt.f32 %v2472_v18 }
 0x37a   :  { %v3503_v43 = vpop.eup %3502 }
 0x37b   :  { %v2477_v40 = vmul.f32 %v3503_v43, %v3970_v34  ;;  %v2478_v5 = vmul.f32 %v3503_v43, %v3973_v39  ;;  %v2479_v30 = vmul.f32 %v3503_v43, %v3976_v51  ;;  %v2480_v7 = vmul.f32 %v3503_v43, %v3982_v52 }
 0x37c   :  { %v2481_v11 = vmul.f32 %v3503_v43, %v3984_v46  ;;  %v2482_v37 = vmul.f32 %v3503_v43, %v3993_v0  ;;  %v4112_v34 = vrot.slane %v2557_v25, %v3866_v33 }
 0x37d   :  { %v2533_v39 = vmul.f32 %v4081_v31, %v2477_v40  ;;  %v2534_v51 = vmul.f32 %v4087_v36, %v2478_v5  ;;  %v2535_v16 = vmul.f32 %v2514_v24, %v2479_v30  ;;  %v2536_v19 = vmul.f32 %v2518_v23, %v2480_v7 }
 0x37e   :  { %v3505_v52 = vpop.eup %3504  ;;  %v2537_v14 = vmul.f32 %v2522_v47, %v2481_v11  ;;  %v2538_v27 = vmul.f32 %v2526_v48, %v2482_v37 }
 0x37f   :  { %v2489_v35 = vmul.f32 %v3505_v52, %v3967_v62  ;;  %v2490_v46 = vmul.f32 %v3505_v52, %v3979_v13  ;;  %v2491_v0 = vmul.f32 %v3505_v52, %v3987_v63  ;;  %v2492_v22 = vmul.f32 %v3505_v52, %v3996_v12 }
 0x380   :  { %v3507_v55 = vpop.eup %3506  ;;  %v2493_v33 = vmul.f32 %v3505_v52, %v3998_v58  ;;  %v2494_v45 = vmul.f32 %v3505_v52, %v4023_v21  ;;  %v4123_v4 = vadd.f32 %v4084_v17, %v2533_v39  ;;  %v4126_v2 = vadd.f32 %v4090_v60, %v2534_v51 }
 0x381   :  { %v2483_v53 = vmul.f32 %v3507_v55, %v4013_v61  ;;  %v2484_v62 = vmul.f32 %v3507_v55, %v4016_v1  ;;  %v2485_v13 = vmul.f32 %v3507_v55, %v4019_v20  ;;  %v2486_v63 = vmul.f32 %v3507_v55, %v4026_v41 }
 0x382   :  { %v2487_v12 = vmul.f32 %v3507_v55, %v4036_v57  ;;  %v2488_v58 = vmul.f32 %v3507_v55, %v4046_v29  ;;  %v2545_v21 = vmul.f32 %v4081_v31, %v2489_v35  ;;  %v2546_v8 = vmul.f32 %v4087_v36, %v2490_v46 }
 0x383   :  { %v2539_v6 = vmul.f32 %v4081_v31, %v2483_v53  ;;  %v2540_v59 = vmul.f32 %v4087_v36, %v2484_v62  ;;  %v2541_v54 = vmul.f32 %v2514_v24, %v2485_v13  ;;  %v2542_v61 = vmul.f32 %v2518_v23, %v2486_v63 }
 0x384   :  { %v2543_v50 = vmul.f32 %v2522_v47, %v2487_v12  ;;  %v2544_v1 = vmul.f32 %v2526_v48, %v2488_v58  ;;  %v2547_v25 = vmul.f32 %v2514_v24, %v2491_v0  ;;  %v2548_v20 = vmul.f32 %v2518_v23, %v2492_v22  ;;  %v3509_v18 = vpop.eup %3508 }
 0x385   :  { %v2549_v41 = vmul.f32 %v2522_v47, %v2493_v33  ;;  %v2550_v26 = vmul.f32 %v2526_v48, %v2494_v45  ;;  %v2591_v57 = vadd.f32 %v4101_v15, %v2535_v16  ;;  %v2592_v29 = vadd.f32 %v4104_v9, %v2536_v19 }
 0x386   :  { %v2495_v49 = vmul.f32 %v3509_v18, %v4041_v3  ;;  %v2496_v43 = vmul.f32 %v3509_v18, %v4044_v28  ;;  %v2497_v42 = vmul.f32 %v3509_v18, %v4051_v10  ;;  %v2498_v40 = vmul.f32 %v3509_v18, %v4056_v38 }
 0x387   :  { %v2499_v5 = vmul.f32 %v3509_v18, %v4065_v32  ;;  %v2500_v30 = vmul.f32 %v3509_v18, %v4072_v44  ;;  %v2593_v7 = vadd.f32 %v4109_v56, %v2537_v14  ;;  %v2594_v11 = vadd.f32 %v4112_v34, %v2538_v27 }
 0x388   :  { %v2551_v37 = vmul.f32 %v4081_v31, %v2495_v49  ;;  %v2552_v39 = vmul.f32 %v4087_v36, %v2496_v43  ;;  %v2553_v51 = vmul.f32 %v2514_v24, %v2497_v42  ;;  %v2554_v3 = vmul.f32 %v2518_v23, %v2498_v40 }
 0x389   :  { %v2555_v52 = vmul.f32 %v2522_v47, %v2499_v5  ;;  %v2556_v28 = vmul.f32 %v2526_v48, %v2500_v30  ;;  %v2595_v10 = vadd.f32 %v4084_v17, %v2539_v6  ;;  %v2596_v38 = vadd.f32 %v4090_v60, %v2540_v59 }
 0x38a   :  { %v2597_v32 = vadd.f32 %v4101_v15, %v2541_v54  ;;  %v2598_v44 = vadd.f32 %v4104_v9, %v2542_v61  ;;  %v2599_v16 = vadd.f32 %v4109_v56, %v2543_v50  ;;  %v2600_v19 = vadd.f32 %v4112_v34, %v2544_v1 }
 0x38b   :  { %v2601_v31 = vadd.f32 %v4084_v17, %v2545_v21  ;;  %v2602_v36 = vadd.f32 %v4090_v60, %v2546_v8  ;;  %v2603_v24 = vadd.f32 %v4101_v15, %v2547_v25  ;;  %v2604_v23 = vadd.f32 %v4104_v9, %v2548_v20 }
 0x38c   :  { %v2605_v47 = vadd.f32 %v4109_v56, %v2549_v41  ;;  %v2606_v48 = vadd.f32 %v4112_v34, %v2550_v26  ;;  %v2607_v14 = vadd.f32 %v4084_v17, %v2551_v37  ;;  %v2608_v27 = vadd.f32 %v4090_v60, %v2552_v39 }
 0x38d   :  { %v2609_v35 = vadd.f32 %v4101_v15, %v2553_v51  ;;  %v2610_v46 = vadd.f32 %v4104_v9, %v2554_v3  ;;  %v2611_v0 = vadd.f32 %v4109_v56, %v2555_v52  ;;  %v2612_v22 = vadd.f32 %v4112_v34, %v2556_v28 }
 0x38e   :  { %v3016_v55 = vpack.c.bf16 %v4126_v2, %v4123_v4  ;;  %v3017_v33 = vpack.c.bf16 %v2592_v29, %v2591_v57  ;;  %v3018_v45 = vpack.c.bf16 %v2594_v11, %v2593_v7  ;;  %v3019_v53 = vpack.c.bf16 %v2596_v38, %v2595_v10 }
 0x38f   :  { %v3020_v62 = vpack.c.bf16 %v2598_v44, %v2597_v32  ;;  %v3021_v17 = vpack.c.bf16 %v2600_v19, %v2599_v16  ;;  %v3022_v13 = vpack.c.bf16 %v2602_v36, %v2601_v31  ;;  %v3023_v60 = vpack.c.bf16 %v2604_v23, %v2603_v24 }
 0x390   :  { %v3024_v63 = vpack.c.bf16 %v2606_v48, %v2605_v47  ;;  %v3025_v15 = vpack.c.bf16 %v2608_v27, %v2607_v14  ;;  %v3026_v12 = vpack.c.bf16 %v2610_v46, %v2609_v35  ;;  %v3027_v9 = vpack.c.bf16 %v2612_v22, %v2611_v0  ;;  %2685 = vst [vmem:[#allocation11] sm:$0xff] %v3016_v55 }
 0x391   :  { %2686 = vst [vmem:[#allocation11 + $0x8] sm:$0xff] %v3017_v33  ;;  %2687 = vst [vmem:[#allocation11 + $0x10] sm:$0xff] %v3018_v45 }
 0x392   :  { %2688 = vst [vmem:[#allocation11 + $0x18] sm:$0xff] %v3019_v53  ;;  %2689 = vst [vmem:[#allocation11 + $0x20] sm:$0xff] %v3020_v62 }
 0x393   :  { %2690 = vst [vmem:[#allocation11 + $0x28] sm:$0xff] %v3021_v17  ;;  %2691 = vst [vmem:[#allocation11 + $0x30] sm:$0xff] %v3022_v13 }
 0x394   :  { %2692 = vst [vmem:[#allocation11 + $0x38] sm:$0xff] %v3023_v60  ;;  %2693 = vst [vmem:[#allocation11 + $0x40] sm:$0xff] %v3024_v63 }
 0x395   :  { %2694 = vst [vmem:[#allocation11 + $0x48] sm:$0xff] %v3025_v15  ;;  %2695 = vst [vmem:[#allocation11 + $0x50] sm:$0xff] %v3026_v12 }
 0x396   :  { %2696 = vst [vmem:[#allocation11 + $0x58] sm:$0xff] %v3027_v9 }
 0x397   :  { %3621 = shalt.err (!%p3618_p1)
}
 0x398   :  { %2708 = dma.vmem_to_hbm [thread:$0]  %s2703_s4, 1536, %s4181_s5, [#allocation4], %s3639_s21, %s3639_s21, %s3640_s22  }
 0x399   :  { %3636 = dma.done.wait [#allocation4], 1536  }
 0x39a   :  { %3637 = vsyncadd [#allocation4], 4294965760 }
 0x39b   :  { %2712 = vsyncpa [#allocation3], 1 }
 0x39c   :  { %2713 = vsyncpa [#allocation6], 1 }
 0x39d   :  { %2714 = vsyncpa [#allocation9], 1 }
 0x39e   :  { %2715 = vsyncpa [#allocation4], 1 }

</bundles_post_ra>
